<compile_context>
chip_gen: v6e
topology: v6e:2x2x1
jax: 0.10.0
libtpu: 0.0.40
codegen_flags: <defaults>
</compile_context>

<pallas_src>
import functools

import jax
import jax.numpy as jnp
import numpy as np
from jax import lax
from jax.experimental import pallas as pl
from jax.experimental.pallas import tpu as pltpu


def _silu(x):
    return x * jax.nn.sigmoid(x)


# ---------------------------------------------------------------------------
# Pass 1: expand (1x1 conv) + SiLU -> depthwise KxK + SiLU  (+ channel sums)
# ---------------------------------------------------------------------------

def expand_dw_kernel(x_ref, we_ref, be_ref, wd_ref, bd_ref,
                     y_ref, sum_ref, *, K, H, W):
    # x_ref : (1, H, W, Cin)      we_ref: (Cin, Cexp)    be_ref: (1, Cexp)
    # wd_ref: (K*K, Cexp)         bd_ref: (1, Cexp)
    # y_ref : (1, H, W, Cexp)     sum_ref: (1, 1, Cexp)  (f32 channel sums)
    pad = (K - 1) // 2
    Cin = x_ref.shape[-1]
    Cexp = we_ref.shape[-1]

    # --- expand: 1x1 conv == channel matmul (f32 accumulate), SiLU in f32 ---
    x2d = x_ref[0].reshape(H * W, Cin)              # native dtype -> MXU
    e = jnp.dot(x2d, we_ref[...], preferred_element_type=jnp.float32)
    e = e + be_ref[...].astype(jnp.float32)
    e = e * jax.nn.sigmoid(e)                       # SiLU (f32 VPU/EUP math)
    e3 = e.reshape(H, W, Cexp)                      # (H, W, Cexp) f32

    # --- build the SAME-padded value in-register/VMEM (replaces HBM jnp.pad) ---
    zcol = jnp.zeros((H, pad, Cexp), jnp.float32)
    xp = jnp.concatenate([zcol, e3, zcol], axis=1)              # (H,  W+2p, C)
    zrow = jnp.zeros((pad, W + 2 * pad, Cexp), jnp.float32)
    xp = jnp.concatenate([zrow, xp, zrow], axis=0)              # (Hp, Wp,   C)

    # --- depthwise KxK conv + SiLU ---
    # Extract the K column-shifted (sublane-offset) views once; the row shifts
    # are cheap leading-dim slices.  K slices instead of K*K.
    wd = wd_ref[...].astype(jnp.float32)            # (K*K, Cexp)
    acc = jnp.zeros((H, W, Cexp), jnp.float32)
    for j in range(K):
        col = xp[:, j:j + W, :]                     # (Hp, W, Cexp)
        for i in range(K):
            tap = wd[i * K + j:i * K + j + 1, :]    # (1, Cexp) broadcast on lanes
            acc = acc + col[i:i + H] * tap
    acc = acc + bd_ref[...].astype(jnp.float32)
    acc = acc * jax.nn.sigmoid(acc)                 # SiLU

    y_ref[0] = acc.astype(y_ref.dtype)
    # squeeze-excitation global-average-pool numerator (divide done outside)
    sum_ref[...] = jnp.sum(acc, axis=(0, 1), keepdims=True).astype(sum_ref.dtype)


def expand_depthwise(x_nhwc, w_exp, b_exp, w_dw, b_dw, K):
    """Fused expand(1x1)+SiLU + depthwise KxK+SiLU.  Returns (y, channel_sums)."""
    N, H, W, Cin = x_nhwc.shape
    Cexp = w_exp.shape[1]
    # TODO(synk): for very large H*W*Cexp on v7x (64 MiB VMEM), row-tile this
    # kernel with a (K-1)-row halo instead of one whole image per grid step.
    return pl.pallas_call(
        functools.partial(expand_dw_kernel, K=K, H=H, W=W),
        out_shape=(jax.ShapeDtypeStruct((N, H, W, Cexp), x_nhwc.dtype),
                   jax.ShapeDtypeStruct((N, 1, Cexp), jnp.float32)),
        grid_spec=pltpu.PrefetchScalarGridSpec(
            num_scalar_prefetch=0, grid=(N,),
            in_specs=[pl.BlockSpec((1, H, W, Cin), lambda n: (n, 0, 0, 0)),
                      pl.BlockSpec((Cin, Cexp), lambda n: (0, 0)),
                      pl.BlockSpec((1, Cexp), lambda n: (0, 0)),
                      pl.BlockSpec((K * K, Cexp), lambda n: (0, 0)),
                      pl.BlockSpec((1, Cexp), lambda n: (0, 0))],
            out_specs=[pl.BlockSpec((1, H, W, Cexp), lambda n: (n, 0, 0, 0)),
                       pl.BlockSpec((1, 1, Cexp), lambda n: (n, 0, 0))]),
        compiler_params=pltpu.CompilerParams(
            dimension_semantics=("parallel",),
            vmem_limit_bytes=64 * 1024 * 1024),
    )(x_nhwc, w_exp, b_exp.reshape(1, Cexp),
      w_dw.reshape(K * K, Cexp), b_dw.reshape(1, Cexp))


# ---------------------------------------------------------------------------
# Pass 2: squeeze-excitation scale fused into project (1x1 conv, no activation)
# ---------------------------------------------------------------------------

def se_project_kernel(y_ref, s_ref, wp_ref, bp_ref, o_ref):
    # y_ref: (1, TH, W, Cexp)   s_ref: (1, 1, Cexp)   wp_ref: (Cexp, Cout)
    # bp_ref: (1, Cout)         o_ref: (1, TH, W, Cout)
    TH, W, Cexp = y_ref.shape[1], y_ref.shape[2], y_ref.shape[3]
    Cout = wp_ref.shape[-1]
    y2d = y_ref[0].reshape(TH * W, Cexp)
    scaled = y2d * s_ref[0]                         # SE channel scale (lanes)
    acc = jnp.dot(scaled, wp_ref[...], preferred_element_type=jnp.float32)
    acc = acc + bp_ref[...].astype(jnp.float32)
    o_ref[0] = acc.reshape(TH, W, Cout).astype(o_ref.dtype)


def se_project(y_nhwc, scale_nc, w_proj, b_proj, row_tile=8):
    N, H, W, Cexp = y_nhwc.shape
    Cout = w_proj.shape[1]
    th = row_tile if (H >= row_tile and H % row_tile == 0) else H
    return pl.pallas_call(
        se_project_kernel,
        out_shape=jax.ShapeDtypeStruct((N, H, W, Cout), y_nhwc.dtype),
        grid_spec=pltpu.PrefetchScalarGridSpec(
            num_scalar_prefetch=0, grid=(N, H // th),
            in_specs=[pl.BlockSpec((1, th, W, Cexp), lambda n, t: (n, t, 0, 0)),
                      pl.BlockSpec((1, 1, Cexp), lambda n, t: (n, 0, 0)),
                      pl.BlockSpec((Cexp, Cout), lambda n, t: (0, 0)),
                      pl.BlockSpec((1, Cout), lambda n, t: (0, 0))],
            out_specs=pl.BlockSpec((1, th, W, Cout), lambda n, t: (n, t, 0, 0))),
        compiler_params=pltpu.CompilerParams(
            dimension_semantics=("parallel", "parallel"),
            vmem_limit_bytes=64 * 1024 * 1024),
    )(y_nhwc, scale_nc.reshape(N, 1, Cexp), w_proj, b_proj.reshape(1, Cout))


# ---------------------------------------------------------------------------
# Full forward
# ---------------------------------------------------------------------------

def double_convolution(x_nchw, params, K):
    """DoubleConvolution forward.  Input/output NCHW (PyTorch convention);
    the two transposes are one-time model-boundary layout glue."""
    x = jnp.transpose(x_nchw, (0, 2, 3, 1))                    # NCHW -> NHWC
    N, H, W, Cin = x.shape

    # pass 1: expand + SiLU + depthwise + SiLU (+ per-image channel sums)
    y, sums = expand_depthwise(x, params["w_exp"], params["b_exp"],
                               params["w_dw"], params["b_dw"], K)

    # squeeze-excitation FC stack on the pooled (N, Cexp) vector: tiny,
    # latency-bound single-row matmuls -> plain JAX, not the MXU in-kernel.
    pooled = sums.reshape(N, -1) * (1.0 / float(H * W))
    s = pooled @ params["w_se1"] + params["b_se1"]
    s = s * jax.nn.sigmoid(s)                                  # SiLU
    s = jax.nn.sigmoid(s @ params["w_se2"] + params["b_se2"])  # Sigmoid, (N,Cexp)

    # pass 2: SE channel scale fused into the project 1x1 conv
    z = se_project(y, s.astype(x.dtype), params["w_proj"], params["b_proj"])
    return jnp.transpose(z, (0, 3, 1, 2))                      # NHWC -> NCHW


# ---------------------------------------------------------------------------
# Pure-JAX reference (validation only)
# ---------------------------------------------------------------------------

def reference(x_nchw, params, K):
    x = jnp.transpose(x_nchw, (0, 2, 3, 1))
    dn = ("NHWC", "HWIO", "NHWC")
    Cin = x.shape[-1]
    Cexp = params["w_exp"].shape[1]
    Cout = params["w_proj"].shape[1]
    y = lax.conv_general_dilated(x, params["w_exp"].reshape(1, 1, Cin, Cexp),
                                 (1, 1), "VALID", dimension_numbers=dn) + params["b_exp"]
    y = _silu(y)
    y = lax.conv_general_dilated(y, params["w_dw"].reshape(K, K, 1, Cexp),
                                 (1, 1), "SAME", dimension_numbers=dn,
                                 feature_group_count=Cexp) + params["b_dw"]
    y = _silu(y)
    pooled = jnp.mean(y, axis=(1, 2), keepdims=True)
    s = _silu(jnp.einsum("nhwc,cs->nhws", pooled, params["w_se1"]) + params["b_se1"])
    s = jax.nn.sigmoid(jnp.einsum("nhws,sc->nhwc", s, params["w_se2"]) + params["b_se2"])
    y = y * s
    z = lax.conv_general_dilated(y, params["w_proj"].reshape(1, 1, Cexp, Cout),
                                 (1, 1), "VALID", dimension_numbers=dn) + params["b_proj"]
    return jnp.transpose(z, (0, 3, 1, 2))


# ---------------------------------------------------------------------------
# Main
# ---------------------------------------------------------------------------

if __name__ == "__main__":
    # config: kernel_size=3, exp_ratio=4, squeeze_ratio=2
    K = 3
    exp_ratio = 4
    squeeze_ratio = 2
    N, Cin, H, W = 2, 4, 16, 16
    Cout = 4
    Cexp = Cin * exp_ratio                 # 16
    Csq = Cin // squeeze_ratio             # 2

    key = jax.random.PRNGKey(0)
    keys = jax.random.split(key, 11)

    def init(k, shape, fan_in):
        return (jax.random.uniform(k, shape, jnp.float32, -1.0, 1.0)
                / np.sqrt(float(fan_in))).astype(jnp.float32)

    params = {
        "w_exp":  init(keys[0], (Cin, Cexp), Cin),
        "b_exp":  init(keys[1], (Cexp,), Cin),
        "w_dw":   init(keys[2], (K, K, Cexp), K * K),
        "b_dw":   init(keys[3], (Cexp,), K * K),
        "w_se1":  init(keys[4], (Cexp, Csq), Cexp),
        "b_se1":  init(keys[5], (Csq,), Cexp),
        "w_se2":  init(keys[6], (Csq, Cexp), Csq),
        "b_se2":  init(keys[7], (Cexp,), Csq),
        "w_proj": init(keys[8], (Cexp, Cout), Cexp),
        "b_proj": init(keys[9], (Cout,), Cexp),
    }
    x = jax.random.normal(keys[10], (N, Cin, H, W), jnp.float32)

    out = jax.block_until_ready(double_convolution(x, params, K))
    assert out.shape == (N, Cout, H, W)

    ref = jax.block_until_ready(reference(x, params, K))
    np.testing.assert_allclose(np.asarray(out), np.asarray(ref),
                               atol=1e-4, rtol=1e-4)
    print("KERNEL_OK")
</pallas_src>

<mosaic_0001>
module attributes {stable_mosaic.version = 11 : i64} {
  func.func @expand_dw_kernel(%arg0: i32, %arg1: memref<1x16x16x4xf32, #tpu.memory_space<vmem>>, %arg2: memref<4x16xf32, #tpu.memory_space<vmem>>, %arg3: memref<1x16xf32, #tpu.memory_space<vmem>>, %arg4: memref<9x16xf32, #tpu.memory_space<vmem>>, %arg5: memref<1x16xf32, #tpu.memory_space<vmem>>, %arg6: memref<1x16x16x16xf32, #tpu.memory_space<vmem>>, %arg7: memref<1x1x16xf32, #tpu.memory_space<vmem>>) attributes {dimension_semantics = [#tpu.dimension_semantics<parallel>], iteration_bounds = array<i64: 2>, scalar_prefetch = 0 : i64, scratch_operands = 0 : i64, tpu.core_type = #tpu.core_type<tc>, window_params = [{transform_indices = @transform_0, window_bounds = array<i64: 1, 16, 16, 4>}, {pipeline_mode = #tpu.pipeline_mode<synchronous>, transform_indices = @transform_1, window_bounds = array<i64: 4, 16>}, {pipeline_mode = #tpu.pipeline_mode<synchronous>, transform_indices = @transform_2, window_bounds = array<i64: 1, 16>}, {pipeline_mode = #tpu.pipeline_mode<synchronous>, transform_indices = @transform_3, window_bounds = array<i64: 9, 16>}, {pipeline_mode = #tpu.pipeline_mode<synchronous>, transform_indices = @transform_4, window_bounds = array<i64: 1, 16>}, {transform_indices = @transform_5, window_bounds = array<i64: 1, 16, 16, 16>}, {transform_indices = @transform_6, window_bounds = array<i64: 1, 1, 16>}]} {
    %c0 = arith.constant 0 : index
    %c0_0 = arith.constant 0 : index
    %c0_1 = arith.constant 0 : index
    %c0_2 = arith.constant 0 : index
    %0 = vector.load %arg1[%c0, %c0_0, %c0_1, %c0_2] : memref<1x16x16x4xf32, #tpu.memory_space<vmem>>, vector<1x16x16x4xf32>
    %1 = vector.shape_cast %0 : vector<1x16x16x4xf32> to vector<16x16x4xf32>
    %2 = vector.shape_cast %1 : vector<16x16x4xf32> to vector<256x4xf32>
    %c0_3 = arith.constant 0 : index
    %c0_4 = arith.constant 0 : index
    %3 = vector.load %arg2[%c0_3, %c0_4] : memref<4x16xf32, #tpu.memory_space<vmem>>, vector<4x16xf32>
    %cst = arith.constant dense<0.000000e+00> : vector<256x16xf32>
    %4 = tpu.matmul %2, %3, %cst {dimension_numbers = #tpu.dot_dimension_numbers<[1], [0], [0], [1], [0, 0, 1, 1], [], []>} : vector<256x4xf32>, vector<4x16xf32>, vector<256x16xf32> -> vector<256x16xf32>
    %c0_5 = arith.constant 0 : index
    %c0_6 = arith.constant 0 : index
    %5 = vector.load %arg3[%c0_5, %c0_6] : memref<1x16xf32, #tpu.memory_space<vmem>>, vector<1x16xf32>
    %6 = vector.broadcast %5 : vector<1x16xf32> to vector<256x16xf32>
    %7 = arith.addf %4, %6 : vector<256x16xf32>
    %8 = arith.negf %7 : vector<256x16xf32>
    %9 = math.exp %8 : vector<256x16xf32>
    %cst_7 = arith.constant 1.000000e+00 : f32
    %10 = vector.broadcast %cst_7 : f32 to vector<256x16xf32>
    %11 = arith.addf %10, %9 : vector<256x16xf32>
    %12 = arith.divf %10, %11 : vector<256x16xf32>
    %13 = arith.mulf %7, %12 : vector<256x16xf32>
    %14 = vector.shape_cast %13 : vector<256x16xf32> to vector<16x16x16xf32>
    %cst_8 = arith.constant 0.000000e+00 : f32
    %15 = vector.broadcast %cst_8 : f32 to vector<16x1x16xf32>
    %16 = tpu.concatenate %15, %14, %15 in 1 : vector<16x1x16xf32>, vector<16x16x16xf32>, vector<16x1x16xf32> -> vector<16x18x16xf32>
    %cst_9 = arith.constant 0.000000e+00 : f32
    %17 = vector.broadcast %cst_9 : f32 to vector<1x18x16xf32>
    %18 = tpu.concatenate %17, %16, %17 in 0 : vector<1x18x16xf32>, vector<16x18x16xf32>, vector<1x18x16xf32> -> vector<18x18x16xf32>
    %c0_10 = arith.constant 0 : index
    %c0_11 = arith.constant 0 : index
    %19 = vector.load %arg4[%c0_10, %c0_11] : memref<9x16xf32, #tpu.memory_space<vmem>>, vector<9x16xf32>
    %cst_12 = arith.constant 0.000000e+00 : f32
    %20 = vector.broadcast %cst_12 : f32 to vector<16x16x16xf32>
    %21 = vector.extract_strided_slice %18 {offsets = [0, 0, 0], sizes = [18, 16, 16], strides = [1, 1, 1]} : vector<18x18x16xf32> to vector<18x16x16xf32>
    %22 = vector.extract_strided_slice %19 {offsets = [0, 0], sizes = [1, 16], strides = [1, 1]} : vector<9x16xf32> to vector<1x16xf32>
    %23 = vector.extract_strided_slice %21 {offsets = [0, 0, 0], sizes = [16, 16, 16], strides = [1, 1, 1]} : vector<18x16x16xf32> to vector<16x16x16xf32>
    %24 = vector.shape_cast %22 : vector<1x16xf32> to vector<1x1x16xf32>
    %25 = vector.broadcast %24 : vector<1x1x16xf32> to vector<16x16x16xf32>
    %26 = arith.mulf %23, %25 : vector<16x16x16xf32>
    %27 = arith.addf %20, %26 : vector<16x16x16xf32>
    %28 = vector.extract_strided_slice %19 {offsets = [3, 0], sizes = [1, 16], strides = [1, 1]} : vector<9x16xf32> to vector<1x16xf32>
    %29 = vector.extract_strided_slice %21 {offsets = [1, 0, 0], sizes = [16, 16, 16], strides = [1, 1, 1]} : vector<18x16x16xf32> to vector<16x16x16xf32>
    %30 = vector.shape_cast %28 : vector<1x16xf32> to vector<1x1x16xf32>
    %31 = vector.broadcast %30 : vector<1x1x16xf32> to vector<16x16x16xf32>
    %32 = arith.mulf %29, %31 : vector<16x16x16xf32>
    %33 = arith.addf %27, %32 : vector<16x16x16xf32>
    %34 = vector.extract_strided_slice %19 {offsets = [6, 0], sizes = [1, 16], strides = [1, 1]} : vector<9x16xf32> to vector<1x16xf32>
    %35 = vector.extract_strided_slice %21 {offsets = [2, 0, 0], sizes = [16, 16, 16], strides = [1, 1, 1]} : vector<18x16x16xf32> to vector<16x16x16xf32>
    %36 = vector.shape_cast %34 : vector<1x16xf32> to vector<1x1x16xf32>
    %37 = vector.broadcast %36 : vector<1x1x16xf32> to vector<16x16x16xf32>
    %38 = arith.mulf %35, %37 : vector<16x16x16xf32>
    %39 = arith.addf %33, %38 : vector<16x16x16xf32>
    %40 = vector.extract_strided_slice %18 {offsets = [0, 1, 0], sizes = [18, 16, 16], strides = [1, 1, 1]} : vector<18x18x16xf32> to vector<18x16x16xf32>
    %41 = vector.extract_strided_slice %19 {offsets = [1, 0], sizes = [1, 16], strides = [1, 1]} : vector<9x16xf32> to vector<1x16xf32>
    %42 = vector.extract_strided_slice %40 {offsets = [0, 0, 0], sizes = [16, 16, 16], strides = [1, 1, 1]} : vector<18x16x16xf32> to vector<16x16x16xf32>
    %43 = vector.shape_cast %41 : vector<1x16xf32> to vector<1x1x16xf32>
    %44 = vector.broadcast %43 : vector<1x1x16xf32> to vector<16x16x16xf32>
    %45 = arith.mulf %42, %44 : vector<16x16x16xf32>
    %46 = arith.addf %39, %45 : vector<16x16x16xf32>
    %47 = vector.extract_strided_slice %19 {offsets = [4, 0], sizes = [1, 16], strides = [1, 1]} : vector<9x16xf32> to vector<1x16xf32>
    %48 = vector.extract_strided_slice %40 {offsets = [1, 0, 0], sizes = [16, 16, 16], strides = [1, 1, 1]} : vector<18x16x16xf32> to vector<16x16x16xf32>
    %49 = vector.shape_cast %47 : vector<1x16xf32> to vector<1x1x16xf32>
    %50 = vector.broadcast %49 : vector<1x1x16xf32> to vector<16x16x16xf32>
    %51 = arith.mulf %48, %50 : vector<16x16x16xf32>
    %52 = arith.addf %46, %51 : vector<16x16x16xf32>
    %53 = vector.extract_strided_slice %19 {offsets = [7, 0], sizes = [1, 16], strides = [1, 1]} : vector<9x16xf32> to vector<1x16xf32>
    %54 = vector.extract_strided_slice %40 {offsets = [2, 0, 0], sizes = [16, 16, 16], strides = [1, 1, 1]} : vector<18x16x16xf32> to vector<16x16x16xf32>
    %55 = vector.shape_cast %53 : vector<1x16xf32> to vector<1x1x16xf32>
    %56 = vector.broadcast %55 : vector<1x1x16xf32> to vector<16x16x16xf32>
    %57 = arith.mulf %54, %56 : vector<16x16x16xf32>
    %58 = arith.addf %52, %57 : vector<16x16x16xf32>
    %59 = vector.extract_strided_slice %18 {offsets = [0, 2, 0], sizes = [18, 16, 16], strides = [1, 1, 1]} : vector<18x18x16xf32> to vector<18x16x16xf32>
    %60 = vector.extract_strided_slice %19 {offsets = [2, 0], sizes = [1, 16], strides = [1, 1]} : vector<9x16xf32> to vector<1x16xf32>
    %61 = vector.extract_strided_slice %59 {offsets = [0, 0, 0], sizes = [16, 16, 16], strides = [1, 1, 1]} : vector<18x16x16xf32> to vector<16x16x16xf32>
    %62 = vector.shape_cast %60 : vector<1x16xf32> to vector<1x1x16xf32>
    %63 = vector.broadcast %62 : vector<1x1x16xf32> to vector<16x16x16xf32>
    %64 = arith.mulf %61, %63 : vector<16x16x16xf32>
    %65 = arith.addf %58, %64 : vector<16x16x16xf32>
    %66 = vector.extract_strided_slice %19 {offsets = [5, 0], sizes = [1, 16], strides = [1, 1]} : vector<9x16xf32> to vector<1x16xf32>
    %67 = vector.extract_strided_slice %59 {offsets = [1, 0, 0], sizes = [16, 16, 16], strides = [1, 1, 1]} : vector<18x16x16xf32> to vector<16x16x16xf32>
    %68 = vector.shape_cast %66 : vector<1x16xf32> to vector<1x1x16xf32>
    %69 = vector.broadcast %68 : vector<1x1x16xf32> to vector<16x16x16xf32>
    %70 = arith.mulf %67, %69 : vector<16x16x16xf32>
    %71 = arith.addf %65, %70 : vector<16x16x16xf32>
    %72 = vector.extract_strided_slice %19 {offsets = [8, 0], sizes = [1, 16], strides = [1, 1]} : vector<9x16xf32> to vector<1x16xf32>
    %73 = vector.extract_strided_slice %59 {offsets = [2, 0, 0], sizes = [16, 16, 16], strides = [1, 1, 1]} : vector<18x16x16xf32> to vector<16x16x16xf32>
    %74 = vector.shape_cast %72 : vector<1x16xf32> to vector<1x1x16xf32>
    %75 = vector.broadcast %74 : vector<1x1x16xf32> to vector<16x16x16xf32>
    %76 = arith.mulf %73, %75 : vector<16x16x16xf32>
    %77 = arith.addf %71, %76 : vector<16x16x16xf32>
    %c0_13 = arith.constant 0 : index
    %c0_14 = arith.constant 0 : index
    %78 = vector.load %arg5[%c0_13, %c0_14] : memref<1x16xf32, #tpu.memory_space<vmem>>, vector<1x16xf32>
    %79 = vector.shape_cast %78 : vector<1x16xf32> to vector<1x1x16xf32>
    %80 = vector.broadcast %79 : vector<1x1x16xf32> to vector<16x16x16xf32>
    %81 = arith.addf %77, %80 : vector<16x16x16xf32>
    %82 = arith.negf %81 : vector<16x16x16xf32>
    %83 = math.exp %82 : vector<16x16x16xf32>
    %cst_15 = arith.constant 1.000000e+00 : f32
    %84 = vector.broadcast %cst_15 : f32 to vector<16x16x16xf32>
    %85 = arith.addf %84, %83 : vector<16x16x16xf32>
    %86 = arith.divf %84, %85 : vector<16x16x16xf32>
    %87 = arith.mulf %81, %86 : vector<16x16x16xf32>
    %c0_16 = arith.constant 0 : index
    %c0_17 = arith.constant 0 : index
    %c0_18 = arith.constant 0 : index
    %c0_19 = arith.constant 0 : index
    %88 = vector.load %arg6[%c0_16, %c0_17, %c0_18, %c0_19] : memref<1x16x16x16xf32, #tpu.memory_space<vmem>>, vector<1x16x16x16xf32>
    %89 = vector.shape_cast %88 : vector<1x16x16x16xf32> to vector<16x16x16xf32>
    %90 = vector.shape_cast %87 : vector<16x16x16xf32> to vector<1x16x16x16xf32>
    tpu.vector_store %arg6[%c0_16, %c0_17, %c0_18, %c0_19], %90 {strides = array<i32>} : memref<1x16x16x16xf32, #tpu.memory_space<vmem>>, vector<1x16x16x16xf32>,
    %cst_20 = arith.constant dense<0.000000e+00> : vector<16xf32>
    %91 = vector.multi_reduction <add>, %87, %cst_20 [0, 1] : vector<16x16x16xf32> to vector<16xf32>
    %92 = vector.shape_cast %91 : vector<16xf32> to vector<1x1x16xf32>
    %c0_21 = arith.constant 0 : index
    %c0_22 = arith.constant 0 : index
    %c0_23 = arith.constant 0 : index
    %93 = vector.load %arg7[%c0_21, %c0_22, %c0_23] : memref<1x1x16xf32, #tpu.memory_space<vmem>>, vector<1x1x16xf32>
    tpu.vector_store %arg7[%c0_21, %c0_22, %c0_23], %92 {strides = array<i32>} : memref<1x1x16xf32, #tpu.memory_space<vmem>>, vector<1x1x16xf32>,
    return
  }
  func.func @transform_0(%arg0: i32) -> (i32, i32, i32, i32) {
    %c0_i32 = arith.constant 0 : i32
    %c0_i32_0 = arith.constant 0 : i32
    %c0_i32_1 = arith.constant 0 : i32
    %c0_i32_2 = arith.constant 0 : i32
    return %arg0, %c0_i32, %c0_i32_0, %c0_i32_1 : i32, i32, i32, i32
  }
  func.func @transform_1(%arg0: i32) -> (i32, i32) {
    %c0_i32 = arith.constant 0 : i32
    %c0_i32_0 = arith.constant 0 : i32
    %c0_i32_1 = arith.constant 0 : i32
    return %c0_i32, %c0_i32_0 : i32, i32
  }
  func.func @transform_2(%arg0: i32) -> (i32, i32) {
    %c0_i32 = arith.constant 0 : i32
    %c0_i32_0 = arith.constant 0 : i32
    %c0_i32_1 = arith.constant 0 : i32
    return %c0_i32, %c0_i32_0 : i32, i32
  }
  func.func @transform_3(%arg0: i32) -> (i32, i32) {
    %c0_i32 = arith.constant 0 : i32
    %c0_i32_0 = arith.constant 0 : i32
    %c0_i32_1 = arith.constant 0 : i32
    return %c0_i32, %c0_i32_0 : i32, i32
  }
  func.func @transform_4(%arg0: i32) -> (i32, i32) {
    %c0_i32 = arith.constant 0 : i32
    %c0_i32_0 = arith.constant 0 : i32
    %c0_i32_1 = arith.constant 0 : i32
    return %c0_i32, %c0_i32_0 : i32, i32
  }
  func.func @transform_5(%arg0: i32) -> (i32, i32, i32, i32) {
    %c0_i32 = arith.constant 0 : i32
    %c0_i32_0 = arith.constant 0 : i32
    %c0_i32_1 = arith.constant 0 : i32
    %c0_i32_2 = arith.constant 0 : i32
    return %arg0, %c0_i32, %c0_i32_0, %c0_i32_1 : i32, i32, i32, i32
  }
  func.func @transform_6(%arg0: i32) -> (i32, i32, i32) {
    %c0_i32 = arith.constant 0 : i32
    %c0_i32_0 = arith.constant 0 : i32
    %c0_i32_1 = arith.constant 0 : i32
    return %arg0, %c0_i32, %c0_i32_0 : i32, i32, i32
  }
}

</mosaic_0001>

<bundles_post_ra>
// kernel: tpu_custom_call.1
= control target key start
LH: loop header
LB: loop body
LE: loop exit
PB: predicated region body
PF: predicated region fallthrough
CT: control target
= control target key end

     0   :  { %12 = vsyncpa [#allocation3], 0  ;;  %s6589_s0 = inlined_call_operand.vmem [shape: f32[2,16,16,4], index: 0, kind: input, shape index: {}]   ;;  %s6590_s1 = inlined_call_operand.vmem [shape: f32[4,16], index: 1, kind: input, shape index: {}]   ;;  %s6591_s2 = inlined_call_operand.vmem [shape: f32[1,16], index: 2, kind: input, shape index: {}]   ;;  %s6592_s3 = inlined_call_operand.vmem [shape: f32[9,16], index: 3, kind: input, shape index: {}]   ;;  %s6593_s4 = inlined_call_operand.vmem [shape: f32[1,16], index: 4, kind: input, shape index: {}]   ;;  %s6594_s5 = inlined_call_operand.hbm [shape: f32[2,16,16,16], index: 5, kind: output, shape index: {0}]   ;;  %s6595_s6 = inlined_call_operand.hbm [shape: f32[2,1,16], index: 6, kind: output, shape index: {1}]  }
   0x1   :  { %14 = vsyncpa [#allocation3 + $0x1], 0 }
   0x2   :  { %15 = vsyncpa [#allocation5], 0 }
   0x3   :  { %17 = vsyncpa [#allocation5 + $0x1], 0  ;;  %s3774_s21 = smov 0   ;;  %s3776_s22 = smov 0  }
   0x4   :  { %s3778_s23 = smov 0   ;;  %s3780_s24 = smov 0  }
   0x5 LB: > { %s3795_s25 = sadd.s32 4294967295, %s3733_s24   ;;  %s3136_s26 = sadd.s32 4294967294, %s3733_s24   ;;  %s3733_s24 = sphi %s3780_s24, %s7109_s24   ;;  %s3729_s23 = sphi %s3778_s23, %s7108_s23   ;;  %s3725_s22 = sphi %s3776_s22, %s7107_s22   ;;  %s3721_s21 = sphi %s3774_s21, %s7106_s21  }
   0x6   : > { %s3799_s27 = sadd.s32 1, %s3733_s24   ;;  %s140_s28 = sadd.s32 1, %s3729_s23 }
   0x7   : > { %s137_s29 = ssub.s32 %s3733_s24, %s3799_s27  ;;  %p150_p0 = scmp.ne.s32.totalorder %s3729_s23, %s3725_s22 }
   0x8   : > { %p138_p1 = scmp.eq.s32.totalorder %s137_s29, 0  ;;  %p151_p2 = scmp.eq.s32.totalorder %s3795_s25, 1 }
   0x9   : > { %p156_p3 = scmp.ne.s32.totalorder %s3725_s22, %s3721_s21  ;;  %p157_p4 = scmp.eq.s32.totalorder %s3136_s26, 1 }
   0xa   : > { %s3810_s30 = scalar_select %p138_p1, %s3729_s23, %s140_s28  }
   0xb   : > { %p3812_p5 = por %p151_p2, %p150_p0  ;;  %p3816_p6 = por %p157_p4, %p156_p3 }
   0xc   : > { %p3139_p7 = scmp.ge.s32.totalorder %s3733_s24, 1  ;;  %p221_p8 = scmp.lt.s32.totalorder %s3733_s24, 3 }
   0xe   : > { %p222_p9 = pnand %p3139_p7, %p221_p8 }
  0x10   : > { %225 = sbr.rel (%p222_p9) target bundleno = 736 (0x2e0), region = 40 }
  0x15   : > { %v292_v0 = vld [vmem:[%s6590_s1] sm:$0xf]  ;;  %vm397_vm0 = vcmask 1043456   ;;  %p255_p10 = scmp.lt.s32.totalorder %s3795_s25, 1  ;;  %vm300_vm1 = vcmask 31744   ;;  %vm882_vm2 = vcmask 1040384  }
  0x16   : > { %3284 = vmatprep.subr.msk.mxu0 %vm397_vm0, %v292_v0  ;;  %3334 = vmatprep.subr.msk.mxu1 %vm397_vm0, %v292_v0  ;;  %v3899_v33 = vld [vmem:[%s6591_s2] ss:$0 sm:$0xff]  ;;  %vm1310_vm3 = vcmask 1046528   ;;  %vm2027_vm4 = vcmask 1045504   ;;  %vm2911_vm5 = vcmask 130048   ;;  %s4577_s9 = sand.u32 1, %s3725_s22  }
  0x17   : > { %3285 = vmatpush3.msk.msra.mxu0 %vm397_vm0, %v292_v0  ;;  %3335 = vmatpush3.msk.msra.mxu1 %vm397_vm0, %v292_v0  ;;  %s256_s11 = scalar_select %p255_p10, %s3795_s25, 1 }
  0x18   : > { %s3140_s10 = sshll.u32 %s4577_s9, 8  ;;  %s3250_s28 = sshll.u32 %s3795_s25, 12 }
  0x19   : > { %s3249_s12 = sshll.u32 %s256_s11, 8  ;;  %s4638_s11 = scalar_lea.vmem [#allocation2], %s3140_s10 }
  0x1a   : > { %s3830_s15 = scalar_lea.vmem %s6589_s0, %s3249_s12  ;;  %s3033_s29 = sshll.u32 %s4638_s11, 4  ;;  %s6514_s29 = int_to_ptr.vmem [resolvable:$true] %s3033_s29 }
  0x1b   : > { %v260_v1 = vld [vmem:[%s3830_s15] sm:$0xff]  ;;  %v261_v3 = vld [vmem:[%s3830_s15 + $0x8] sm:$0xff]  ;;  %v262_v5 = vld [vmem:[%s3830_s15 + $0x10] sm:$0xff]  ;;  %s6512_s13 = scalar_lea.hbm %s6594_s5, %s3250_s28  ;;  %s3016_s14 = scalar_lea.sflag [#allocation3], %s4577_s9 }
  0x1c   : > { %v276_v2 = vld [vmem:[%s3830_s15 + $0x80] sm:$0xff]  ;;  %3286 = vmatprep.mubr.msk.f32.mxu0 %vm300_vm1, %v260_v1  ;;  %v277_v4 = vld [vmem:[%s3830_s15 + $0x88] sm:$0xff]  ;;  %v278_v6 = vld [vmem:[%s3830_s15 + $0x90] sm:$0xff]  ;;  %s3735_s16 = smov [#allocation2]  }
  0x1d   : > { %3310 = vmatprep.mubr.msk.f32.mxu1 %vm300_vm1, %v276_v2  ;;  %3287 = vmatmul.mubr.msk.f32.vlgmr.msra.gmra.mxu0 %vm300_vm1, %v261_v3  ;;  %v263_v7 = vld [vmem:[%s3830_s15 + $0x18] sm:$0xff]  ;;  %v264_v9 = vld [vmem:[%s3830_s15 + $0x20] sm:$0xff]  ;;  %v265_v11 = vld [vmem:[%s3830_s15 + $0x28] sm:$0xff]  ;;  %s3647_s17 = sshll.u32 %s3735_s16, 4  ;;  %s3648_s17 = int_to_ptr.vmem [resolvable:$false] %s3647_s17 }
  0x1e   : > { %3311 = vmatmul.mubr.msk.f32.vlgmr.msra.gmra.mxu1 %vm300_vm1, %v277_v4  ;;  %3289 = vmatprep.mubr.msk.f32.mxu0 %vm300_vm1, %v262_v5  ;;  %v279_v8 = vld [vmem:[%s3830_s15 + $0x98] sm:$0xff]  ;;  %v280_v10 = vld [vmem:[%s3830_s15 + $0xa0] sm:$0xff]  ;;  %v281_v12 = vld [vmem:[%s3830_s15 + $0xa8] sm:$0xff]  ;;  %s3649_s18 = scalar_lea.vmem %s3648_s17, 8192  ;;  %p3650_p0 = scmp.lt.s32.totalorder %s6514_s29, %s3648_s17 }
  0x1f   : > { %3313 = vmatprep.mubr.msk.f32.mxu1 %vm300_vm1, %v278_v6  ;;  %v266_v13 = vld [vmem:[%s3830_s15 + $0x30] sm:$0xff]  ;;  %v267_v15 = vld [vmem:[%s3830_s15 + $0x38] sm:$0xff]  ;;  %v268_v17 = vld [vmem:[%s3830_s15 + $0x40] sm:$0xff] }
  0x20   : > { %v282_v14 = vld [vmem:[%s3830_s15 + $0xb0] sm:$0xff]  ;;  %v283_v16 = vld [vmem:[%s3830_s15 + $0xb8] sm:$0xff]  ;;  %v284_v18 = vld [vmem:[%s3830_s15 + $0xc0] sm:$0xff] }
  0x21   : > { %3290 = vmatmul.mubr.msk.f32.gmra.mxu0 %vm300_vm1, %v263_v7  ;;  %v269_v19 = vld [vmem:[%s3830_s15 + $0x48] sm:$0xff]  ;;  %v270_v21 = vld [vmem:[%s3830_s15 + $0x50] sm:$0xff]  ;;  %v271_v23 = vld [vmem:[%s3830_s15 + $0x58] sm:$0xff] }
  0x22   : > { %3314 = vmatmul.mubr.msk.f32.gmra.mxu1 %vm300_vm1, %v279_v8  ;;  %3292 = vmatprep.mubr.msk.f32.mxu0 %vm300_vm1, %v264_v9  ;;  %v285_v20 = vld [vmem:[%s3830_s15 + $0xc8] sm:$0xff]  ;;  %v286_v22 = vld [vmem:[%s3830_s15 + $0xd0] sm:$0xff]  ;;  %v287_v24 = vld [vmem:[%s3830_s15 + $0xd8] sm:$0xff] }
  0x23   : > { %3316 = vmatprep.mubr.msk.f32.mxu1 %vm300_vm1, %v280_v10  ;;  %v272_v25 = vld [vmem:[%s3830_s15 + $0x60] sm:$0xff]  ;;  %v273_v27 = vld [vmem:[%s3830_s15 + $0x68] sm:$0xff]  ;;  %v274_v29 = vld [vmem:[%s3830_s15 + $0x70] sm:$0xff] }
  0x24   : > { %v288_v26 = vld [vmem:[%s3830_s15 + $0xe0] sm:$0xff]  ;;  %v289_v28 = vld [vmem:[%s3830_s15 + $0xe8] sm:$0xff]  ;;  %v290_v30 = vld [vmem:[%s3830_s15 + $0xf0] sm:$0xff] }
  0x25   : > { %3293 = vmatmul.mubr.msk.f32.gmra.mxu0 %vm300_vm1, %v265_v11  ;;  %v275_v31 = vld [vmem:[%s3830_s15 + $0x78] sm:$0xff] }
  0x26   : > { %3317 = vmatmul.mubr.msk.f32.gmra.mxu1 %vm300_vm1, %v281_v12  ;;  %3295 = vmatprep.mubr.msk.f32.mxu0 %vm300_vm1, %v266_v13  ;;  %v291_v32 = vld [vmem:[%s3830_s15 + $0xf8] sm:$0xff]  ;;  %s3643_s15 = scalar_lea.vmem %s6514_s29, 4096 }
  0x27   : > { %3319 = vmatprep.mubr.msk.f32.mxu1 %vm300_vm1, %v282_v14  ;;  %p3644_p11 = scmp.ne.s32.totalorder %s6514_s29, %s3643_s15  ;;  %p3651_p1 = scmp.lt.s32.totalorder %s3649_s18, %s3643_s15 }
  0x29   : > { %3296 = vmatmul.mubr.msk.f32.gmra.mxu0 %vm300_vm1, %v267_v15  ;;  %p3645_p12 = pnand %p3644_p11, %p3812_p5  ;;  %p3652_p2 = por %p3651_p1, %p3650_p0 }
  0x2a   : > { %3320 = vmatmul.mubr.msk.f32.gmra.mxu1 %vm300_vm1, %v283_v16  ;;  %3298 = vmatprep.mubr.msk.f32.mxu0 %vm300_vm1, %v268_v17 }
  0x2b   : > { %3322 = vmatprep.mubr.msk.f32.mxu1 %vm300_vm1, %v284_v18  ;;  %p3646_p13 = pneg %p3645_p12 }
  0x2d   : > { %3299 = vmatmul.mubr.msk.f32.gmra.mxu0 %vm300_vm1, %v269_v19  ;;  %p3653_p3 = pnand %p3652_p2, %p3646_p13 }
  0x2e   : > { %3323 = vmatmul.mubr.msk.f32.gmra.mxu1 %vm300_vm1, %v285_v20  ;;  %3301 = vmatprep.mubr.msk.f32.mxu0 %vm300_vm1, %v270_v21  ;;  %v1013_v21 = vlaneseq }
  0x2f   : > { %3325 = vmatprep.mubr.msk.f32.mxu1 %vm300_vm1, %v286_v22 }
  0x31   : > { %3302 = vmatmul.mubr.msk.f32.gmra.mxu0 %vm300_vm1, %v271_v23 }
  0x32   : > { %3326 = vmatmul.mubr.msk.f32.gmra.mxu1 %vm300_vm1, %v287_v24  ;;  %3304 = vmatprep.mubr.msk.f32.mxu0 %vm300_vm1, %v272_v25 }
  0x33   : > { %3328 = vmatprep.mubr.msk.f32.mxu1 %vm300_vm1, %v288_v26 }
  0x35   : > { %3305 = vmatmul.mubr.msk.f32.gmra.mxu0 %vm300_vm1, %v273_v27 }
  0x36   : > { %3329 = vmatmul.mubr.msk.f32.gmra.mxu1 %vm300_vm1, %v289_v28  ;;  %3307 = vmatprep.mubr.msk.f32.mxu0 %vm300_vm1, %v274_v29  ;;  %v3965_v29 = vshrl.u32 %v1013_v21, 7 }
  0x37   : > { %3331 = vmatprep.mubr.msk.f32.mxu1 %vm300_vm1, %v290_v30 }
  0x39   : > { %3308 = vmatmul.mubr.msk.f32.gmra.mxu0 %vm300_vm1, %v275_v31 }
  0x3a   : > { %3332 = vmatmul.mubr.msk.f32.gmra.mxu1 %vm300_vm1, %v291_v32 }
  0xdd   : > { %v3288_v34 = vpop.f32.mrf.mxu0 }
  0xde   : > { %v3312_v35 = vpop.f32.mrf.mxu1  ;;  %v3902_v36 = vadd.f32 %v3288_v34, %v3899_v33 }
  0xdf   : > { %v3905_v37 = vadd.f32 %v3312_v35, %v3899_v33  ;;  %v467_v38 = vpop.f32.mrf.mxu0  ;;  %v1015_v35 = vsub.s32 0, %v3965_v29 }
  0xe0   : > { %v547_v39 = vpop.f32.mrf.mxu1  ;;  %v3178_v40 = vmul.f32 -1.442695, %v3902_v36  ;;  %v3910_v42 = vadd.f32 %v3899_v33, %v467_v38 }
  0xe1   : > { %v3194_v41 = vmul.f32 -1.442695, %v3905_v37  ;;  %v3913_v43 = vadd.f32 %v3899_v33, %v547_v39  ;;  %v3291_v44 = vpop.f32.mrf.mxu0  ;;  %v1216_v39 = vsub.s32 1, %v3965_v29 }
  0xe2   : > { %v3315_v45 = vpop.f32.mrf.mxu1  ;;  %3382 = vpow2.f32 %v3178_v40  ;;  %v3177_v46 = vmul.f32 -1.442695, %v3910_v42  ;;  %v3918_v48 = vadd.f32 %v3291_v44, %v3899_v33  ;;  %v1453_v40 = vsub.s32 4, %v3965_v29  ;;  %v3973_v44 = vld [vmem:[%s6592_s3] sm:$0xff] }
  0xe3   : > { %v3193_v47 = vmul.f32 -1.442695, %v3913_v43  ;;  %3384 = vpow2.f32 %v3194_v41  ;;  %v3921_v49 = vadd.f32 %v3315_v45, %v3899_v33  ;;  %v477_v50 = vpop.f32.mrf.mxu0  ;;  %v1933_v45 = vsub.s32 2, %v3965_v29 }
  0xe4   : > { %v557_v51 = vpop.f32.mrf.mxu1  ;;  %3386 = vpow2.f32 %v3177_v46  ;;  %v3180_v52 = vmul.f32 -1.442695, %v3918_v48  ;;  %v3925_v53 = vadd.f32 %v3899_v33, %v477_v50  ;;  %v2170_v46 = vsub.s32 5, %v3965_v29 }
  0xe5   : > { %v3928_v54 = vadd.f32 %v3899_v33, %v557_v51  ;;  %3388 = vpow2.f32 %v3193_v47  ;;  %v3196_v55 = vmul.f32 -1.442695, %v3921_v49  ;;  %v3294_v56 = vpop.f32.mrf.mxu0  ;;  %v1697_v51 = vsub.s32 7, %v3965_v29 }
  0xe6   : > { %v3318_v57 = vpop.f32.mrf.mxu1  ;;  %3390 = vpow2.f32 %v3180_v52  ;;  %v3179_v58 = vmul.f32 -1.442695, %v3925_v53  ;;  %v3934_v60 = vadd.f32 %v3294_v56, %v3899_v33  ;;  %v1081_v52 = vsub.s32 3, %v3965_v29 }
  0xe7   : > { %v3195_v59 = vmul.f32 -1.442695, %v3928_v54  ;;  %3392 = vpow2.f32 %v3196_v55  ;;  %v3937_v61 = vadd.f32 %v3318_v57, %v3899_v33  ;;  %v487_v62 = vpop.f32.mrf.mxu0  ;;  %v3980_v57 = vrot.slane %v3973_v44, %v1015_v35 }
  0xe8   : > { %v567_v63 = vpop.f32.mrf.mxu1  ;;  %3394 = vpow2.f32 %v3179_v58  ;;  %v3182_v0 = vmul.f32 -1.442695, %v3934_v60  ;;  %v3941_v1 = vadd.f32 %v3899_v33, %v487_v62  ;;  %v3983_v62 = vrot.slane %v3973_v44, %v1216_v39 }
  0xe9   : > { %v3944_v2 = vadd.f32 %v3899_v33, %v567_v63  ;;  %3396 = vpow2.f32 %v3195_v59  ;;  %v3198_v3 = vmul.f32 -1.442695, %v3937_v61  ;;  %v3297_v4 = vpop.f32.mrf.mxu0  ;;  %6684 = vst [vmem:[#allocation13_spill] sm:$0xff] %v3980_v57  ;;  %v3986_v63 = vrot.slane %v3973_v44, %v1453_v40 }
  0xea   : > { %v3321_v5 = vpop.f32.mrf.mxu1  ;;  %3398 = vpow2.f32 %v3182_v0  ;;  %v3181_v6 = vmul.f32 -1.442695, %v3941_v1  ;;  %v3950_v8 = vadd.f32 %v3297_v4, %v3899_v33  ;;  %v3989_v4 = vrot.slane %v3973_v44, %v1933_v45 }
  0xeb   : > { %6679 = vst [vmem:[#allocation8_spill] sm:$0xff] %v3944_v2  ;;  %v3197_v7 = vmul.f32 -1.442695, %v3944_v2  ;;  %3400 = vpow2.f32 %v3198_v3  ;;  %v3953_v9 = vadd.f32 %v3321_v5, %v3899_v33  ;;  %v497_v10 = vpop.f32.mrf.mxu0  ;;  %v3992_v5 = vrot.slane %v3973_v44, %v2170_v46 }
  0xec   : > { %6680 = vst [vmem:[#allocation9_spill] sm:$0xff] %v3950_v8  ;;  %v577_v11 = vpop.f32.mrf.mxu1  ;;  %3402 = vpow2.f32 %v3181_v6  ;;  %v3184_v12 = vmul.f32 -1.442695, %v3950_v8  ;;  %v3957_v13 = vadd.f32 %v3899_v33, %v497_v10 }
  0xed   : > { %6681 = vst [vmem:[#allocation10_spill] sm:$0xff] %v3953_v9  ;;  %v3960_v14 = vadd.f32 %v3899_v33, %v577_v11  ;;  %3404 = vpow2.f32 %v3197_v7  ;;  %v3200_v15 = vmul.f32 -1.442695, %v3953_v9  ;;  %v3300_v7 = vpop.f32.mrf.mxu0  ;;  %v3995_v11 = vrot.slane %v3973_v44, %v1697_v51 }
  0xee   : > { %6682 = vst [vmem:[#allocation11_spill] sm:$0xff] %v3957_v13  ;;  %3406 = vpow2.f32 %v3184_v12  ;;  %v3183_v16 = vmul.f32 -1.442695, %v3957_v13  ;;  %v3998_v12 = vrot.slane %v3973_v44, %v1081_v52 }
  0xef   : > { %6683 = vst [vmem:[#allocation12_spill] sm:$0xff] %v3960_v14  ;;  %v3199_v17 = vmul.f32 -1.442695, %v3960_v14  ;;  %v3383_v18 = vpop.eup %3382  ;;  %3408 = vpow2.f32 %v3200_v15 }
  0xf0   : > { %v3385_v19 = vpop.eup %3384  ;;  %v723_v20 = vadd.f32 1.0, %v3383_v18  ;;  %3410 = vpow2.f32 %v3183_v16  ;;  %v1149_v18 = vsub.s32 6, %v3965_v29 }
  0xf1   : > { %v3387_v22 = vpop.eup %3386  ;;  %v739_v23 = vadd.f32 1.0, %v3385_v19  ;;  %3412 = vpow2.f32 %v3199_v17  ;;  %v4001_v17 = vmul.f32 0.0, %v3980_v57 }
  0xf2   : > { %v3389_v24 = vpop.eup %3388  ;;  %3414 = vrcp.f32 %v723_v20  ;;  %v722_v25 = vadd.f32 1.0, %v3387_v22  ;;  %v4043_v51 = vrot.slane %v3973_v44, %v1149_v18 }
  0xf3   : > { %v3391_v26 = vpop.eup %3390  ;;  %3416 = vrcp.f32 %v739_v23  ;;  %v738_v27 = vadd.f32 1.0, %v3389_v24  ;;  %v4006_v23 = vadd.f32 %v3300_v7, %v3899_v33 }
  0xf4   : > { %v3393_v28 = vpop.eup %3392  ;;  %3418 = vrcp.f32 %v722_v25  ;;  %v725_v30 = vadd.f32 1.0, %v3391_v26  ;;  %v4012_v26 = vmul.f32 0.0, %v3983_v62 }
  0xf5   : > { %v3395_v31 = vpop.eup %3394  ;;  %3420 = vrcp.f32 %v738_v27  ;;  %v741_v47 = vadd.f32 1.0, %v3393_v28  ;;  %6685 = vst [vmem:[#allocation14_spill] sm:$0xff] %v4006_v23  ;;  %v3324_v28 = vpop.f32.mrf.mxu1 }
  0xf6   : > { %v3397_v32 = vpop.eup %3396  ;;  %3422 = vrcp.f32 %v725_v30  ;;  %v724_v55 = vadd.f32 1.0, %v3395_v31  ;;  %v4022_v39 = vadd.f32 %v3324_v28, %v3899_v33 }
  0xf7   : > { %v3399_v34 = vpop.eup %3398  ;;  %v740_v58 = vadd.f32 1.0, %v3397_v32  ;;  %3424 = vrcp.f32 %v741_v47 }
  0xf8   : > { %v3401_v38 = vpop.eup %3400  ;;  %v727_v0 = vadd.f32 1.0, %v3399_v34  ;;  %3426 = vrcp.f32 %v724_v55  ;;  %v4017_v34 = vmul.f32 0.0, %v3989_v4  ;;  %6686 = vst [vmem:[#allocation15_spill] sm:$0xff] %v4022_v39 }
  0xf9   : > { %v3403_v41 = vpop.eup %3402  ;;  %v743_v6 = vadd.f32 1.0, %v3401_v38  ;;  %3428 = vrcp.f32 %v740_v58  ;;  %v3186_v38 = vmul.f32 -1.442695, %v4006_v23 }
  0xfa   : > { %v3405_v50 = vpop.eup %3404  ;;  %v726_v15 = vadd.f32 1.0, %v3403_v41  ;;  %3430 = vrcp.f32 %v727_v0 }
  0xfb   : > { %v3407_v56 = vpop.eup %3406  ;;  %v742_v19 = vadd.f32 1.0, %v3405_v50  ;;  %3432 = vrcp.f32 %v743_v6 }
  0xfc   : > { %v3409_v59 = vpop.eup %3408  ;;  %v729_v22 = vadd.f32 1.0, %v3407_v56  ;;  %3434 = vrcp.f32 %v726_v15  ;;  %v4051_v56 = vmul.f32 -1.442695, %v4022_v39 }
  0xfd   : > { %v3411_v3 = vpop.eup %3410  ;;  %v745_v27 = vadd.f32 1.0, %v3409_v59  ;;  %3436 = vrcp.f32 %v742_v19 }
  0xfe   : > { %v3413_v10 = vpop.eup %3412  ;;  %3438 = vrcp.f32 %v729_v22  ;;  %6687 = vst [vmem:[#allocation16_spill] sm:$0xff] %v4051_v56 }
  0xff   : > { %v3415_v16 = vpop.eup %3414  ;;  %3440 = vrcp.f32 %v745_v27 }
 0x100   : > { %v3417_v20 = vpop.eup %3416  ;;  %v819_v21 = vmul.f32 %v3415_v16, %v3902_v36  ;;  %v728_v36 = vadd.f32 1.0, %v3411_v3 }
 0x101   : > { %v3419_v24 = vpop.eup %3418  ;;  %v4009_v25 = vmul.f32 %v3417_v20, %v3905_v37  ;;  %v744_v37 = vadd.f32 1.0, %v3413_v10  ;;  %v4065_v10 = vld [vmem:[%s6592_s3 + $0x8] ss:$0 sm:$0xff] }
 0x102   : > { %v3421_v29 = vpop.eup %3420  ;;  %v884_v30 = vrot.slane %v819_v21, 7  ;;  %v818_v31 = vmul.f32 %v3419_v24, %v3910_v42  ;;  %3442 = vrcp.f32 %v728_v36 }
 0x103   : > { %v6596_v32 = vrot.slane %v4009_v25, 7  ;;  %v3423_v40 = vpop.eup %3422  ;;  %v4028_v45 = vmul.f32 %v3421_v29, %v3913_v43  ;;  %3444 = vrcp.f32 %v744_v37 }
 0x104   : > { %v995_v35 = vsel %vm882_vm2, %v884_v30, 0.0  ;;  %v883_v41 = vrot.slane %v818_v31, 7  ;;  %v4047_v52 = vmul.f32 %v3423_v40, %v3918_v48  ;;  %3446 = vpow2.f32 %v3186_v38  ;;  %v4057_v3 = vpop.eup %3424 }
 0x105   : > { %v4025_v42 = vmul.f32 %v3983_v62, %v995_v35  ;;  %v4031_v46 = vmul.f32 %v3986_v63, %v995_v35  ;;  %v4034_v47 = vmul.f32 %v3989_v4, %v995_v35  ;;  %v4037_v50 = vmul.f32 %v3992_v5, %v995_v35  ;;  %v4070_v16 = vpop.eup %3426 }
 0x106   : > { %v1003_v33 = vsel %vm882_vm2, %v6596_v32, 0.0  ;;  %v885_v59 = vsel %vm882_vm2, %v883_v41, %v884_v30  ;;  %v979_v44 = vsel %vm882_vm2, 0.0, %v883_v41  ;;  %v907_v0 = vrot.slane %v4028_v45, 7  ;;  %v4084_v22 = vpop.eup %3428 }
 0x107   : > { %v1316_v58 = vrot.slane %v4025_v42, 1  ;;  %v1554_v48 = vrot.slane %v4031_v46, 1  ;;  %v2033_v6 = vrot.slane %v4034_v47, 2  ;;  %v4068_v15 = vmul.f32 %v3983_v62, %v1003_v33  ;;  %v4090_v30 = vpop.eup %3430 }
 0x108   : > { %v4073_v18 = vmul.f32 %v3986_v63, %v1003_v33  ;;  %v4076_v19 = vmul.f32 %v3995_v11, %v1003_v33  ;;  %v4079_v20 = vmul.f32 %v3989_v4, %v1003_v33  ;;  %v4082_v21 = vmul.f32 %v3992_v5, %v1003_v33  ;;  %v4100_v38 = vpop.eup %3432 }
 0x109   : > { %6688 = vst [vmem:[#allocation17_spill] sm:$0xff] %v4068_v15  ;;  %v1219_v24 = vmul.f32 %v3983_v62, %v979_v44  ;;  %v1220_v27 = vmul.f32 %v3983_v62, %v885_v59  ;;  %v1455_v28 = vmul.f32 %v3986_v63, %v979_v44  ;;  %v1456_v29 = vmul.f32 %v3986_v63, %v885_v59  ;;  %v4108_v46 = vpop.eup %3434 }
 0x10a   : > { %v4093_v31 = vmul.f32 %v4065_v10, %v1003_v33  ;;  %v4096_v36 = vmul.f32 %v3980_v57, %v979_v44  ;;  %v1936_v37 = vmul.f32 %v3989_v4, %v979_v44  ;;  %v1937_v35 = vmul.f32 %v3989_v4, %v885_v59  ;;  %v4112_v7 = vpop.eup %3436 }
 0x10b   : > { %v4104_v42 = vmul.f32 %v3980_v57, %v885_v59  ;;  %v1083_v41 = vmul.f32 %v3998_v12, %v979_v44  ;;  %v1084_v45 = vmul.f32 %v3998_v12, %v885_v59  ;;  %v1313_v47 = vrot.slane %v1219_v24, 1  ;;  %6689 = vst [vmem:[#allocation18_spill] sm:$0xff] %v4112_v7  ;;  %v4114_v56 = vpop.eup %3438 }
 0x10c   : > { %v1314_v33 = vrot.slane %v1220_v27, 1  ;;  %v2172_v55 = vmul.f32 %v3992_v5, %v979_v44  ;;  %v2173_v43 = vmul.f32 %v3992_v5, %v885_v59  ;;  %v1551_v32 = vrot.slane %v1455_v28, 1  ;;  %6690 = vst [vmem:[#allocation19_spill] sm:$0xff] %v4114_v56  ;;  %v4120_v27 = vpop.eup %3440 }
 0x10d   : > { %v1552_v39 = vrot.slane %v1456_v29, 1  ;;  %v2030_v40 = vrot.slane %v1936_v37, 2  ;;  %v2031_v23 = vrot.slane %v1937_v35, 2  ;;  %v1594_v14 = vrot.slane %v4073_v18, 1  ;;  %6691 = vst [vmem:[#allocation20_spill] sm:$0xff] %v4120_v27 }
 0x10e   : > { %v1829_v13 = vrot.slane %v4076_v19, 1  ;;  %v2073_v9 = vrot.slane %v4079_v20, 2  ;;  %v2311_v24 = vrot.slane %v4082_v21, 2  ;;  %v2546_v59 = vrot.slane %v4093_v31, 2 }
 0x10f   : > { %v4124_v44 = vadd.f32 %v1083_v41, %v4001_v17  ;;  %v6692_v28 = vrot.slane %v4009_v25, 7  ;;  %v4132_v18 = vsel %vm882_vm2, 0.0, %v907_v0  ;;  %v4134_v19 = vpop.eup %3442  ;;  %v4137_v20 = vadd.f32 %v1084_v45, %v4001_v17 }
 0x110   : > { %6694 = vst [vmem:[#allocation22_spill] sm:$0xff] %v4132_v18  ;;  %6695 = vst [vmem:[#allocation23_spill] sm:$0xff] %v4134_v19  ;;  %v4140_v21 = vsel %vm1310_vm3, %v1313_v47, %v1314_v33  ;;  %v2268_v31 = vrot.slane %v2172_v55, 2  ;;  %v2269_v37 = vrot.slane %v2173_v43, 2  ;;  %v4142_v35 = vpop.eup %3444  ;;  %v4145_v25 = vsel %vm1310_vm3, %v1314_v33, %v1316_v58 }
 0x111   : > { %v4129_v29 = vsel %vm882_vm2, %v907_v0, %v6692_v28  ;;  %6696 = vst [vmem:[#allocation24_spill] sm:$0xff] %v4142_v35  ;;  %v4148_v41 = vsel %vm1310_vm3, %v1551_v32, %v1552_v39  ;;  %v4151_v0 = vsel %vm1310_vm3, %v1552_v39, %v1554_v48  ;;  %v4154_v28 = vsel %vm2027_vm4, %v2030_v40, %v2031_v23  ;;  %v4156_v17 = vpop.eup %3446 }
 0x112   : > { %6693 = vst [vmem:[#allocation21_spill] sm:$0xff] %v4129_v29  ;;  %6697 = vst [vmem:[#allocation25_spill] sm:$0xff] %v4154_v28  ;;  %v4159_v45 = vsel %vm2027_vm4, %v2031_v23, %v2033_v6  ;;  %v1479_v43 = vmul.f32 %v3986_v63, %v4132_v18  ;;  %v1480_v55 = vmul.f32 %v3986_v63, %v4129_v29  ;;  %v887_v32 = vrot.slane %v4047_v52, 7 }
 0x113   : > { %6698 = vst [vmem:[#allocation26_spill] sm:$0xff] %v4156_v17  ;;  %6699 = vst [vmem:[#allocation27_spill] sm:$0xff] %v4159_v45  ;;  %v1720_v39 = vmul.f32 %v3995_v11, %v4132_v18  ;;  %v1721_v58 = vmul.f32 %v3995_v11, %v4129_v29  ;;  %v1960_v48 = vmul.f32 %v3989_v4, %v4132_v18 }
 0x114   : > { %v1961_v23 = vmul.f32 %v3989_v4, %v4129_v29  ;;  %v4175_v6 = vsel %vm2027_vm4, %v2268_v31, %v2269_v37  ;;  %v1591_v40 = vrot.slane %v1479_v43, 1  ;;  %v1592_v47 = vrot.slane %v1480_v55, 1 }
 0x115   : > { %v4179_v52 = vmul.f32 %v4057_v3, %v3921_v49  ;;  %v4183_v33 = vmul.f32 %v3983_v62, %v4132_v18  ;;  %v4187_v17 = vmul.f32 %v3983_v62, %v4129_v29  ;;  %v1826_v35 = vrot.slane %v1720_v39, 1 }
 0x116   : > { %v1827_v19 = vrot.slane %v1721_v58, 1  ;;  %v4190_v27 = vsel %vm1310_vm3, %v1591_v40, %v1592_v47  ;;  %v4193_v31 = vsel %vm1310_vm3, %v1592_v47, %v1594_v14  ;;  %v2196_v49 = vmul.f32 %v3992_v5, %v4132_v18 }
 0x117   : > { %6700 = vst [vmem:[#allocation28_spill] sm:$0xff] %v4183_v33  ;;  %6701 = vst [vmem:[#allocation29_spill] sm:$0xff] %v4187_v17  ;;  %v2197_v3 = vmul.f32 %v3992_v5, %v4129_v29  ;;  %v2070_v39 = vrot.slane %v1960_v48, 2  ;;  %v2071_v58 = vrot.slane %v1961_v23, 2  ;;  %v2437_v14 = vmul.f32 %v4065_v10, %v4132_v18 }
 0x118   : > { %6702 = vst [vmem:[#allocation30_spill] sm:$0xff] %v4190_v27  ;;  %6703 = vst [vmem:[#allocation31_spill] sm:$0xff] %v4193_v31  ;;  %v4200_v43 = vsel %vm1310_vm3, %v1826_v35, %v1827_v19  ;;  %v4203_v55 = vsel %vm1310_vm3, %v1827_v19, %v1829_v13  ;;  %v2308_v56 = vrot.slane %v2196_v49, 2  ;;  %v2438_v47 = vmul.f32 %v4065_v10, %v4129_v29 }
 0x119   : > { %6704 = vst [vmem:[#allocation32_spill] sm:$0xff] %v4200_v43  ;;  %6705 = vst [vmem:[#allocation33_spill] sm:$0xff] %v4203_v55  ;;  %v2309_v40 = vrot.slane %v2197_v3, 2  ;;  %v6706_v31 = vrot.slane %v4037_v50, 2  ;;  %v996_v35 = vsel %vm882_vm2, %v887_v32, 0.0  ;;  %v6602_v13 = vrot.slane %v4179_v52, 7 }
 0x11a   : > { %v820_v19 = vmul.f32 %v4070_v16, %v3925_v53  ;;  %v2543_v49 = vrot.slane %v2437_v14, 2  ;;  %v2544_v3 = vrot.slane %v2438_v47, 2  ;;  %v4226_v50 = vmul.f32 %v3980_v57, %v4132_v18 }
 0x11b   : > { %v4212_v27 = vsel %vm2027_vm4, %v2269_v37, %v6706_v31  ;;  %v4219_v48 = vsel %vm2027_vm4, %v2308_v56, %v2309_v40  ;;  %v4222_v23 = vsel %vm2027_vm4, %v2309_v40, %v2311_v24  ;;  %v4230_v37 = vmul.f32 %v3980_v57, %v4129_v29 }
 0x11c   : > { %6707 = vst [vmem:[#allocation34_spill] sm:$0xff] %v4219_v48  ;;  %6708 = vst [vmem:[#allocation35_spill] sm:$0xff] %v4222_v23  ;;  %v4235_v56 = vsel %vm2027_vm4, %v2070_v39, %v2071_v58  ;;  %v4238_v16 = vsel %vm2027_vm4, %v2071_v58, %v2073_v9  ;;  %v4241_v24 = vsel %vm2027_vm4, %v2543_v49, %v2544_v3  ;;  %v886_v58 = vrot.slane %v820_v19, 7 }
 0x11d   : > { %6709 = vst [vmem:[#allocation36_spill] sm:$0xff] %v4235_v56  ;;  %6710 = vst [vmem:[#allocation37_spill] sm:$0xff] %v4238_v16  ;;  %v4244_v40 = vsel %vm2027_vm4, %v2544_v3, %v2546_v59  ;;  %v4247_v14 = vmul.f32 %v3983_v62, %v996_v35  ;;  %v4250_v47 = vmul.f32 %v3986_v63, %v996_v35  ;;  %v1004_v59 = vsel %vm882_vm2, %v6602_v13, 0.0 }
 0x11e   : > { %6711 = vst [vmem:[#allocation38_spill] sm:$0xff] %v4241_v24  ;;  %6712 = vst [vmem:[#allocation39_spill] sm:$0xff] %v4244_v40  ;;  %v1701_v31 = vmul.f32 %v3995_v11, %v996_v35  ;;  %v1941_v39 = vmul.f32 %v3989_v4, %v996_v35  ;;  %v4255_v53 = vmul.f32 %v3992_v5, %v996_v35  ;;  %v980_v13 = vsel %vm882_vm2, 0.0, %v886_v58 }
 0x11f   : > { %6713 = vst [vmem:[#allocation40_spill] sm:$0xff] %v4247_v14  ;;  %v4258_v9 = vmul.f32 %v4065_v10, %v996_v35  ;;  %v4264_v49 = vmul.f32 %v3983_v62, %v1004_v59  ;;  %v4267_v3 = vmul.f32 %v3986_v63, %v1004_v59  ;;  %v4270_v40 = vmul.f32 %v3995_v11, %v1004_v59 }
 0x120   : > { %v4273_v24 = vmul.f32 %v3989_v4, %v1004_v59  ;;  %v4276_v35 = vmul.f32 %v3992_v5, %v1004_v59  ;;  %v4279_v23 = vmul.f32 %v4065_v10, %v1004_v59  ;;  %v888_v19 = vsel %vm882_vm2, %v886_v58, %v887_v32 }
 0x121   : > { %6714 = vst [vmem:[#allocation41_spill] sm:$0xff] %v4264_v49  ;;  %v1794_v43 = vrot.slane %v1701_v31, 1  ;;  %v836_v29 = vmul.f32 %v4084_v22, %v3928_v54  ;;  %v2038_v18 = vrot.slane %v1941_v39, 2  ;;  %v2511_v56 = vrot.slane %v4258_v9, 2 }
 0x122   : > { %v1151_v58 = vmul.f32 %v4043_v51, %v980_v13  ;;  %v1152_v48 = vmul.f32 %v4043_v51, %v888_v19  ;;  %v1085_v22 = vmul.f32 %v3998_v12, %v980_v13  ;;  %v4299_v39 = vmul.f32 %v3980_v57, %v980_v13 }
 0x123   : > { %v4302_v9 = vmul.f32 %v3980_v57, %v888_v19  ;;  %v1086_v32 = vmul.f32 %v3998_v12, %v888_v19  ;;  %v4308_v31 = vmul.f32 %v3983_v62, %v980_v13  ;;  %v4311_v55 = vmul.f32 %v3983_v62, %v888_v19 }
 0x124   : > { %6715 = vst [vmem:[#allocation42_spill] sm:$0xff] %v4299_v39  ;;  %v1182_v59 = vadd.f32 %v1151_v58, %v4124_v44  ;;  %v1183_v8 = vadd.f32 %v1152_v48, %v4137_v20  ;;  %v1458_v54 = vmul.f32 %v3986_v63, %v980_v13  ;;  %v6717_v16 = vrot.slane %v4012_v26, 1 }
 0x125   : > { %6716 = vst [vmem:[#allocation43_spill] sm:$0xff] %v4302_v9  ;;  %v1699_v44 = vmul.f32 %v3995_v11, %v980_v13  ;;  %v1700_v20 = vmul.f32 %v3995_v11, %v888_v19  ;;  %v4321_v48 = vadd.f32 %v1085_v22, %v4096_v36  ;;  %v1459_v58 = vmul.f32 %v3986_v63, %v888_v19 }
 0x126   : > { %v1419_v49 = vadd.f32 %v6717_v16, %v1182_v59  ;;  %v6718_v14 = vmov %v6717_v16  ;;  %v1939_v33 = vmul.f32 %v3989_v4, %v980_v13  ;;  %v1940_v17 = vmul.f32 %v3989_v4, %v888_v19 }
 0x127   : > { %v1420_v15 = vadd.f32 %v6718_v14, %v1183_v8  ;;  %v1791_v59 = vrot.slane %v1699_v44, 1  ;;  %v1792_v26 = vrot.slane %v1700_v20, 1  ;;  %v2175_v2 = vmul.f32 %v3992_v5, %v980_v13 }
 0x128   : > { %v1663_v7 = vadd.f32 %v4148_v41, %v1419_v49  ;;  %v2035_v8 = vrot.slane %v1939_v33, 2  ;;  %v2036_v14 = vrot.slane %v1940_v17, 2  ;;  %v2176_v45 = vmul.f32 %v3992_v5, %v888_v19 }
 0x129   : > { %v1664_v16 = vadd.f32 %v4151_v0, %v1420_v15  ;;  %v1793_v36 = vsel %vm1310_vm3, %v1791_v59, %v1792_v26  ;;  %v1795_v22 = vsel %vm1310_vm3, %v1792_v26, %v1794_v43  ;;  %v2416_v28 = vmul.f32 %v4065_v10, %v980_v13 }
 0x12a   : > { %v2417_v9 = vmul.f32 %v4065_v10, %v888_v19  ;;  %v1899_v39 = vadd.f32 %v1793_v36, %v1663_v7  ;;  %v4335_v15 = vsel %vm2027_vm4, %v2035_v8, %v2036_v14  ;;  %v4338_v0 = vsel %vm2027_vm4, %v2036_v14, %v2038_v18 }
 0x12b   : > { %v1900_v41 = vadd.f32 %v1795_v22, %v1664_v16  ;;  %6719 = vst [vmem:[#allocation44_spill] sm:$0xff] %v4335_v15  ;;  %6720 = vst [vmem:[#allocation45_spill] sm:$0xff] %v4338_v0  ;;  %v1556_v17 = vrot.slane %v1458_v54, 1  ;;  %v1557_v33 = vrot.slane %v1459_v58, 1  ;;  %v2508_v49 = vrot.slane %v2416_v28, 2 }
 0x12c   : > { %v2509_v44 = vrot.slane %v2417_v9, 2  ;;  %v4341_v20 = vadd.f32 %v1086_v32, %v4104_v42  ;;  %v6721_v43 = vrot.slane %v4017_v34, 2  ;;  %v910_v16 = vrot.slane %v836_v29, 7 }
 0x12d   : > { %v2273_v18 = vrot.slane %v2175_v2, 2  ;;  %v2274_v8 = vrot.slane %v2176_v45, 2  ;;  %v6723_v42 = vrot.slane %v4179_v52, 7  ;;  %v4360_v34 = vsel %vm1310_vm3, %v1556_v17, %v1557_v33  ;;  %v4367_v45 = vld [vmem:[%s6593_s4] ss:$0 sm:$0xff] }
 0x12e   : > { %v2136_v13 = vadd.f32 %v6721_v43, %v1899_v39  ;;  %v6722_v19 = vmov %v6721_v43  ;;  %v4357_v39 = vsel %vm882_vm2, 0.0, %v910_v16  ;;  %v2510_v29 = vsel %vm2027_vm4, %v2508_v49, %v2509_v44 }
 0x12f   : > { %v2137_v7 = vadd.f32 %v6722_v19, %v1900_v41  ;;  %v4354_v32 = vsel %vm882_vm2, %v910_v16, %v6723_v42  ;;  %6725 = vst [vmem:[#allocation47_spill] sm:$0xff] %v4357_v39  ;;  %v2512_v2 = vsel %vm2027_vm4, %v2509_v44, %v2511_v56  ;;  %v4379_v56 = vsel %vm2027_vm4, %v2273_v18, %v2274_v8 }
 0x130   : > { %v2380_v54 = vadd.f32 %v4175_v6, %v2136_v13  ;;  %6724 = vst [vmem:[#allocation46_spill] sm:$0xff] %v4354_v32  ;;  %v6726_v6 = vrot.slane %v4250_v47, 1  ;;  %v1102_v14 = vmul.f32 %v3998_v12, %v4354_v32  ;;  %v6727_v36 = vrot.slane %v4255_v53, 2 }
 0x131   : > { %v2381_v28 = vadd.f32 %v4212_v27, %v2137_v7  ;;  %v1101_v27 = vmul.f32 %v3998_v12, %v4357_v39  ;;  %v4388_v41 = vmul.f32 %v3980_v57, %v4357_v39  ;;  %v4392_v47 = vmul.f32 %v4090_v30, %v3934_v60 }
 0x132   : > { %v4374_v52 = vsel %vm1310_vm3, %v1557_v33, %v6726_v6  ;;  %v2616_v9 = vadd.f32 %v2510_v29, %v2380_v54  ;;  %v4384_v22 = vsel %vm2027_vm4, %v2274_v8, %v6727_v36  ;;  %v4402_v53 = vmul.f32 %v3980_v57, %v4354_v32 }
 0x133   : > { %v2617_v58 = vadd.f32 %v2512_v2, %v2381_v28  ;;  %v1482_v49 = vmul.f32 %v3986_v63, %v4357_v39  ;;  %v4407_v44 = vadd.f32 %v1101_v27, %v4226_v50  ;;  %v1483_v60 = vmul.f32 %v3986_v63, %v4354_v32 }
 0x134   : > { %v4395_v17 = vadd.f32 %v4367_v45, %v2616_v9  ;;  %v1723_v30 = vmul.f32 %v3995_v11, %v4357_v39  ;;  %v1724_v43 = vmul.f32 %v3995_v11, %v4354_v32  ;;  %v4418_v7 = vadd.f32 %v1102_v14, %v4230_v37 }
 0x135   : > { %v4398_v33 = vadd.f32 %v4367_v45, %v2617_v58  ;;  %v4422_v50 = vmul.f32 %v3983_v62, %v4357_v39  ;;  %v1963_v8 = vmul.f32 %v3989_v4, %v4357_v39  ;;  %v1964_v54 = vmul.f32 %v3989_v4, %v4354_v32 }
 0x136   : > { %v3211_v13 = vmul.f32 -1.442695, %v4395_v17  ;;  %v1831_v16 = vrot.slane %v1723_v30, 1  ;;  %v1832_v18 = vrot.slane %v1724_v43, 1  ;;  %v4430_v28 = vmul.f32 %v3983_v62, %v4354_v32 }
 0x137   : > { %v3212_v19 = vmul.f32 -1.442695, %v4398_v33  ;;  %6728 = vst [vmem:[#allocation48_spill] sm:$0xff] %v4422_v50  ;;  %v1596_v42 = vrot.slane %v1482_v49, 1  ;;  %v2199_v37 = vmul.f32 %v3992_v5, %v4357_v39  ;;  %v1597_v29 = vrot.slane %v1483_v60, 1 }
 0x138   : > { %3448 = vpow2.f32 %v3211_v13  ;;  %6729 = vst [vmem:[#allocation49_spill] sm:$0xff] %v4430_v28  ;;  %v4435_v2 = vsel %vm1310_vm3, %v1831_v16, %v1832_v18  ;;  %v6731_v27 = vrot.slane %v4270_v40, 1  ;;  %v2075_v9 = vrot.slane %v1963_v8, 2 }
 0x139   : > { %3450 = vpow2.f32 %v3212_v19  ;;  %6730 = vst [vmem:[#allocation50_spill] sm:$0xff] %v4435_v2  ;;  %v2076_v58 = vrot.slane %v1964_v54, 2  ;;  %v2200_v14 = vmul.f32 %v3992_v5, %v4354_v32  ;;  %v2440_v36 = vmul.f32 %v4065_v10, %v4357_v39 }
 0x13a   : > { %v4440_v6 = vsel %vm1310_vm3, %v1832_v18, %v6731_v27  ;;  %v2441_v49 = vmul.f32 %v4065_v10, %v4354_v32  ;;  %v890_v60 = vrot.slane %v4392_v47, 7  ;;  %v4451_v30 = vmul.f32 %v4100_v38, %v3937_v61 }
 0x13b   : > { %6732 = vst [vmem:[#allocation51_spill] sm:$0xff] %v4440_v6  ;;  %v822_v40 = vmul.f32 %v4108_v46, %v3941_v1  ;;  %v2313_v13 = vrot.slane %v2199_v37, 2  ;;  %v2314_v19 = vrot.slane %v2200_v14, 2  ;;  %v2548_v16 = vrot.slane %v2440_v36, 2 }
 0x13c   : > { %v2549_v8 = vrot.slane %v2441_v49, 2  ;;  %v997_v54 = vsel %vm882_vm2, %v890_v60, 0.0  ;;  %v6615_v27 = vrot.slane %v4451_v30, 7  ;;  %v4460_v47 = vsel %vm1310_vm3, %v1596_v42, %v1597_v29 }
 0x13d   : > { %v6733_v61 = vrot.slane %v4267_v3, 1  ;;  %v4468_v1 = vmul.f32 %v3983_v62, %v997_v54  ;;  %v4471_v46 = vmul.f32 %v3986_v63, %v997_v54  ;;  %v4474_v37 = vsel %vm2027_vm4, %v2075_v9, %v2076_v58 }
 0x13e   : > { %6735 = vst [vmem:[#allocation53_spill] sm:$0xff] %v4474_v37  ;;  %v4477_v14 = vsel %vm2027_vm4, %v2548_v16, %v2549_v8  ;;  %v6737_v42 = vrot.slane %v4279_v23, 2  ;;  %v889_v3 = vrot.slane %v822_v40, 7  ;;  %v4493_v9 = vmul.f32 %v3995_v11, %v997_v54 }
 0x13f   : > { %v4465_v38 = vsel %vm1310_vm3, %v1597_v29, %v6733_v61  ;;  %6734 = vst [vmem:[#allocation52_spill] sm:$0xff] %v4468_v1  ;;  %6736 = vst [vmem:[#allocation54_spill] sm:$0xff] %v4477_v14  ;;  %v6739_v29 = vrot.slane %v4273_v24, 2  ;;  %v4490_v61 = vsel %vm2027_vm4, %v2313_v13, %v2314_v19  ;;  %v4496_v16 = vmul.f32 %v3989_v4, %v997_v54 }
 0x140   : > { %v4482_v36 = vsel %vm2027_vm4, %v2549_v8, %v6737_v42  ;;  %v6741_v23 = vrot.slane %v4276_v35, 2  ;;  %v4504_v40 = vmul.f32 %v3992_v5, %v997_v54  ;;  %v4507_v24 = vmul.f32 %v4065_v10, %v997_v54 }
 0x141   : > { %6738 = vst [vmem:[#allocation55_spill] sm:$0xff] %v4482_v36  ;;  %v4487_v49 = vsel %vm2027_vm4, %v2076_v58, %v6739_v29  ;;  %v1005_v58 = vsel %vm882_vm2, %v6615_v27, 0.0  ;;  %v891_v43 = vsel %vm882_vm2, %v889_v3, %v890_v60  ;;  %v1799_v13 = vrot.slane %v4493_v9, 1 }
 0x142   : > { %6740 = vst [vmem:[#allocation56_spill] sm:$0xff] %v4487_v49  ;;  %v4501_v8 = vsel %vm2027_vm4, %v2314_v19, %v6741_v23  ;;  %v4515_v29 = vmul.f32 %v3983_v62, %v1005_v58  ;;  %v4518_v35 = vmul.f32 %v3986_v63, %v1005_v58  ;;  %v4521_v19 = vmul.f32 %v3995_v11, %v1005_v58 }
 0x143   : > { %v4524_v54 = vmul.f32 %v3989_v4, %v1005_v58  ;;  %v4527_v23 = vmul.f32 %v3992_v5, %v1005_v58  ;;  %v2043_v18 = vrot.slane %v4496_v16, 2  ;;  %v4533_v59 = vmul.f32 %v4065_v10, %v1005_v58 }
 0x144   : > { %6742 = vst [vmem:[#allocation57_spill] sm:$0xff] %v4515_v29  ;;  %v981_v26 = vsel %vm882_vm2, 0.0, %v889_v3  ;;  %v4543_v58 = vmul.f32 %v3980_v57, %v891_v43  ;;  %v1154_v36 = vmul.f32 %v4043_v51, %v891_v43  ;;  %v1088_v16 = vmul.f32 %v3998_v12, %v891_v43 }
 0x145   : > { %v3449_v27 = vpop.eup %3448  ;;  %v1153_v42 = vmul.f32 %v4043_v51, %v981_v26  ;;  %v4550_v6 = vmul.f32 %v3980_v57, %v981_v26  ;;  %v4557_v3 = vmul.f32 %v3983_v62, %v981_v26  ;;  %v1461_v39 = vmul.f32 %v3986_v63, %v981_v26 }
 0x146   : > { %v3451_v2 = vpop.eup %3450  ;;  %v2783_v60 = vadd.f32 1.0, %v3449_v27  ;;  %v1087_v27 = vmul.f32 %v3998_v12, %v981_v26  ;;  %v1702_v14 = vmul.f32 %v3995_v11, %v981_v26  ;;  %v1943_v37 = vmul.f32 %v3989_v4, %v891_v43 }
 0x147   : > { %v2784_v32 = vadd.f32 1.0, %v3451_v2  ;;  %v1184_v9 = vadd.f32 %v1153_v42, %v4321_v48  ;;  %v1185_v2 = vadd.f32 %v1154_v36, %v4341_v20  ;;  %v1942_v48 = vmul.f32 %v3989_v4, %v981_v26  ;;  %v6743_v42 = vld [vmem:[#allocation42_spill] sm:$0xff] }
 0x148   : > { %3452 = vrcp.f32 %v2783_v60  ;;  %v1462_v60 = vmul.f32 %v3986_v63, %v891_v43  ;;  %v4567_v20 = vadd.f32 %v1087_v27, %v6743_v42  ;;  %v4570_v36 = vmul.f32 %v3983_v62, %v891_v43 }
 0x149   : > { %3454 = vrcp.f32 %v2784_v32  ;;  %v1421_v29 = vadd.f32 %v4140_v21, %v1184_v9  ;;  %v1422_v1 = vadd.f32 %v4145_v25, %v1185_v2  ;;  %v1703_v32 = vmul.f32 %v3995_v11, %v891_v43 }
 0x14a   : > { %6744 = vst [vmem:[#allocation42_spill] sm:$0xff] %v4567_v20  ;;  %v1796_v49 = vrot.slane %v1702_v14, 1  ;;  %v2040_v9 = vrot.slane %v1942_v48, 2  ;;  %v1561_v2 = vrot.slane %v1461_v39, 1  ;;  %v1562_v28 = vrot.slane %v1462_v60, 1 }
 0x14b   : > { %v1665_v50 = vadd.f32 %v4360_v34, %v1421_v29  ;;  %v1666_v21 = vadd.f32 %v4374_v52, %v1422_v1  ;;  %v1797_v25 = vrot.slane %v1703_v32, 1  ;;  %v2041_v0 = vrot.slane %v1943_v37, 2 }
 0x14c   : > { %v2178_v15 = vmul.f32 %v3992_v5, %v981_v26  ;;  %v2179_v42 = vmul.f32 %v3992_v5, %v891_v43  ;;  %v2419_v34 = vmul.f32 %v4065_v10, %v981_v26  ;;  %v2420_v32 = vmul.f32 %v4065_v10, %v891_v43  ;;  %v6749_v26 = vld [vmem:[#allocation27_spill] sm:$0xff] }
 0x14d   : > { %v1798_v27 = vsel %vm1310_vm3, %v1796_v49, %v1797_v25  ;;  %v1800_v14 = vsel %vm1310_vm3, %v1797_v25, %v1799_v13  ;;  %v4584_v1 = vsel %vm2027_vm4, %v2040_v9, %v2041_v0  ;;  %v4587_v39 = vsel %vm2027_vm4, %v2041_v0, %v2043_v18  ;;  %v6747_v49 = vld [vmem:[#allocation43_spill] sm:$0xff]  ;;  %v6748_v25 = vld [vmem:[#allocation25_spill] sm:$0xff] }
 0x14e   : > { %v1901_v29 = vadd.f32 %v1798_v27, %v1665_v50  ;;  %v1902_v52 = vadd.f32 %v1800_v14, %v1666_v21  ;;  %6745 = vst [vmem:[#allocation58_spill] sm:$0xff] %v4584_v1  ;;  %6746 = vst [vmem:[#allocation59_spill] sm:$0xff] %v4587_v39  ;;  %v2278_v37 = vrot.slane %v2178_v15, 2  ;;  %v2279_v60 = vrot.slane %v2179_v42, 2  ;;  %v6750_v21 = vld [vmem:[#allocation8_spill] sm:$0xff]  ;;  %v6751_v27 = vld [vmem:[#allocation18_spill] sm:$0xff] }
 0x14f   : > { %v2513_v48 = vrot.slane %v2419_v34, 2  ;;  %v4592_v13 = vadd.f32 %v1088_v16, %v6747_v49  ;;  %v838_v9 = vmul.f32 %v6751_v27, %v6750_v21  ;;  %v4601_v15 = vsel %vm1310_vm3, %v1561_v2, %v1562_v28  ;;  %v6756_v21 = vld [vmem:[#allocation28_spill] sm:$0xff] }
 0x150   : > { %v2138_v20 = vadd.f32 %v6748_v25, %v1901_v29  ;;  %v2139_v50 = vadd.f32 %v6749_v26, %v1902_v52  ;;  %v2514_v43 = vrot.slane %v2420_v32, 2  ;;  %v6752_v18 = vrot.slane %v4471_v46, 1  ;;  %v6754_v26 = vld [vmem:[#allocation29_spill] sm:$0xff] }
 0x151   : > { %v913_v29 = vrot.slane %v838_v9, 7  ;;  %v4611_v49 = vsel %vm2027_vm4, %v2278_v37, %v2279_v60  ;;  %v6753_v2 = vrot.slane %v4507_v24, 2  ;;  %v6755_v46 = vrot.slane %v6754_v26, 1 }
 0x152   : > { %v4606_v16 = vsel %vm1310_vm3, %v1562_v28, %v6752_v18  ;;  %v2382_v42 = vadd.f32 %v4379_v56, %v2138_v20  ;;  %v2383_v34 = vadd.f32 %v4384_v22, %v2139_v50  ;;  %v2515_v25 = vsel %vm2027_vm4, %v2513_v48, %v2514_v43 }
 0x153   : > { %v2517_v32 = vsel %vm2027_vm4, %v2514_v43, %v6753_v2  ;;  %v6757_v28 = vrot.slane %v6756_v21, 1  ;;  %v6758_v37 = vrot.slane %v4451_v30, 7  ;;  %v6759_v24 = vrot.slane %v4504_v40, 2  ;;  %v6760_v2 = vld [vmem:[#allocation17_spill] sm:$0xff] }
 0x154   : > { %v2618_v20 = vadd.f32 %v2515_v25, %v2382_v42  ;;  %v2619_v50 = vadd.f32 %v2517_v32, %v2383_v34  ;;  %v989_v18 = vsel %vm882_vm2, 0.0, %v913_v29  ;;  %v6762_v21 = vrot.slane %v6754_v26, 1  ;;  %v6764_v42 = vld [vmem:[#allocation19_spill] sm:$0xff]  ;;  %v6765_v32 = vld [vmem:[#allocation10_spill] sm:$0xff]  ;;  %v6766_v26 = vld [vmem:[#allocation20_spill] sm:$0xff] }
 0x155   : > { %v3453_v52 = vpop.eup %3452  ;;  %v1355_v27 = vsel %vm1310_vm3, %v6757_v28, %v6755_v46  ;;  %v915_v9 = vsel %vm882_vm2, %v913_v29, %v6758_v37  ;;  %v4630_v43 = vsel %vm2027_vm4, %v2279_v60, %v6759_v24  ;;  %v6761_v46 = vrot.slane %v6760_v2, 1  ;;  %v6763_v60 = vld [vmem:[#allocation9_spill] sm:$0xff]  ;;  %v6767_v2 = vld [vmem:[#allocation11_spill] sm:$0xff] }
 0x156   : > { %v3455_v56 = vpop.eup %3454  ;;  %v2879_v22 = vmul.f32 %v3453_v52, %v4395_v17  ;;  %v4644_v30 = vadd.f32 %v4367_v45, %v2618_v20  ;;  %v4647_v40 = vadd.f32 %v4367_v45, %v2619_v50  ;;  %v4651_v34 = vmul.f32 %v6764_v42, %v6763_v60 }
 0x157   : > { %v2880_v48 = vmul.f32 %v3455_v56, %v4398_v33  ;;  %v1357_v17 = vsel %vm1310_vm3, %v6762_v21, %v6761_v46  ;;  %v1104_v52 = vmul.f32 %v3998_v12, %v915_v9  ;;  %v1169_v25 = vmul.f32 %v4043_v51, %v989_v18  ;;  %v6768_v46 = vld [vmem:[#allocation23_spill] sm:$0xff] }
 0x158   : > { %2912 = vst.msk [vmem:[%s4638_s11] sm:$0xff] %vm2911_vm5, %v2879_v22  ;;  %v2944_v33 = vsel %vm2911_vm5, %v2879_v22, 0.0  ;;  %v4660_v28 = vmul.f32 %v6766_v26, %v6765_v32  ;;  %v3213_v22 = vmul.f32 -1.442695, %v4644_v30  ;;  %v3214_v20 = vmul.f32 -1.442695, %v4647_v40 }
 0x159   : > { %2913 = vst.msk [vmem:[%s4638_s11 + $0x8] sm:$0xff] %vm2911_vm5, %v2880_v48  ;;  %v2945_v29 = vsel %vm2911_vm5, %v2880_v48, 0.0  ;;  %v1170_v50 = vmul.f32 %v4043_v51, %v915_v9  ;;  %v4668_v37 = vmul.f32 %v3980_v57, %v989_v18  ;;  %v4671_v48 = vmul.f32 %v3980_v57, %v915_v9 }
 0x15a   : > { %v4662_v56 = vadd.f32 %v2945_v29, %v2944_v33  ;;  %v1200_v24 = vadd.f32 %v1169_v25, %v4407_v44  ;;  %v4676_v21 = vmul.f32 %v6768_v46, %v6767_v2  ;;  %3456 = vpow2.f32 %v3213_v22 }
 0x15b   : > { %v1201_v33 = vadd.f32 %v1170_v50, %v4418_v7  ;;  %v1485_v60 = vmul.f32 %v3986_v63, %v989_v18  ;;  %v1486_v42 = vmul.f32 %v3986_v63, %v915_v9  ;;  %3458 = vpow2.f32 %v3214_v20 }
 0x15c   : > { %v1103_v29 = vmul.f32 %v3998_v12, %v989_v18  ;;  %v4683_v32 = vadd.f32 %v1104_v52, %v4402_v53  ;;  %v1437_v26 = vadd.f32 %v1355_v27, %v1200_v24  ;;  %v4686_v44 = vmul.f32 %v3983_v62, %v989_v18 }
 0x15d   : > { %v4689_v25 = vmul.f32 %v3983_v62, %v915_v9  ;;  %v1438_v22 = vadd.f32 %v1357_v17, %v1201_v33  ;;  %v1726_v7 = vmul.f32 %v3995_v11, %v989_v18  ;;  %v1601_v50 = vrot.slane %v1485_v60, 1 }
 0x15e   : > { %6769 = vst [vmem:[#allocation43_spill] sm:$0xff] %v4686_v44  ;;  %v1727_v2 = vmul.f32 %v3995_v11, %v915_v9  ;;  %v1966_v20 = vmul.f32 %v3989_v4, %v989_v18  ;;  %v1967_v46 = vmul.f32 %v3989_v4, %v915_v9  ;;  %v1602_v14 = vrot.slane %v1486_v42, 1 }
 0x15f   : > { %6770 = vst [vmem:[#allocation25_spill] sm:$0xff] %v4689_v25  ;;  %v1681_v53 = vadd.f32 %v4460_v47, %v1437_v26  ;;  %v1682_v27 = vadd.f32 %v4465_v38, %v1438_v22  ;;  %v1836_v52 = vrot.slane %v1726_v7, 1  ;;  %v2202_v17 = vmul.f32 %v3992_v5, %v989_v18 }
 0x160   : > { %v1837_v24 = vrot.slane %v1727_v2, 1  ;;  %v2080_v0 = vrot.slane %v1966_v20, 2  ;;  %v2081_v39 = vrot.slane %v1967_v46, 2  ;;  %v2203_v33 = vmul.f32 %v3992_v5, %v915_v9 }
 0x161   : > { %v2443_v60 = vmul.f32 %v4065_v10, %v989_v18  ;;  %v2444_v1 = vmul.f32 %v4065_v10, %v915_v9  ;;  %v6771_v47 = vrot.slane %v4521_v19, 1  ;;  %v6773_v22 = vrot.slane %v4524_v54, 2 }
 0x162   : > { %v1838_v42 = vsel %vm1310_vm3, %v1836_v52, %v1837_v24  ;;  %v4707_v26 = vsel %vm2027_vm4, %v2080_v0, %v2081_v39  ;;  %v2318_v20 = vrot.slane %v2202_v17, 2  ;;  %v2319_v9 = vrot.slane %v2203_v33, 2 }
 0x163   : > { %v1840_v38 = vsel %vm1310_vm3, %v1837_v24, %v6771_v47  ;;  %6772 = vst [vmem:[#allocation27_spill] sm:$0xff] %v4707_v26  ;;  %v4712_v7 = vsel %vm2027_vm4, %v2081_v39, %v6773_v22  ;;  %v1917_v2 = vadd.f32 %v1838_v42, %v1681_v53  ;;  %v4715_v46 = vadd.f32 %v1103_v29, %v4388_v41  ;;  %v6776_v47 = vld [vmem:[#allocation36_spill] sm:$0xff]  ;;  %v6777_v22 = vld [vmem:[#allocation37_spill] sm:$0xff] }
 0x164   : > { %6774 = vst [vmem:[#allocation8_spill] sm:$0xff] %v4712_v7  ;;  %v1918_v18 = vadd.f32 %v1840_v38, %v1682_v27  ;;  %v2553_v52 = vrot.slane %v2443_v60, 2  ;;  %v2554_v57 = vrot.slane %v2444_v1, 2  ;;  %v6775_v19 = vrot.slane %v4651_v34, 7 }
 0x165   : > { %v2154_v39 = vadd.f32 %v6776_v47, %v1917_v2  ;;  %v4725_v27 = vsel %vm1310_vm3, %v1601_v50, %v1602_v14  ;;  %v6778_v41 = vrot.slane %v4518_v35, 1  ;;  %v6625_v17 = vrot.slane %v4660_v28, 7 }
 0x166   : > { %v998_v24 = vsel %vm882_vm2, %v6775_v19, 0.0  ;;  %v2155_v53 = vadd.f32 %v6777_v22, %v1918_v18  ;;  %v4737_v33 = vsel %vm2027_vm4, %v2318_v20, %v2319_v9  ;;  %v6780_v60 = vrot.slane %v4527_v23, 2 }
 0x167   : > { %v4730_v29 = vsel %vm1310_vm3, %v1602_v14, %v6778_v41  ;;  %v4733_v1 = vmul.f32 %v3983_v62, %v998_v24  ;;  %v2398_v50 = vadd.f32 %v4490_v61, %v2154_v39  ;;  %v3457_v38 = vpop.eup %3456  ;;  %v2555_v14 = vsel %vm2027_vm4, %v2553_v52, %v2554_v57 }
 0x168   : > { %v4742_v42 = vsel %vm2027_vm4, %v2319_v9, %v6780_v60  ;;  %v2399_v35 = vadd.f32 %v4501_v8, %v2155_v53  ;;  %v6781_v2 = vrot.slane %v4533_v59, 2  ;;  %v4751_v19 = vmul.f32 %v3986_v63, %v998_v24  ;;  %v3459_v23 = vpop.eup %3458 }
 0x169   : > { %6779 = vst [vmem:[#allocation18_spill] sm:$0xff] %v4733_v1  ;;  %v4754_v20 = vmul.f32 %v3995_v11, %v998_v24  ;;  %v2785_v9 = vadd.f32 1.0, %v3457_v38  ;;  %v2634_v47 = vadd.f32 %v2555_v14, %v2398_v50  ;;  %v4757_v61 = vmul.f32 %v3989_v4, %v998_v24 }
 0x16a   : > { %v2557_v18 = vsel %vm2027_vm4, %v2554_v57, %v6781_v2  ;;  %v2786_v8 = vadd.f32 1.0, %v3459_v23  ;;  %v4761_v59 = vmul.f32 %v3992_v5, %v998_v24  ;;  %v4764_v57 = vmul.f32 %v4065_v10, %v998_v24 }
 0x16b   : > { %v2635_v22 = vadd.f32 %v2557_v18, %v2399_v35  ;;  %3460 = vrcp.f32 %v2785_v9  ;;  %v4767_v39 = vadd.f32 %v4367_v45, %v2634_v47  ;;  %v1006_v41 = vsel %vm882_vm2, %v6625_v17, 0.0  ;;  %v6785_v17 = vld [vmem:[#allocation40_spill] sm:$0xff] }
 0x16c   : > { %3462 = vrcp.f32 %v2786_v8  ;;  %v1569_v60 = vrot.slane %v4751_v19, 1  ;;  %v1804_v50 = vrot.slane %v4754_v20, 1  ;;  %v4778_v35 = vmul.f32 %v3983_v62, %v1006_v41 }
 0x16d   : > { %v4770_v53 = vadd.f32 %v4367_v45, %v2635_v22  ;;  %v3229_v24 = vmul.f32 -1.442695, %v4767_v39  ;;  %v4783_v14 = vmul.f32 %v3986_v63, %v1006_v41  ;;  %v4786_v2 = vmul.f32 %v3995_v11, %v1006_v41 }
 0x16e   : > { %6782 = vst [vmem:[#allocation29_spill] sm:$0xff] %v4778_v35  ;;  %v4791_v19 = vmul.f32 %v3989_v4, %v1006_v41  ;;  %v4794_v20 = vmul.f32 %v3992_v5, %v1006_v41  ;;  %v4798_v47 = vmul.f32 %v4065_v10, %v1006_v41  ;;  %v892_v22 = vrot.slane %v4676_v21, 7  ;;  %v6793_v41 = vld [vmem:[#allocation42_spill] sm:$0xff] }
 0x16f   : > { %v3230_v38 = vmul.f32 -1.442695, %v4770_v53  ;;  %3464 = vpow2.f32 %v3229_v24  ;;  %v6783_v52 = vrot.slane %v4311_v55, 1  ;;  %v6784_v0 = vrot.slane %v4308_v31, 1 }
 0x170   : > { %v6786_v23 = vrot.slane %v6785_v17, 1  ;;  %v6788_v21 = vrot.slane %v4651_v34, 7  ;;  %v4820_v8 = vsel %vm882_vm2, 0.0, %v892_v22 }
 0x171   : > { %3466 = vpow2.f32 %v3230_v38  ;;  %v1320_v54 = vsel %vm1310_vm3, %v6784_v0, %v6783_v52  ;;  %v6787_v24 = vmov %v6783_v52  ;;  %v1089_v55 = vmul.f32 %v3998_v12, %v4820_v8 }
 0x172   : > { %v1322_v9 = vsel %vm1310_vm3, %v6787_v24, %v6786_v23  ;;  %v4817_v38 = vsel %vm882_vm2, %v892_v22, %v6788_v21  ;;  %v1155_v34 = vmul.f32 %v4043_v51, %v4820_v8  ;;  %v6789_v22 = vld [vmem:[#allocation12_spill] sm:$0xff]  ;;  %v1464_v18 = vmul.f32 %v3986_v63, %v4820_v8 }
 0x173   : > { %v1090_v17 = vmul.f32 %v3998_v12, %v4817_v38  ;;  %v1156_v23 = vmul.f32 %v4043_v51, %v4817_v38  ;;  %v6790_v24 = vld [vmem:[#allocation24_spill] sm:$0xff]  ;;  %v4838_v0 = vadd.f32 %v1089_v55, %v4550_v6  ;;  %v1465_v52 = vmul.f32 %v3986_v63, %v4817_v38 }
 0x174   : > { %v4835_v21 = vmul.f32 %v6790_v24, %v6789_v22  ;;  %v1186_v7 = vadd.f32 %v1155_v34, %v6793_v41  ;;  %v4851_v22 = vmul.f32 %v3983_v62, %v4820_v8  ;;  %v4855_v6 = vmul.f32 %v3983_v62, %v4817_v38 }
 0x175   : > { %6791 = vst [vmem:[#allocation28_spill] sm:$0xff] %v4838_v0  ;;  %v4841_v31 = vadd.f32 %v1090_v17, %v4543_v58  ;;  %v1187_v26 = vadd.f32 %v1156_v23, %v4592_v13  ;;  %v1566_v58 = vrot.slane %v1464_v18, 1  ;;  %v1567_v55 = vrot.slane %v1465_v52, 1 }
 0x176   : > { %v1705_v17 = vmul.f32 %v3995_v11, %v4820_v8  ;;  %v1706_v24 = vmul.f32 %v3995_v11, %v4817_v38  ;;  %v1945_v13 = vmul.f32 %v3989_v4, %v4820_v8  ;;  %v1946_v34 = vmul.f32 %v3989_v4, %v4817_v38 }
 0x177   : > { %6792 = vst [vmem:[#allocation17_spill] sm:$0xff] %v4841_v31  ;;  %v1423_v31 = vadd.f32 %v1320_v54, %v1186_v7  ;;  %v1424_v41 = vadd.f32 %v1322_v9, %v1187_v26  ;;  %v4866_v0 = vsel %vm1310_vm3, %v1566_v58, %v1567_v55  ;;  %v4869_v18 = vsel %vm1310_vm3, %v1567_v55, %v1569_v60 }
 0x178   : > { %v3461_v23 = vpop.eup %3460  ;;  %6794 = vst [vmem:[#allocation9_spill] sm:$0xff] %v4866_v0  ;;  %v1801_v52 = vrot.slane %v1705_v17, 1  ;;  %v1802_v35 = vrot.slane %v1706_v24, 1  ;;  %v2045_v9 = vrot.slane %v1945_v13, 2  ;;  %v2046_v0 = vrot.slane %v1946_v34, 2  ;;  %v6798_v24 = vld [vmem:[#allocation44_spill] sm:$0xff] }
 0x179   : > { %v3463_v1 = vpop.eup %3462  ;;  %v2881_v26 = vmul.f32 %v3461_v23, %v4644_v30  ;;  %v1667_v7 = vadd.f32 %v4601_v15, %v1423_v31  ;;  %v1668_v54 = vadd.f32 %v4606_v16, %v1424_v41  ;;  %v2181_v30 = vmul.f32 %v3992_v5, %v4820_v8  ;;  %v6799_v13 = vld [vmem:[#allocation45_spill] sm:$0xff] }
 0x17a   : > { %v2882_v44 = vmul.f32 %v3463_v1, %v4647_v40  ;;  %v1803_v25 = vsel %vm1310_vm3, %v1801_v52, %v1802_v35  ;;  %v1805_v58 = vsel %vm1310_vm3, %v1802_v35, %v1804_v50  ;;  %v4887_v1 = vsel %vm2027_vm4, %v2045_v9, %v2046_v0 }
 0x17b   : > { %2914 = vst.msk [vmem:[%s4638_s11 + $0x10] sm:$0xff] %vm2911_vm5, %v2881_v26  ;;  %v2947_v60 = vsel %vm2911_vm5, %v2881_v26, 0.0  ;;  %v1903_v55 = vadd.f32 %v1803_v25, %v1667_v7  ;;  %v1904_v17 = vadd.f32 %v1805_v58, %v1668_v54  ;;  %6795 = vst [vmem:[#allocation19_spill] sm:$0xff] %v4887_v1  ;;  %v6796_v50 = vrot.slane %v4757_v61, 2 }
 0x17c   : > { %v3465_v15 = vpop.eup %3464  ;;  %2915 = vst.msk [vmem:[%s4638_s11 + $0x18] sm:$0xff] %vm2911_vm5, %v2882_v44  ;;  %v2948_v16 = vadd.f32 %v2947_v60, %v4662_v56  ;;  %v2949_v40 = vsel %vm2911_vm5, %v2882_v44, 0.0  ;;  %v2182_v23 = vmul.f32 %v3992_v5, %v4817_v38  ;;  %v2283_v52 = vrot.slane %v2181_v30, 2  ;;  %v6801_v30 = vld [vmem:[#allocation49_spill] sm:$0xff] }
 0x17d   : > { %v4892_v35 = vsel %vm2027_vm4, %v2046_v0, %v6796_v50  ;;  %v2801_v31 = vadd.f32 1.0, %v3465_v15  ;;  %v2140_v41 = vadd.f32 %v6798_v24, %v1903_v55  ;;  %v2141_v34 = vadd.f32 %v6799_v13, %v1904_v17 }
 0x17e   : > { %6797 = vst [vmem:[#allocation10_spill] sm:$0xff] %v4892_v35  ;;  %v3467_v25 = vpop.eup %3466  ;;  %v2422_v44 = vmul.f32 %v4065_v10, %v4820_v8  ;;  %v2423_v61 = vmul.f32 %v4065_v10, %v4817_v38  ;;  %v2284_v0 = vrot.slane %v2182_v23, 2  ;;  %v4904_v58 = vadd.f32 %v2949_v40, %v2948_v16 }
 0x17f   : > { %v2802_v56 = vadd.f32 1.0, %v3467_v25  ;;  %3468 = vrcp.f32 %v2801_v31  ;;  %v2384_v26 = vadd.f32 %v4611_v49, %v2140_v41  ;;  %v2385_v7 = vadd.f32 %v4630_v43, %v2141_v34  ;;  %v6803_v49 = vld [vmem:[#allocation48_spill] sm:$0xff] }
 0x180   : > { %v2518_v54 = vrot.slane %v2422_v44, 2  ;;  %v2519_v9 = vrot.slane %v2423_v61, 2  ;;  %v4907_v60 = vsel %vm2027_vm4, %v2283_v52, %v2284_v0  ;;  %v6800_v55 = vrot.slane %v4761_v59, 2  ;;  %v6806_v59 = vld [vmem:[#allocation16_spill] sm:$0xff]  ;;  %v6808_v52 = vld [vmem:[#allocation41_spill] sm:$0xff] }
 0x181   : > { %3470 = vrcp.f32 %v2802_v56  ;;  %v916_v10 = vrot.slane %v4835_v21, 7  ;;  %v6802_v15 = vrot.slane %v6801_v30, 1  ;;  %v6804_v50 = vrot.slane %v6803_v49, 1  ;;  %v6811_v30 = vld [vmem:[#allocation26_spill] sm:$0xff] }
 0x182   : > { %v4912_v17 = vsel %vm2027_vm4, %v2284_v0, %v6800_v55  ;;  %v2520_v16 = vsel %vm2027_vm4, %v2518_v54, %v2519_v9  ;;  %v6805_v40 = vrot.slane %v4764_v57, 2  ;;  %3472 = vpow2.f32 %v6806_v59 }
 0x183   : > { %v1360_v43 = vsel %vm1310_vm3, %v6804_v50, %v6802_v15  ;;  %v2620_v24 = vadd.f32 %v2520_v16, %v2384_v26  ;;  %v6807_v21 = vrot.slane %v4660_v28, 7  ;;  %v4932_v34 = vsel %vm882_vm2, 0.0, %v916_v10 }
 0x184   : > { %v2522_v31 = vsel %vm2027_vm4, %v2519_v9, %v6805_v40  ;;  %v1105_v56 = vmul.f32 %v3998_v12, %v4932_v34  ;;  %v6809_v44 = vrot.slane %v6808_v52, 1  ;;  %v6810_v61 = vmov %v6802_v15 }
 0x185   : > { %v2621_v41 = vadd.f32 %v2522_v31, %v2385_v7  ;;  %v4929_v13 = vsel %vm882_vm2, %v916_v10, %v6807_v21  ;;  %v4945_v0 = vadd.f32 %v4367_v45, %v2620_v24  ;;  %v1171_v7 = vmul.f32 %v4043_v51, %v4932_v34 }
 0x186   : > { %v1106_v57 = vmul.f32 %v3998_v12, %v4929_v13  ;;  %v1362_v28 = vsel %vm1310_vm3, %v6810_v61, %v6809_v44  ;;  %v1172_v54 = vmul.f32 %v4043_v51, %v4929_v13  ;;  %v4955_v9 = vadd.f32 %v1105_v56, %v4668_v37 }
 0x187   : > { %v4948_v26 = vadd.f32 %v4367_v45, %v2621_v41  ;;  %v4962_v10 = vmul.f32 %v3983_v62, %v4932_v34  ;;  %v731_v15 = vadd.f32 1.0, %v6811_v30  ;;  %v3215_v49 = vmul.f32 -1.442695, %v4945_v0 }
 0x188   : > { %v4958_v55 = vadd.f32 %v1106_v57, %v4671_v48  ;;  %v1202_v16 = vadd.f32 %v1171_v7, %v4715_v46  ;;  %v1203_v40 = vadd.f32 %v1172_v54, %v4683_v32  ;;  %v4971_v37 = vmul.f32 %v3983_v62, %v4929_v13  ;;  %v507_v7 = vpop.f32.mrf.mxu0 }
 0x189   : > { %v3216_v50 = vmul.f32 -1.442695, %v4948_v26  ;;  %v1488_v31 = vmul.f32 %v3986_v63, %v4932_v34  ;;  %v1489_v59 = vmul.f32 %v3986_v63, %v4929_v13  ;;  %3474 = vpow2.f32 %v3215_v49 }
 0x18a   : > { %v1439_v24 = vadd.f32 %v1360_v43, %v1202_v16  ;;  %v1440_v41 = vadd.f32 %v1362_v28, %v1203_v40  ;;  %v1729_v46 = vmul.f32 %v3995_v11, %v4932_v34  ;;  %v1730_v56 = vmul.f32 %v3995_v11, %v4929_v13 }
 0x18b   : > { %3476 = vpow2.f32 %v3216_v50  ;;  %v1606_v32 = vrot.slane %v1488_v31, 1  ;;  %v1607_v21 = vrot.slane %v1489_v59, 1  ;;  %v1969_v61 = vmul.f32 %v3989_v4, %v4932_v34 }
 0x18c   : > { %v1683_v57 = vadd.f32 %v4725_v27, %v1439_v24  ;;  %v1684_v52 = vadd.f32 %v4730_v29, %v1440_v41  ;;  %v1841_v44 = vrot.slane %v1729_v46, 1  ;;  %v3469_v43 = vpop.eup %3468  ;;  %v6812_v54 = vrot.slane %v4783_v14, 1 }
 0x18d   : > { %v4987_v28 = vsel %vm1310_vm3, %v1606_v32, %v1607_v21  ;;  %v1842_v49 = vrot.slane %v1730_v56, 1  ;;  %v1970_v27 = vmul.f32 %v3989_v4, %v4929_v13  ;;  %v4997_v50 = vmul.f32 %v3469_v43, %v4767_v39  ;;  %v587_v39 = vpop.f32.mrf.mxu1 }
 0x18e   : > { %v4992_v30 = vsel %vm1310_vm3, %v1607_v21, %v6812_v54  ;;  %v3471_v29 = vpop.eup %3470  ;;  %v2085_v16 = vrot.slane %v1969_v61, 2  ;;  %v2205_v40 = vmul.f32 %v3992_v5, %v4932_v34  ;;  %v2206_v31 = vmul.f32 %v3992_v5, %v4929_v13  ;;  %v3303_v54 = vpop.f32.mrf.mxu0  ;;  %v6832_v21 = vld [vmem:[#allocation57_spill] sm:$0xff] }
 0x18f   : > { %6813 = vst [vmem:[#allocation20_spill] sm:$0xff] %v4997_v50  ;;  %v5004_v14 = vmul.f32 %v3471_v29, %v4770_v53  ;;  %v1843_v59 = vsel %vm1310_vm3, %v1841_v44, %v1842_v49  ;;  %v6815_v24 = vrot.slane %v4786_v2, 1  ;;  %v2086_v46 = vrot.slane %v1970_v27, 2  ;;  %v3473_v32 = vpop.eup %3472  ;;  %2930 = vst.msk [vmem:[%s4638_s11 + $0x90] sm:$0xff] %vm2911_vm5, %v4997_v50  ;;  %v5028_v27 = vld [vmem:[%s6592_s3 + $0x8] ss:$0 sm:$0xff] }
 0x190   : > { %v1919_v56 = vadd.f32 %v1843_v59, %v1683_v57  ;;  %v2323_v43 = vrot.slane %v2205_v40, 2  ;;  %v6817_v2 = vrot.slane %v4791_v19, 2  ;;  %v2446_v57 = vmul.f32 %v5028_v27, %v4932_v34  ;;  %v6820_v40 = vld [vmem:[#allocation56_spill] sm:$0xff] }
 0x191   : > { %6814 = vst [vmem:[#allocation11_spill] sm:$0xff] %v5004_v14  ;;  %v1845_v41 = vsel %vm1310_vm3, %v1842_v49, %v6815_v24  ;;  %2931 = vst.msk [vmem:[%s4638_s11 + $0x98] sm:$0xff] %vm2911_vm5, %v5004_v14  ;;  %v5018_v53 = vsel %vm2027_vm4, %v2085_v16, %v2086_v46  ;;  %v2324_v49 = vrot.slane %v2206_v31, 2  ;;  %v2447_v16 = vmul.f32 %v5028_v27, %v4929_v13 }
 0x192   : > { %v1920_v61 = vadd.f32 %v1845_v41, %v1684_v52  ;;  %6816 = vst [vmem:[#allocation23_spill] sm:$0xff] %v5018_v53  ;;  %v5023_v44 = vsel %vm2027_vm4, %v2086_v46, %v6817_v2  ;;  %v6819_v52 = vld [vmem:[#allocation53_spill] sm:$0xff]  ;;  %3478 = vrcp.f32 %v731_v15  ;;  %v6821_v31 = vrot.slane %v4794_v20, 2  ;;  %v3327_v2 = vpop.f32.mrf.mxu1  ;;  %v5049_v15 = vld [vmem:[%s6591_s2] ss:$0 sm:$0xff]  ;;  %v517_v20 = vpop.f32.mrf.mxu0 }
 0x193   : > { %6818 = vst [vmem:[#allocation36_spill] sm:$0xff] %v5023_v44  ;;  %v2156_v29 = vadd.f32 %v6819_v52, %v1919_v56  ;;  %v5037_v19 = vsel %vm2027_vm4, %v2323_v43, %v2324_v49  ;;  %v2558_v41 = vrot.slane %v2446_v57, 2  ;;  %v747_v46 = vadd.f32 1.0, %v3473_v32 }
 0x194   : > { %v2157_v59 = vadd.f32 %v6820_v40, %v1920_v61  ;;  %v5042_v24 = vsel %vm2027_vm4, %v2324_v49, %v6821_v31  ;;  %v2559_v61 = vrot.slane %v2447_v16, 2  ;;  %v5052_v43 = vadd.f32 %v5049_v15, %v507_v7  ;;  %v6828_v31 = vld [vmem:[#allocation25_spill] sm:$0xff] }
 0x195   : > { %v2400_v48 = vadd.f32 %v4737_v33, %v2156_v29  ;;  %3480 = vrcp.f32 %v747_v46  ;;  %v6822_v49 = vrot.slane %v4570_v36, 1  ;;  %v6823_v32 = vrot.slane %v4557_v3, 1  ;;  %v6824_v33 = vld [vmem:[#allocation52_spill] sm:$0xff] }
 0x196   : > { %v2401_v56 = vadd.f32 %v4742_v42, %v2157_v59  ;;  %v6825_v42 = vrot.slane %v6824_v33, 1  ;;  %v5069_v40 = vadd.f32 %v5049_v15, %v587_v39  ;;  %v2560_v7 = vsel %vm2027_vm4, %v2558_v41, %v2559_v61  ;;  %v3475_v33 = vpop.eup %3474 }
 0x197   : > { %v5059_v57 = vsel %vm1310_vm3, %v6823_v32, %v6822_v49  ;;  %v6826_v52 = vmov %v6822_v49  ;;  %v6827_v59 = vrot.slane %v4798_v47, 2  ;;  %v3185_v3 = vmul.f32 -1.442695, %v5052_v43  ;;  %v6830_v49 = vld [vmem:[#allocation43_spill] sm:$0xff] }
 0x198   : > { %v5066_v29 = vsel %vm1310_vm3, %v6826_v52, %v6825_v42  ;;  %v6829_v46 = vrot.slane %v6828_v31, 1  ;;  %v6831_v32 = vrot.slane %v6830_v49, 1  ;;  %v2636_v42 = vadd.f32 %v2560_v7, %v2400_v48  ;;  %v3477_v25 = vpop.eup %3476  ;;  %v3306_v48 = vpop.f32.mrf.mxu0 }
 0x199   : > { %v2562_v16 = vsel %vm2027_vm4, %v2559_v61, %v6827_v59  ;;  %v3201_v39 = vmul.f32 -1.442695, %v5069_v40  ;;  %v6833_v41 = vrot.slane %v6832_v21, 1  ;;  %v597_v59 = vpop.f32.mrf.mxu1  ;;  %v2787_v23 = vadd.f32 1.0, %v3475_v33 }
 0x19a   : > { %v5081_v36 = vsel %vm1310_vm3, %v6831_v32, %v6829_v46  ;;  %v2637_v52 = vadd.f32 %v2562_v16, %v2401_v56  ;;  %v6834_v47 = vmov %v6829_v46  ;;  %3482 = vpow2.f32 %v3185_v3 }
 0x19b   : > { %v5089_v61 = vsel %vm1310_vm3, %v6834_v47, %v6833_v41  ;;  %v5092_v49 = vadd.f32 %v5049_v15, %v3303_v54  ;;  %v5095_v46 = vadd.f32 %v5049_v15, %v3327_v2  ;;  %v2788_v56 = vadd.f32 1.0, %v3477_v25  ;;  %v527_v47 = vpop.f32.mrf.mxu0 }
 0x19c   : > { %v5098_v7 = vadd.f32 %v4367_v45, %v2636_v42  ;;  %v5101_v21 = vadd.f32 %v4367_v45, %v2637_v52  ;;  %3484 = vpow2.f32 %v3201_v39  ;;  %v5106_v54 = vadd.f32 %v5049_v15, %v517_v20  ;;  %v6838_v42 = vld [vmem:[#allocation18_spill] sm:$0xff] }
 0x19d   : > { %3486 = vrcp.f32 %v2787_v23  ;;  %v3188_v16 = vmul.f32 -1.442695, %v5092_v49  ;;  %v3204_v3 = vmul.f32 -1.442695, %v5095_v46  ;;  %v6835_v31 = vrot.slane %v4855_v6, 1  ;;  %v3330_v23 = vpop.f32.mrf.mxu1 }
 0x19e   : > { %3488 = vrcp.f32 %v2788_v56  ;;  %v3231_v2 = vmul.f32 -1.442695, %v5098_v7  ;;  %v3232_v25 = vmul.f32 -1.442695, %v5101_v21  ;;  %v6836_v32 = vrot.slane %v4851_v22, 1 }
 0x19f   : > { %3490 = vpow2.f32 %v3188_v16  ;;  %v3187_v33 = vmul.f32 -1.442695, %v5106_v54  ;;  %v6839_v52 = vrot.slane %v6838_v42, 1  ;;  %v6840_v20 = vmov %v6835_v31 }
 0x1a0   : > { %v5115_v45 = vsel %vm1310_vm3, %v6836_v32, %v6835_v31  ;;  %v5126_v41 = vadd.f32 %v5049_v15, %v597_v59  ;;  %3492 = vpow2.f32 %v3231_v2  ;;  %v6843_v22 = vrot.slane %v4971_v37, 1  ;;  %v6846_v31 = vld [vmem:[#allocation29_spill] sm:$0xff]  ;;  %v3479_v2 = vpop.eup %3478 }
 0x1a1   : > { %6837 = vst [vmem:[#allocation37_spill] sm:$0xff] %v5115_v45  ;;  %v5123_v39 = vsel %vm1310_vm3, %v6840_v20, %v6839_v52  ;;  %v6844_v56 = vrot.slane %v4962_v10, 1  ;;  %v6847_v32 = vrot.slane %v6846_v31, 1  ;;  %v5143_v52 = vadd.f32 %v5049_v15, %v3306_v48 }
 0x1a2   : > { %6841 = vst [vmem:[#allocation40_spill] sm:$0xff] %v5123_v39  ;;  %6842 = vst [vmem:[#allocation12_spill] sm:$0xff] %v5126_v41  ;;  %v6848_v42 = vmov %v6843_v22  ;;  %3494 = vpow2.f32 %v3232_v25  ;;  %v5146_v59 = vadd.f32 %v5049_v15, %v3330_v23  ;;  %v5149_v10 = vadd.f32 %v5049_v15, %v527_v47 }
 0x1a3   : > { %v5133_v16 = vsel %vm1310_vm3, %v6844_v56, %v6843_v22  ;;  %v5140_v6 = vsel %vm1310_vm3, %v6848_v42, %v6847_v32  ;;  %6850 = vst [vmem:[#allocation44_spill] sm:$0xff] %v5143_v52  ;;  %3496 = vpow2.f32 %v3204_v3  ;;  %v3203_v20 = vmul.f32 -1.442695, %v5126_v41  ;;  %v3481_v22 = vpop.eup %3480  ;;  %v6853_v42 = vld [vmem:[#allocation14_spill] sm:$0xff] }
 0x1a4   : > { %6845 = vst [vmem:[#allocation24_spill] sm:$0xff] %v5133_v16  ;;  %6849 = vst [vmem:[#allocation42_spill] sm:$0xff] %v5140_v6  ;;  %3498 = vpow2.f32 %v3187_v33  ;;  %v3190_v37 = vmul.f32 -1.442695, %v5143_v52  ;;  %v3206_v56 = vmul.f32 -1.442695, %v5146_v59  ;;  %v5158_v14 = vmul.f32 %v3479_v2, %v6853_v42  ;;  %v3309_v42 = vpop.f32.mrf.mxu0 }
 0x1a5   : > { %6851 = vst [vmem:[#allocation45_spill] sm:$0xff] %v5146_v59  ;;  %6852 = vst [vmem:[#allocation49_spill] sm:$0xff] %v5149_v10  ;;  %v3189_v48 = vmul.f32 -1.442695, %v5149_v10  ;;  %3500 = vpow2.f32 %v3203_v20  ;;  %v6856_v16 = vld [vmem:[#allocation15_spill] sm:$0xff]  ;;  %v6858_v59 = vld [vmem:[#allocation21_spill] sm:$0xff] }
 0x1a6   : > { %3502 = vpow2.f32 %v3190_v37  ;;  %v5173_v10 = vmul.f32 %v3481_v22, %v6856_v16  ;;  %v5187_v16 = vmul.f32 %v4043_v51, %v6858_v59  ;;  %v6862_v22 = vld [vmem:[#allocation47_spill] sm:$0xff] }
 0x1a7   : > { %v3483_v25 = vpop.eup %3482  ;;  %3504 = vpow2.f32 %v3206_v56 }
 0x1a8   : > { %3506 = vpow2.f32 %v3189_v48  ;;  %v730_v48 = vadd.f32 1.0, %v3483_v25  ;;  %6861 = vst [vmem:[#allocation53_spill] sm:$0xff] %v5187_v16  ;;  %v6872_v16 = vrot.slane %v5173_v10, 7 }
 0x1a9   : > { %v3485_v23 = vpop.eup %3484 }
 0x1aa   : > { %v3487_v3 = vpop.eup %3486 }
 0x1ab   : > { %v3489_v47 = vpop.eup %3488  ;;  %v2883_v33 = vmul.f32 %v3487_v3, %v4945_v0  ;;  %v6854_v0 = vld [vmem:[#allocation22_spill] sm:$0xff] }
 0x1ac   : > { %v3491_v31 = vpop.eup %3490  ;;  %v2884_v32 = vmul.f32 %v3489_v47, %v4948_v26  ;;  %v5168_v3 = vmul.f32 %v3998_v12, %v6854_v0  ;;  %v607_v47 = vpop.f32.mrf.mxu1 }
 0x1ad   : > { %v3493_v50 = vpop.eup %3492  ;;  %2916 = vst.msk [vmem:[%s4638_s11 + $0x20] sm:$0xff] %vm2911_vm5, %v2883_v33  ;;  %v2951_v20 = vsel %vm2911_vm5, %v2883_v33, 0.0  ;;  %v6635_v33 = vrot.slane %v5158_v14, 7  ;;  %v733_v25 = vadd.f32 1.0, %v3491_v31 }
 0x1ae   : > { %2917 = vst.msk [vmem:[%s4638_s11 + $0x28] sm:$0xff] %vm2911_vm5, %v2884_v32  ;;  %v2952_v37 = vadd.f32 %v2951_v20, %v4904_v58  ;;  %v2803_v56 = vadd.f32 1.0, %v3493_v50  ;;  %6855 = vst [vmem:[#allocation48_spill] sm:$0xff] %v5168_v3  ;;  %v2953_v26 = vsel %vm2911_vm5, %v2884_v32, 0.0  ;;  %v746_v50 = vadd.f32 1.0, %v3485_v23  ;;  %v6864_v23 = vld [vmem:[#allocation46_spill] sm:$0xff]  ;;  %v3333_v31 = vpop.f32.mrf.mxu1 }
 0x1af   : > { %v3495_v44 = vpop.eup %3494  ;;  %v5179_v3 = vmul.f32 %v3998_v12, %v6858_v59  ;;  %v5205_v59 = vadd.f32 %v5049_v15, %v607_v47  ;;  %v5220_v47 = vadd.f32 %v5049_v15, %v3333_v31 }
 0x1b0   : > { %v3497_v53 = vpop.eup %3496  ;;  %v2804_v2 = vadd.f32 1.0, %v3495_v44  ;;  %3508 = vrcp.f32 %v2803_v56  ;;  %v5175_v58 = vadd.f32 %v2953_v26, %v2952_v37  ;;  %v5183_v44 = vmul.f32 %v4043_v51, %v6854_v0  ;;  %v537_v56 = vpop.f32.mrf.mxu0  ;;  %v6866_v0 = vld [vmem:[#allocation13_spill] sm:$0xff] }
 0x1b1   : > { %v3499_v6 = vpop.eup %3498  ;;  %v749_v20 = vadd.f32 1.0, %v3497_v53  ;;  %6859 = vst [vmem:[#allocation41_spill] sm:$0xff] %v5179_v3  ;;  %v5191_v37 = vmul.f32 %v4043_v51, %v6862_v22  ;;  %v5195_v53 = vmul.f32 %v4043_v51, %v6864_v23  ;;  %6867 = vst [vmem:[#allocation25_spill] sm:$0xff] %v5205_v59  ;;  %v5209_v22 = vmul.f32 %v6866_v0, %v4817_v38 }
 0x1b2   : > { %6857 = vst [vmem:[#allocation16_spill] sm:$0xff] %v5175_v58  ;;  %3510 = vrcp.f32 %v2804_v2  ;;  %6860 = vst [vmem:[#allocation26_spill] sm:$0xff] %v5183_v44  ;;  %v732_v32 = vadd.f32 1.0, %v3499_v6  ;;  %v3501_v26 = vpop.eup %3500  ;;  %v999_v6 = vsel %vm882_vm2, %v6635_v33, 0.0  ;;  %v5213_v23 = vadd.f32 %v5049_v15, %v3309_v42 }
 0x1b3   : > { %3512 = vrcp.f32 %v730_v48  ;;  %6863 = vst [vmem:[#allocation56_spill] sm:$0xff] %v5191_v37  ;;  %6865 = vst [vmem:[#allocation52_spill] sm:$0xff] %v5195_v53  ;;  %v5199_v48 = vmul.f32 %v6866_v0, %v4820_v8  ;;  %v3503_v2 = vpop.eup %3502  ;;  %v5217_v53 = vmul.f32 %v6866_v0, %v4932_v34  ;;  %v5227_v33 = vmul.f32 %v6866_v0, %v4929_v13  ;;  %v617_v37 = vpop.f32.mrf.mxu1 }
 0x1b4   : > { %3514 = vrcp.f32 %v746_v50  ;;  %6868 = vst [vmem:[#allocation43_spill] sm:$0xff] %v5213_v23  ;;  %v3505_v8 = vpop.eup %3504  ;;  %6869 = vst [vmem:[#allocation57_spill] sm:$0xff] %v5220_v47  ;;  %v5230_v42 = vmul.f32 %v3983_v62, %v999_v6  ;;  %v748_v34 = vadd.f32 1.0, %v3501_v26  ;;  %v5239_v31 = vmul.f32 %v3989_v4, %v999_v6 }
 0x1b5   : > { %3516 = vrcp.f32 %v733_v25  ;;  %v5223_v25 = vadd.f32 %v5049_v15, %v537_v56  ;;  %v3507_v38 = vpop.eup %3506  ;;  %v735_v56 = vadd.f32 1.0, %v3503_v2  ;;  %v3205_v50 = vmul.f32 -1.442695, %v5205_v59 }
 0x1b6   : > { %3518 = vrcp.f32 %v749_v20  ;;  %6871 = vst [vmem:[#allocation29_spill] sm:$0xff] %v5230_v42  ;;  %v5233_v20 = vmul.f32 %v3986_v63, %v999_v6  ;;  %v5243_v13 = vmul.f32 %v3992_v5, %v999_v6  ;;  %v1007_v44 = vsel %vm882_vm2, %v6872_v16, 0.0 }
 0x1b7   : > { %3520 = vrcp.f32 %v732_v32  ;;  %6870 = vst [vmem:[#allocation18_spill] sm:$0xff] %v5223_v25  ;;  %v5236_v32 = vmul.f32 %v3995_v11, %v999_v6  ;;  %v751_v3 = vadd.f32 1.0, %v3505_v8  ;;  %v3192_v26 = vmul.f32 -1.442695, %v5213_v23 }
 0x1b8   : > { %v5250_v52 = vmul.f32 %v5028_v27, %v999_v6  ;;  %v734_v41 = vadd.f32 1.0, %v3507_v38  ;;  %v3208_v58 = vmul.f32 -1.442695, %v5220_v47  ;;  %v3191_v2 = vmul.f32 -1.442695, %v5223_v25 }
 0x1b9   : > { %3522 = vrcp.f32 %v748_v34  ;;  %v5257_v1 = vadd.f32 %v5049_v15, %v617_v37  ;;  %v5262_v6 = vmul.f32 %v3983_v62, %v1007_v44  ;;  %v5266_v59 = vmul.f32 %v3986_v63, %v1007_v44 }
 0x1ba   : > { %3524 = vrcp.f32 %v735_v56  ;;  %v5269_v34 = vmul.f32 %v3995_v11, %v1007_v44  ;;  %v5275_v35 = vmul.f32 %v3989_v4, %v1007_v44  ;;  %v5278_v56 = vmul.f32 %v3992_v5, %v1007_v44 }
 0x1bb   : > { %6873 = vst [vmem:[#allocation14_spill] sm:$0xff] %v5257_v1  ;;  %6874 = vst [vmem:[#allocation22_spill] sm:$0xff] %v5262_v6  ;;  %3526 = vrcp.f32 %v751_v3  ;;  %v5284_v16 = vmul.f32 %v5028_v27, %v1007_v44  ;;  %v3207_v3 = vmul.f32 -1.442695, %v5257_v1  ;;  %v6881_v44 = vld [vmem:[#allocation28_spill] sm:$0xff] }
 0x1bc   : > { %3528 = vrcp.f32 %v734_v41 }
 0x1bd   : > { %v3509_v38 = vpop.eup %3508  ;;  %3530 = vpow2.f32 %v3205_v50 }
 0x1be   : > { %v5272_v37 = vmul.f32 %v3509_v38, %v5098_v7  ;;  %3532 = vpow2.f32 %v3192_v26 }
 0x1bf   : > { %v3511_v15 = vpop.eup %3510  ;;  %3534 = vpow2.f32 %v3208_v58 }
 0x1c0   : > { %6875 = vst [vmem:[#allocation15_spill] sm:$0xff] %v5272_v37  ;;  %v3513_v25 = vpop.eup %3512  ;;  %v5281_v8 = vmul.f32 %v3511_v15, %v5101_v21  ;;  %2932 = vst.msk [vmem:[%s4638_s11 + $0xa0] sm:$0xff] %vm2911_vm5, %v5272_v37  ;;  %3536 = vpow2.f32 %v3191_v2 }
 0x1c1   : > { %v3515_v7 = vpop.eup %3514  ;;  %v826_v41 = vmul.f32 %v3513_v25, %v5052_v43  ;;  %3538 = vpow2.f32 %v3207_v3 }
 0x1c2   : > { %6876 = vst [vmem:[#allocation21_spill] sm:$0xff] %v5281_v8  ;;  %v3517_v23 = vpop.eup %3516  ;;  %2933 = vst.msk [vmem:[%s4638_s11 + $0xa8] sm:$0xff] %vm2911_vm5, %v5281_v8  ;;  %v5299_v50 = vmul.f32 %v3515_v7, %v5069_v40  ;;  %v6877_v40 = vrot.slane %v5158_v14, 7  ;;  %v6882_v8 = vld [vmem:[#allocation17_spill] sm:$0xff] }
 0x1c3   : > { %v3519_v15 = vpop.eup %3518  ;;  %v895_v37 = vrot.slane %v826_v41, 7  ;;  %v5303_v47 = vmul.f32 %v3517_v23, %v5092_v49 }
 0x1c4   : > { %v3521_v43 = vpop.eup %3520  ;;  %v919_v21 = vrot.slane %v5299_v50, 7  ;;  %v5314_v49 = vmul.f32 %v3519_v15, %v5095_v46 }
 0x1c5   : > { %v897_v58 = vsel %vm882_vm2, %v895_v37, %v6877_v40  ;;  %v983_v7 = vsel %vm882_vm2, 0.0, %v895_v37  ;;  %v5322_v3 = vmul.f32 %v3521_v43, %v5106_v54 }
 0x1c6   : > { %v5317_v23 = vmul.f32 %v6866_v0, %v983_v7  ;;  %v1091_v2 = vmul.f32 %v3998_v12, %v983_v7  ;;  %v1092_v26 = vmul.f32 %v3998_v12, %v897_v58  ;;  %v5325_v14 = vmul.f32 %v6866_v0, %v897_v58  ;;  %v5340_v43 = vpop.eup %3522 }
 0x1c7   : > { %v1157_v37 = vmul.f32 %v4043_v51, %v983_v7  ;;  %v1158_v50 = vmul.f32 %v4043_v51, %v897_v58  ;;  %v5330_v46 = vmul.f32 %v3983_v62, %v983_v7  ;;  %v5336_v40 = vmul.f32 %v3983_v62, %v897_v58  ;;  %6880 = vst [vmem:[#allocation13_spill] sm:$0xff] %v5340_v43 }
 0x1c8   : > { %v5333_v15 = vadd.f32 %v1091_v2, %v5199_v48  ;;  %v1467_v25 = vmul.f32 %v3986_v63, %v983_v7  ;;  %v1468_v54 = vmul.f32 %v3986_v63, %v897_v58  ;;  %v5343_v38 = vadd.f32 %v1092_v26, %v5209_v22  ;;  %v5348_v48 = vpop.eup %3524 }
 0x1c9   : > { %6878 = vst [vmem:[#allocation47_spill] sm:$0xff] %v5330_v46  ;;  %v1188_v41 = vadd.f32 %v1157_v37, %v6881_v44  ;;  %v1189_v1 = vadd.f32 %v1158_v50, %v6882_v8  ;;  %6883 = vst [vmem:[#allocation28_spill] sm:$0xff] %v5348_v48  ;;  %v1708_v39 = vmul.f32 %v3995_v11, %v983_v7  ;;  %v6887_v46 = vld [vmem:[#allocation9_spill] sm:$0xff] }
 0x1ca   : > { %6879 = vst [vmem:[#allocation46_spill] sm:$0xff] %v5333_v15  ;;  %v1571_v2 = vrot.slane %v1467_v25, 1  ;;  %v1572_v42 = vrot.slane %v1468_v54, 1  ;;  %v1709_v45 = vmul.f32 %v3995_v11, %v897_v58  ;;  %v5352_v15 = vpop.eup %3526  ;;  %v1948_v44 = vmul.f32 %v3989_v4, %v983_v7 }
 0x1cb   : > { %6884 = vst [vmem:[#allocation17_spill] sm:$0xff] %v5352_v15  ;;  %v1425_v43 = vadd.f32 %v5059_v57, %v1188_v41  ;;  %v1426_v22 = vadd.f32 %v5066_v29, %v1189_v1  ;;  %v1949_v8 = vmul.f32 %v3989_v4, %v897_v58  ;;  %v5358_v26 = vpop.eup %3528  ;;  %v1806_v50 = vrot.slane %v1708_v39, 1 }
 0x1cc   : > { %6885 = vst [vmem:[#allocation60_spill] sm:$0xff] %v5358_v26  ;;  %v5362_v25 = vsel %vm1310_vm3, %v1571_v2, %v1572_v42  ;;  %v1807_v54 = vrot.slane %v1709_v45, 1  ;;  %v5364_v6 = vpop.eup %3530  ;;  %v2050_v1 = vrot.slane %v1948_v44, 2  ;;  %v6889_v26 = vrot.slane %v5236_v32, 1 }
 0x1cd   : > { %6886 = vst [vmem:[#allocation61_spill] sm:$0xff] %v5364_v6  ;;  %v1669_v15 = vadd.f32 %v6887_v46, %v1425_v43  ;;  %v1670_v57 = vadd.f32 %v4869_v18, %v1426_v22  ;;  %v2051_v29 = vrot.slane %v1949_v8, 2  ;;  %v5368_v41 = vpop.eup %3532  ;;  %v2184_v2 = vmul.f32 %v3992_v5, %v983_v7 }
 0x1ce   : > { %6888 = vst [vmem:[#allocation9_spill] sm:$0xff] %v5368_v41  ;;  %v1808_v48 = vsel %vm1310_vm3, %v1806_v50, %v1807_v54  ;;  %v1810_v37 = vsel %vm1310_vm3, %v1807_v54, %v6889_v26  ;;  %v2185_v45 = vmul.f32 %v3992_v5, %v897_v58  ;;  %v5376_v39 = vpop.eup %3534  ;;  %v6892_v43 = vrot.slane %v5239_v31, 2 }
 0x1cf   : > { %6890 = vst [vmem:[#allocation62_spill] sm:$0xff] %v5376_v39  ;;  %v1905_v6 = vadd.f32 %v1808_v48, %v1669_v15  ;;  %v1906_v46 = vadd.f32 %v1810_v37, %v1670_v57  ;;  %v5379_v18 = vsel %vm2027_vm4, %v2050_v1, %v2051_v29  ;;  %v5386_v44 = vpop.eup %3536  ;;  %v2288_v32 = vrot.slane %v2184_v2, 2  ;;  %v6896_v15 = vld [vmem:[#allocation58_spill] sm:$0xff]  ;;  %v6897_v37 = vld [vmem:[#allocation59_spill] sm:$0xff] }
 0x1d0   : > { %6891 = vst [vmem:[#allocation63_spill] sm:$0xff] %v5379_v18  ;;  %v5384_v22 = vsel %vm2027_vm4, %v2051_v29, %v6892_v43  ;;  %6894 = vst [vmem:[#allocation65_spill] sm:$0xff] %v5386_v44  ;;  %v2289_v8 = vrot.slane %v2185_v45, 2  ;;  %v2425_v26 = vmul.f32 %v5028_v27, %v983_v7  ;;  %v2426_v50 = vmul.f32 %v5028_v27, %v897_v58  ;;  %v5390_v54 = vpop.eup %3538  ;;  %v6921_v18 = vld [vmem:[#allocation37_spill] sm:$0xff] }
 0x1d1   : > { %6893 = vst [vmem:[#allocation64_spill] sm:$0xff] %v5384_v22  ;;  %6895 = vst [vmem:[#allocation66_spill] sm:$0xff] %v5390_v54  ;;  %v2142_v48 = vadd.f32 %v6896_v15, %v1905_v6  ;;  %v2143_v57 = vadd.f32 %v6897_v37, %v1906_v46  ;;  %v6898_v1 = vrot.slane %v5173_v10, 7  ;;  %v991_v29 = vsel %vm882_vm2, 0.0, %v919_v21 }
 0x1d2   : > { %v6899_v43 = vrot.slane %v5233_v20, 1  ;;  %v5404_v7 = vsel %vm2027_vm4, %v2288_v32, %v2289_v8  ;;  %v2523_v58 = vrot.slane %v2425_v26, 2  ;;  %v2524_v45 = vrot.slane %v2426_v50, 2 }
 0x1d3   : > { %v921_v31 = vsel %vm882_vm2, %v919_v21, %v6898_v1  ;;  %v6900_v6 = vrot.slane %v5243_v13, 2  ;;  %v2386_v10 = vadd.f32 %v4907_v60, %v2142_v48  ;;  %v2387_v15 = vadd.f32 %v4912_v17, %v2143_v57  ;;  %v5439_v1 = vld [vmem:[%s6593_s4] ss:$0 sm:$0xff] }
 0x1d4   : > { %v5401_v2 = vsel %vm1310_vm3, %v1572_v42, %v6899_v43  ;;  %v5414_v21 = vmul.f32 %v6866_v0, %v991_v29  ;;  %v2525_v42 = vsel %vm2027_vm4, %v2523_v58, %v2524_v45  ;;  %v6901_v20 = vrot.slane %v5250_v52, 2 }
 0x1d5   : > { %v5409_v46 = vsel %vm2027_vm4, %v2289_v8, %v6900_v6  ;;  %v1107_v26 = vmul.f32 %v3998_v12, %v991_v29  ;;  %v1108_v13 = vmul.f32 %v3998_v12, %v921_v31  ;;  %v2622_v50 = vadd.f32 %v2525_v42, %v2386_v10 }
 0x1d6   : > { %v2527_v32 = vsel %vm2027_vm4, %v2524_v45, %v6901_v20  ;;  %v1173_v37 = vmul.f32 %v4043_v51, %v991_v29  ;;  %v1174_v60 = vmul.f32 %v4043_v51, %v921_v31  ;;  %v5425_v17 = vmul.f32 %v6866_v0, %v921_v31 }
 0x1d7   : > { %v2623_v8 = vadd.f32 %v2527_v32, %v2387_v15  ;;  %v5428_v48 = vadd.f32 %v1107_v26, %v5217_v53  ;;  %v5431_v52 = vadd.f32 %v1108_v13, %v5227_v33  ;;  %v5434_v57 = vmul.f32 %v3983_v62, %v991_v29 }
 0x1d8   : > { %v5442_v43 = vadd.f32 %v5439_v1, %v2622_v50  ;;  %v1204_v53 = vadd.f32 %v1173_v37, %v4955_v9  ;;  %v1205_v45 = vadd.f32 %v1174_v60, %v4958_v55  ;;  %v5450_v33 = vmul.f32 %v3983_v62, %v921_v31 }
 0x1d9   : > { %v5445_v58 = vadd.f32 %v5439_v1, %v2623_v8  ;;  %v1491_v10 = vmul.f32 %v3986_v63, %v991_v29  ;;  %v1492_v15 = vmul.f32 %v3986_v63, %v921_v31  ;;  %v1732_v55 = vmul.f32 %v3995_v11, %v991_v29 }
 0x1da   : > { %v3217_v42 = vmul.f32 -1.442695, %v5442_v43  ;;  %v1441_v32 = vadd.f32 %v5081_v36, %v1204_v53  ;;  %v1442_v26 = vadd.f32 %v5089_v61, %v1205_v45  ;;  %v1733_v50 = vmul.f32 %v3995_v11, %v921_v31 }
 0x1db   : > { %v3218_v20 = vmul.f32 -1.442695, %v5445_v58  ;;  %v1611_v9 = vrot.slane %v1491_v10, 1  ;;  %v1612_v13 = vrot.slane %v1492_v15, 1  ;;  %v1972_v60 = vmul.f32 %v3989_v4, %v991_v29 }
 0x1dc   : > { %3540 = vpow2.f32 %v3217_v42  ;;  %v1685_v8 = vadd.f32 %v4987_v28, %v1441_v32  ;;  %v1686_v37 = vadd.f32 %v4992_v30, %v1442_v26  ;;  %v1846_v61 = vrot.slane %v1732_v55, 1 }
 0x1dd   : > { %3542 = vpow2.f32 %v3218_v20  ;;  %v5466_v36 = vsel %vm1310_vm3, %v1611_v9, %v1612_v13  ;;  %v1847_v53 = vrot.slane %v1733_v50, 1  ;;  %v1973_v45 = vmul.f32 %v3989_v4, %v921_v31 }
 0x1de   : > { %v2090_v10 = vrot.slane %v1972_v60, 2  ;;  %v2208_v15 = vmul.f32 %v3992_v5, %v991_v29  ;;  %v2209_v42 = vmul.f32 %v3992_v5, %v921_v31  ;;  %v2449_v28 = vmul.f32 %v5028_v27, %v991_v29 }
 0x1df   : > { %v2450_v30 = vmul.f32 %v5028_v27, %v921_v31  ;;  %v6902_v20 = vrot.slane %v5303_v47, 7  ;;  %v1848_v26 = vsel %vm1310_vm3, %v1846_v61, %v1847_v53  ;;  %v6903_v9 = vrot.slane %v5269_v34, 1 }
 0x1e0   : > { %v2091_v50 = vrot.slane %v1973_v45, 2  ;;  %v2328_v60 = vrot.slane %v2208_v15, 2  ;;  %v1921_v6 = vadd.f32 %v1848_v26, %v1685_v8  ;;  %v2329_v44 = vrot.slane %v2209_v42, 2  ;;  %v6909_v8 = vld [vmem:[#allocation27_spill] sm:$0xff]  ;;  %v6910_v45 = vld [vmem:[#allocation8_spill] sm:$0xff] }
 0x1e1   : > { %v1000_v32 = vsel %vm882_vm2, %v6902_v20, 0.0  ;;  %v1850_v55 = vsel %vm1310_vm3, %v1847_v53, %v6903_v9  ;;  %v2563_v39 = vrot.slane %v2449_v28, 2  ;;  %v6905_v31 = vrot.slane %v5275_v35, 2 }
 0x1e2   : > { %v1922_v54 = vadd.f32 %v1850_v55, %v1686_v37  ;;  %v5481_v29 = vsel %vm2027_vm4, %v2090_v10, %v2091_v50  ;;  %v2564_v20 = vrot.slane %v2450_v30, 2  ;;  %v5489_v61 = vmul.f32 %v3983_v62, %v1000_v32 }
 0x1e3   : > { %6904 = vst [vmem:[#allocation58_spill] sm:$0xff] %v5481_v29  ;;  %v5486_v22 = vsel %vm2027_vm4, %v2091_v50, %v6905_v31  ;;  %v6908_v34 = vrot.slane %v5266_v59, 1  ;;  %v2158_v37 = vadd.f32 %v6909_v8, %v1921_v6  ;;  %v5499_v10 = vsel %vm2027_vm4, %v2328_v60, %v2329_v44 }
 0x1e4   : > { %6906 = vst [vmem:[#allocation59_spill] sm:$0xff] %v5486_v22  ;;  %6907 = vst [vmem:[#allocation67_spill] sm:$0xff] %v5489_v61  ;;  %v2159_v15 = vadd.f32 %v6910_v45, %v1922_v54  ;;  %v6911_v35 = vrot.slane %v5278_v56, 2  ;;  %v2565_v28 = vsel %vm2027_vm4, %v2563_v39, %v2564_v20  ;;  %v6912_v30 = vrot.slane %v5284_v16, 2 }
 0x1e5   : > { %v5494_v53 = vsel %vm1310_vm3, %v1612_v13, %v6908_v34  ;;  %v5511_v13 = vmul.f32 %v3986_v63, %v1000_v32  ;;  %v2402_v6 = vadd.f32 %v5037_v19, %v2158_v37  ;;  %v5516_v26 = vmul.f32 %v3995_v11, %v1000_v32  ;;  %v6920_v19 = vld [vmem:[#allocation46_spill] sm:$0xff] }
 0x1e6   : > { %v5504_v42 = vsel %vm2027_vm4, %v2329_v44, %v6911_v35  ;;  %v2567_v59 = vsel %vm2027_vm4, %v2564_v20, %v6912_v30  ;;  %v2403_v54 = vadd.f32 %v5042_v24, %v2159_v15  ;;  %v5519_v56 = vmul.f32 %v3989_v4, %v1000_v32 }
 0x1e7   : > { %v5524_v16 = vmul.f32 %v3992_v5, %v1000_v32  ;;  %v6648_v9 = vrot.slane %v5314_v49, 7  ;;  %v2638_v55 = vadd.f32 %v2565_v28, %v2402_v6  ;;  %v5529_v24 = vmul.f32 %v5028_v27, %v1000_v32 }
 0x1e8   : > { %v2639_v50 = vadd.f32 %v2567_v59, %v2403_v54  ;;  %v898_v34 = vrot.slane %v5322_v3, 7 }
 0x1e9   : > { %v1008_v20 = vsel %vm882_vm2, %v6648_v9, 0.0  ;;  %v3541_v8 = vpop.eup %3540  ;;  %v5538_v37 = vadd.f32 %v5439_v1, %v2638_v55 }
 0x1ea   : > { %v5541_v45 = vadd.f32 %v5439_v1, %v2639_v50  ;;  %v5544_v32 = vmul.f32 %v3983_v62, %v1008_v20  ;;  %v5547_v15 = vmul.f32 %v3986_v63, %v1008_v20  ;;  %v3543_v35 = vpop.eup %3542  ;;  %v2789_v28 = vadd.f32 1.0, %v3541_v8 }
 0x1eb   : > { %v5550_v30 = vmul.f32 %v3995_v11, %v1008_v20  ;;  %v5553_v3 = vmul.f32 %v3989_v4, %v1008_v20  ;;  %v5556_v59 = vmul.f32 %v3992_v5, %v1008_v20  ;;  %v2790_v6 = vadd.f32 1.0, %v3543_v35 }
 0x1ec   : > { %6913 = vst [vmem:[#allocation27_spill] sm:$0xff] %v5544_v32  ;;  %v3233_v54 = vmul.f32 -1.442695, %v5538_v37  ;;  %v3234_v55 = vmul.f32 -1.442695, %v5541_v45  ;;  %3544 = vrcp.f32 %v2789_v28  ;;  %v5566_v39 = vmul.f32 %v5028_v27, %v1008_v20 }
 0x1ed   : > { %6914 = vst [vmem:[#allocation8_spill] sm:$0xff] %v5553_v3  ;;  %3546 = vrcp.f32 %v2790_v6  ;;  %v6915_v35 = vrot.slane %v5303_v47, 7  ;;  %v984_v28 = vsel %vm882_vm2, 0.0, %v898_v34 }
 0x1ee   : > { %3548 = vpow2.f32 %v3233_v54  ;;  %v1093_v20 = vmul.f32 %v3998_v12, %v984_v28  ;;  %v5580_v31 = vmul.f32 %v6866_v0, %v984_v28  ;;  %v1159_v47 = vmul.f32 %v4043_v51, %v984_v28 }
 0x1ef   : > { %v900_v60 = vsel %vm882_vm2, %v898_v34, %v6915_v35  ;;  %3550 = vpow2.f32 %v3234_v55  ;;  %v5585_v35 = vmul.f32 %v3983_v62, %v984_v28  ;;  %v1470_v9 = vmul.f32 %v3986_v63, %v984_v28 }
 0x1f0   : > { %v1094_v44 = vmul.f32 %v3998_v12, %v900_v60  ;;  %v5576_v6 = vmul.f32 %v6866_v0, %v900_v60  ;;  %6917 = vst [vmem:[#allocation69_spill] sm:$0xff] %v5580_v31  ;;  %v1160_v54 = vmul.f32 %v4043_v51, %v900_v60  ;;  %v5591_v55 = vmul.f32 %v3983_v62, %v900_v60 }
 0x1f1   : > { %6918 = vst [vmem:[#allocation70_spill] sm:$0xff] %v5585_v35  ;;  %v1471_v50 = vmul.f32 %v3986_v63, %v900_v60  ;;  %v5596_v8 = vadd.f32 %v1093_v20, %v5317_v23  ;;  %v1190_v3 = vadd.f32 %v1159_v47, %v6920_v19  ;;  %v1711_v22 = vmul.f32 %v3995_v11, %v984_v28 }
 0x1f2   : > { %6916 = vst [vmem:[#allocation68_spill] sm:$0xff] %v5576_v6  ;;  %v5588_v34 = vadd.f32 %v1094_v44, %v5325_v14  ;;  %v1191_v32 = vadd.f32 %v1160_v54, %v5343_v38  ;;  %v1576_v14 = vrot.slane %v1470_v9, 1  ;;  %v1712_v61 = vmul.f32 %v3995_v11, %v900_v60 }
 0x1f3   : > { %v1577_v44 = vrot.slane %v1471_v50, 1  ;;  %v1427_v6 = vadd.f32 %v6921_v18, %v1190_v3  ;;  %v1811_v41 = vrot.slane %v1711_v22, 1  ;;  %v1951_v23 = vmul.f32 %v3989_v4, %v984_v28 }
 0x1f4   : > { %6919 = vst [vmem:[#allocation71_spill] sm:$0xff] %v5588_v34  ;;  %v6922_v34 = vld [vmem:[#allocation40_spill] sm:$0xff]  ;;  %v1812_v38 = vrot.slane %v1712_v61, 1  ;;  %v1952_v47 = vmul.f32 %v3989_v4, %v900_v60  ;;  %v2187_v18 = vmul.f32 %v3992_v5, %v984_v28  ;;  %v6923_v22 = vrot.slane %v5516_v26, 1 }
 0x1f5   : > { %v1428_v31 = vadd.f32 %v6922_v34, %v1191_v32  ;;  %v5608_v19 = vsel %vm1310_vm3, %v1576_v14, %v1577_v44  ;;  %v1671_v9 = vadd.f32 %v5362_v25, %v1427_v6  ;;  %v2055_v54 = vrot.slane %v1951_v23, 2 }
 0x1f6   : > { %v1813_v32 = vsel %vm1310_vm3, %v1811_v41, %v1812_v38  ;;  %v1815_v3 = vsel %vm1310_vm3, %v1812_v38, %v6923_v22  ;;  %v2056_v34 = vrot.slane %v1952_v47, 2  ;;  %v2188_v14 = vmul.f32 %v3992_v5, %v900_v60  ;;  %v6927_v47 = vld [vmem:[#allocation19_spill] sm:$0xff] }
 0x1f7   : > { %v1672_v50 = vadd.f32 %v5401_v2, %v1428_v31  ;;  %v1907_v29 = vadd.f32 %v1813_v32, %v1671_v9  ;;  %v2293_v20 = vrot.slane %v2187_v18, 2  ;;  %v2428_v35 = vmul.f32 %v5028_v27, %v984_v28  ;;  %v6928_v28 = vld [vmem:[#allocation10_spill] sm:$0xff] }
 0x1f8   : > { %v5621_v2 = vsel %vm2027_vm4, %v2055_v54, %v2056_v34  ;;  %v6925_v31 = vrot.slane %v5519_v56, 2  ;;  %v2294_v26 = vrot.slane %v2188_v14, 2  ;;  %v2429_v6 = vmul.f32 %v5028_v27, %v900_v60 }
 0x1f9   : > { %v1908_v61 = vadd.f32 %v1815_v3, %v1672_v50  ;;  %v3545_v25 = vpop.eup %3544  ;;  %6924 = vst [vmem:[#allocation46_spill] sm:$0xff] %v5621_v2  ;;  %v2144_v9 = vadd.f32 %v6927_v47, %v1907_v29  ;;  %v2528_v18 = vrot.slane %v2428_v35, 2  ;;  %v6929_v56 = vrot.slane %v5511_v13, 1 }
 0x1fa   : > { %v5626_v41 = vsel %vm2027_vm4, %v2056_v34, %v6925_v31  ;;  %v3547_v23 = vpop.eup %3546  ;;  %v2885_v38 = vmul.f32 %v3545_v25, %v5442_v43  ;;  %v5639_v3 = vsel %vm2027_vm4, %v2293_v20, %v2294_v26  ;;  %v2529_v60 = vrot.slane %v2429_v6, 2 }
 0x1fb   : > { %6926 = vst [vmem:[#allocation37_spill] sm:$0xff] %v5626_v41  ;;  %v2145_v50 = vadd.f32 %v6928_v28, %v1908_v61  ;;  %v3549_v32 = vpop.eup %3548  ;;  %v2886_v54 = vmul.f32 %v3547_v23, %v5445_v58  ;;  %v5636_v22 = vsel %vm1310_vm3, %v1577_v44, %v6929_v56  ;;  %v2388_v35 = vadd.f32 %v5404_v7, %v2144_v9  ;;  %v6930_v58 = vld [vmem:[#allocation16_spill] sm:$0xff]  ;;  %v6937_v56 = vld [vmem:[#allocation45_spill] sm:$0xff] }
 0x1fc   : > { %v3551_v34 = vpop.eup %3550  ;;  %2918 = vst.msk [vmem:[%s4638_s11 + $0x30] sm:$0xff] %vm2911_vm5, %v2885_v38  ;;  %v2955_v43 = vsel %vm2911_vm5, %v2885_v38, 0.0  ;;  %v2805_v29 = vadd.f32 1.0, %v3549_v32  ;;  %v2530_v20 = vsel %vm2027_vm4, %v2528_v18, %v2529_v60  ;;  %v6931_v25 = vrot.slane %v5529_v24, 2  ;;  %v6932_v23 = vld [vmem:[#allocation12_spill] sm:$0xff]  ;;  %v6933_v38 = vld [vmem:[#allocation13_spill] sm:$0xff] }
 0x1fd   : > { %v2389_v14 = vadd.f32 %v5409_v46, %v2145_v50  ;;  %2919 = vst.msk [vmem:[%s4638_s11 + $0x38] sm:$0xff] %vm2911_vm5, %v2886_v54  ;;  %v2956_v13 = vadd.f32 %v2955_v43, %v6930_v58  ;;  %v2957_v44 = vsel %vm2911_vm5, %v2886_v54, 0.0  ;;  %v2806_v61 = vadd.f32 1.0, %v3551_v34  ;;  %v6934_v9 = vld [vmem:[#allocation44_spill] sm:$0xff]  ;;  %v6942_v58 = vld [vmem:[#allocation47_spill] sm:$0xff] }
 0x1fe   : > { %3552 = vrcp.f32 %v2805_v29  ;;  %v2532_v31 = vsel %vm2027_vm4, %v2529_v60, %v6931_v25  ;;  %v2624_v6 = vadd.f32 %v2530_v20, %v2388_v35  ;;  %v844_v7 = vmul.f32 %v6933_v38, %v6932_v23  ;;  %v6935_v28 = vld [vmem:[#allocation28_spill] sm:$0xff]  ;;  %v6938_v60 = vld [vmem:[#allocation17_spill] sm:$0xff] }
 0x1ff   : > { %3554 = vrcp.f32 %v2806_v61  ;;  %v2625_v46 = vadd.f32 %v2532_v31, %v2389_v14  ;;  %v5656_v47 = vadd.f32 %v2957_v44, %v2956_v13  ;;  %v5660_v50 = vmul.f32 %v6935_v28, %v6934_v9  ;;  %v6939_v29 = vld [vmem:[#allocation49_spill] sm:$0xff]  ;;  %v6940_v35 = vld [vmem:[#allocation60_spill] sm:$0xff] }
 0x200   : > { %v6936_v32 = vrot.slane %v5524_v16, 2  ;;  %v5668_v24 = vadd.f32 %v5439_v1, %v2624_v6  ;;  %v922_v54 = vrot.slane %v844_v7, 7  ;;  %v5672_v34 = vmul.f32 %v6938_v60, %v6937_v56  ;;  %v6944_v44 = vld [vmem:[#allocation29_spill] sm:$0xff] }
 0x201   : > { %v5675_v43 = vadd.f32 %v5439_v1, %v2625_v46  ;;  %v5679_v14 = vmul.f32 %v6940_v35, %v6939_v29  ;;  %v6941_v16 = vrot.slane %v5336_v40, 1  ;;  %v6945_v61 = vrot.slane %v6944_v44, 1 }
 0x202   : > { %v5665_v18 = vsel %vm2027_vm4, %v2294_v26, %v6936_v32  ;;  %v6943_v26 = vrot.slane %v6942_v58, 1  ;;  %v3219_v31 = vmul.f32 -1.442695, %v5668_v24  ;;  %v6947_v6 = vrot.slane %v5314_v49, 7 }
 0x203   : > { %v6946_v20 = vmov %v6941_v16  ;;  %v5702_v38 = vsel %vm882_vm2, 0.0, %v922_v54  ;;  %v6653_v7 = vrot.slane %v5660_v50, 7  ;;  %v3220_v46 = vmul.f32 -1.442695, %v5675_v43 }
 0x204   : > { %v5686_v13 = vsel %vm1310_vm3, %v6943_v26, %v6941_v16  ;;  %v5693_v25 = vsel %vm1310_vm3, %v6946_v20, %v6945_v61  ;;  %v5699_v23 = vsel %vm882_vm2, %v922_v54, %v6947_v6  ;;  %v1109_v40 = vmul.f32 %v3998_v12, %v5702_v38  ;;  %v6948_v61 = vld [vmem:[#allocation24_spill] sm:$0xff] }
 0x205   : > { %v1110_v9 = vmul.f32 %v3998_v12, %v5699_v23  ;;  %v1175_v28 = vmul.f32 %v4043_v51, %v5702_v38  ;;  %3556 = vpow2.f32 %v3219_v31  ;;  %v1176_v49 = vmul.f32 %v4043_v51, %v5699_v23  ;;  %v6950_v31 = vld [vmem:[#allocation42_spill] sm:$0xff] }
 0x206   : > { %v1494_v32 = vmul.f32 %v3986_v63, %v5702_v38  ;;  %v1495_v54 = vmul.f32 %v3986_v63, %v5699_v23  ;;  %3558 = vpow2.f32 %v3220_v46  ;;  %v5719_v56 = vadd.f32 %v1109_v40, %v5414_v21 }
 0x207   : > { %v1206_v60 = vadd.f32 %v1175_v28, %v5428_v48  ;;  %v6654_v29 = vrot.slane %v5672_v34, 7  ;;  %v1207_v35 = vadd.f32 %v1176_v49, %v5431_v52  ;;  %v1735_v26 = vmul.f32 %v3995_v11, %v5702_v38 }
 0x208   : > { %v1616_v16 = vrot.slane %v1494_v32, 1  ;;  %v1617_v58 = vrot.slane %v1495_v54, 1  ;;  %v5727_v44 = vadd.f32 %v1110_v9, %v5425_v17  ;;  %v1736_v21 = vmul.f32 %v3995_v11, %v5699_v23 }
 0x209   : > { %v1443_v20 = vadd.f32 %v6948_v61, %v1206_v60  ;;  %v5734_v48 = vmul.f32 %v3989_v4, %v5702_v38  ;;  %v1444_v6 = vadd.f32 %v6950_v31, %v1207_v35  ;;  %v1851_v46 = vrot.slane %v1735_v26, 1 }
 0x20a   : > { %v5738_v52 = vsel %vm1310_vm3, %v1616_v16, %v1617_v58  ;;  %v5742_v40 = vmul.f32 %v3989_v4, %v5699_v23  ;;  %v6952_v17 = vrot.slane %v5547_v15, 1  ;;  %v1852_v49 = vrot.slane %v1736_v21, 1 }
 0x20b   : > { %6949 = vst [vmem:[#allocation40_spill] sm:$0xff] %v5734_v48  ;;  %v1687_v28 = vadd.f32 %v5466_v36, %v1443_v20  ;;  %v2211_v32 = vmul.f32 %v3992_v5, %v5702_v38  ;;  %v1688_v54 = vadd.f32 %v5494_v53, %v1444_v6  ;;  %v2212_v60 = vmul.f32 %v3992_v5, %v5699_v23  ;;  %v3553_v16 = vpop.eup %3552  ;;  %v6976_v48 = vld [vmem:[#allocation71_spill] sm:$0xff] }
 0x20c   : > { %6951 = vst [vmem:[#allocation19_spill] sm:$0xff] %v5742_v40  ;;  %v5747_v9 = vsel %vm1310_vm3, %v1617_v58, %v6952_v17  ;;  %v2452_v35 = vmul.f32 %v5028_v27, %v5702_v38  ;;  %v2453_v15 = vmul.f32 %v5028_v27, %v5699_v23  ;;  %v1853_v58 = vsel %vm1310_vm3, %v1851_v46, %v1852_v49  ;;  %v3555_v20 = vpop.eup %3554 }
 0x20d   : > { %v6953_v36 = vrot.slane %v5550_v30, 1  ;;  %v2333_v61 = vrot.slane %v2211_v32, 2  ;;  %v1001_v53 = vsel %vm882_vm2, %v6653_v7, 0.0  ;;  %v5767_v21 = vmul.f32 %v3553_v16, %v5538_v37  ;;  %v6957_v37 = vld [vmem:[#allocation36_spill] sm:$0xff]  ;;  %v6967_v32 = vld [vmem:[#allocation22_spill] sm:$0xff] }
 0x20e   : > { %v1923_v31 = vadd.f32 %v1853_v58, %v1687_v28  ;;  %v2334_v27 = vrot.slane %v2212_v60, 2  ;;  %v5770_v17 = vmul.f32 %v3555_v20, %v5541_v45  ;;  %v2568_v46 = vrot.slane %v2452_v35, 2 }
 0x20f   : > { %v1855_v26 = vsel %vm1310_vm3, %v1852_v49, %v6953_v36  ;;  %6954 = vst [vmem:[#allocation10_spill] sm:$0xff] %v5767_v21  ;;  %v2569_v30 = vrot.slane %v2453_v15, 2  ;;  %v5773_v49 = vmul.f32 %v3983_v62, %v1001_v53  ;;  %2934 = vst.msk [vmem:[%s4638_s11 + $0xb0] sm:$0xff] %vm2911_vm5, %v5767_v21  ;;  %v6956_v36 = vld [vmem:[#allocation23_spill] sm:$0xff]  ;;  %v6958_v45 = vrot.slane %v5556_v59, 2 }
 0x210   : > { %v1924_v6 = vadd.f32 %v1855_v26, %v1688_v54  ;;  %6955 = vst [vmem:[#allocation16_spill] sm:$0xff] %v5770_v17  ;;  %v2160_v7 = vadd.f32 %v6956_v36, %v1923_v31  ;;  %v5782_v28 = vsel %vm2027_vm4, %v2333_v61, %v2334_v27  ;;  %2935 = vst.msk [vmem:[%s4638_s11 + $0xb8] sm:$0xff] %vm2911_vm5, %v5770_v17  ;;  %v6959_v35 = vrot.slane %v5566_v39, 2  ;;  %v5818_v36 = vld [vmem:[%s6592_s3 + $0x8] ss:$0 sm:$0xff] }
 0x211   : > { %v5790_v54 = vsel %vm2027_vm4, %v2334_v27, %v6958_v45  ;;  %v2570_v60 = vsel %vm2027_vm4, %v2568_v46, %v2569_v30  ;;  %v5797_v58 = vmul.f32 %v3986_v63, %v1001_v53  ;;  %v5802_v20 = vmul.f32 %v3995_v11, %v1001_v53 }
 0x212   : > { %v2161_v16 = vadd.f32 %v6957_v37, %v1924_v6  ;;  %v2572_v15 = vsel %vm2027_vm4, %v2569_v30, %v6959_v35  ;;  %v2404_v26 = vadd.f32 %v5499_v10, %v2160_v7  ;;  %v5805_v59 = vmul.f32 %v3989_v4, %v1001_v53  ;;  %v3557_v31 = vpop.eup %3556  ;;  %v6964_v6 = vld [vmem:[#allocation61_spill] sm:$0xff] }
 0x213   : > { %v5810_v27 = vmul.f32 %v3992_v5, %v1001_v53  ;;  %v1009_v10 = vsel %vm882_vm2, %v6654_v29, 0.0  ;;  %v3559_v7 = vpop.eup %3558  ;;  %v5821_v37 = vmul.f32 %v5818_v36, %v1001_v53  ;;  %v901_v45 = vrot.slane %v5679_v14, 7 }
 0x214   : > { %v2405_v61 = vadd.f32 %v5504_v42, %v2161_v16  ;;  %v2791_v42 = vadd.f32 1.0, %v3557_v31  ;;  %v2640_v46 = vadd.f32 %v2570_v60, %v2404_v26  ;;  %v2792_v16 = vadd.f32 1.0, %v3559_v7 }
 0x215   : > { %v5836_v53 = vmul.f32 %v3986_v63, %v1009_v10  ;;  %v5839_v26 = vmul.f32 %v3995_v11, %v1009_v10  ;;  %v5854_v35 = vmul.f32 %v5818_v36, %v1009_v10  ;;  %v750_v17 = vadd.f32 1.0, %v6964_v6 }
 0x216   : > { %v2641_v30 = vadd.f32 %v2572_v15, %v2405_v61  ;;  %3560 = vrcp.f32 %v2791_v42  ;;  %v5827_v31 = vadd.f32 %v5439_v1, %v2640_v46  ;;  %v5833_v15 = vmul.f32 %v3983_v62, %v1009_v10 }
 0x217   : > { %3562 = vrcp.f32 %v2792_v16  ;;  %6961 = vst [vmem:[#allocation13_spill] sm:$0xff] %v5836_v53  ;;  %v5842_v61 = vmul.f32 %v3989_v4, %v1009_v10  ;;  %v6965_v21 = vrot.slane %v5450_v33, 1  ;;  %v6966_v16 = vrot.slane %v5434_v57, 1 }
 0x218   : > { %v5830_v60 = vadd.f32 %v5439_v1, %v2641_v30  ;;  %6960 = vst [vmem:[#allocation12_spill] sm:$0xff] %v5833_v15  ;;  %v3235_v7 = vmul.f32 -1.442695, %v5827_v31  ;;  %v5848_v30 = vmul.f32 %v3992_v5, %v1009_v10  ;;  %v6968_v10 = vrot.slane %v6967_v32, 1  ;;  %v6972_v32 = vld [vmem:[#allocation9_spill] sm:$0xff] }
 0x219   : > { %6962 = vst [vmem:[#allocation44_spill] sm:$0xff] %v5842_v61  ;;  %v5865_v29 = vsel %vm1310_vm3, %v6966_v16, %v6965_v21  ;;  %v6970_v6 = vrot.slane %v5660_v50, 7  ;;  %v5881_v46 = vsel %vm882_vm2, 0.0, %v901_v45  ;;  %v5892_v16 = vadd.f32 1.0, %v6972_v32 }
 0x21a   : > { %v3236_v42 = vmul.f32 -1.442695, %v5830_v60  ;;  %6963 = vst [vmem:[#allocation28_spill] sm:$0xff] %v5848_v30  ;;  %3564 = vpow2.f32 %v3235_v7  ;;  %v6969_v7 = vmov %v6965_v21  ;;  %v5885_v57 = vmul.f32 %v6866_v0, %v5881_v46 }
 0x21b   : > { %v5872_v39 = vsel %vm1310_vm3, %v6969_v7, %v6968_v10  ;;  %v1095_v33 = vmul.f32 %v3998_v12, %v5881_v46  ;;  %v1161_v50 = vmul.f32 %v4043_v51, %v5881_v46  ;;  %v1473_v32 = vmul.f32 %v3986_v63, %v5881_v46 }
 0x21c   : > { %3566 = vpow2.f32 %v3236_v42  ;;  %v5878_v42 = vsel %vm882_vm2, %v901_v45, %v6970_v6  ;;  %6971 = vst [vmem:[#allocation45_spill] sm:$0xff] %v5885_v57  ;;  %v6974_v6 = vld [vmem:[#allocation69_spill] sm:$0xff] }
 0x21d   : > { %3568 = vrcp.f32 %v750_v17  ;;  %v1096_v21 = vmul.f32 %v3998_v12, %v5878_v42  ;;  %v1162_v45 = vmul.f32 %v4043_v51, %v5878_v42  ;;  %v1237_v17 = vmul.f32 %v3983_v62, %v5881_v46 }
 0x21e   : > { %v1238_v10 = vmul.f32 %v3983_v62, %v5878_v42  ;;  %v5904_v7 = vmul.f32 %v6866_v0, %v5878_v42  ;;  %v5907_v14 = vadd.f32 %v1095_v33, %v6974_v6  ;;  %v1474_v30 = vmul.f32 %v3986_v63, %v5878_v42  ;;  %v6977_v6 = vld [vmem:[#allocation68_spill] sm:$0xff] }
 0x21f   : > { %v1192_v61 = vadd.f32 %v1161_v50, %v5596_v8  ;;  %v1193_v53 = vadd.f32 %v1162_v45, %v6976_v48  ;;  %v1343_v40 = vrot.slane %v1237_v17, 1  ;;  %v1581_v41 = vrot.slane %v1473_v32, 1 }
 0x220   : > { %6973 = vst [vmem:[#allocation17_spill] sm:$0xff] %v5904_v7  ;;  %6975 = vst [vmem:[#allocation49_spill] sm:$0xff] %v5907_v14  ;;  %v1344_v15 = vrot.slane %v1238_v10, 1  ;;  %v1582_v2 = vrot.slane %v1474_v30, 1  ;;  %v1714_v7 = vmul.f32 %v3995_v11, %v5881_v46  ;;  %v1715_v33 = vmul.f32 %v3995_v11, %v5878_v42 }
 0x221   : > { %v5920_v14 = vadd.f32 %v1096_v21, %v6977_v6  ;;  %v1429_v8 = vadd.f32 %v5686_v13, %v1192_v61  ;;  %v1430_v48 = vadd.f32 %v5693_v25, %v1193_v53  ;;  %v6978_v30 = vrot.slane %v5773_v49, 1 }
 0x222   : > { %v5923_v57 = vsel %vm1310_vm3, %v1343_v40, %v1344_v15  ;;  %v5933_v17 = vsel %vm1310_vm3, %v1581_v41, %v1582_v2  ;;  %v1816_v10 = vrot.slane %v1714_v7, 1  ;;  %v1817_v21 = vrot.slane %v1715_v33, 1 }
 0x223   : > { %v3561_v50 = vpop.eup %3560  ;;  %v5930_v45 = vsel %vm1310_vm3, %v1344_v15, %v6978_v30  ;;  %v1673_v13 = vadd.f32 %v5608_v19, %v1429_v8  ;;  %v1674_v61 = vadd.f32 %v5636_v22, %v1430_v48  ;;  %v1954_v25 = vmul.f32 %v3989_v4, %v5881_v46 }
 0x224   : > { %v3563_v32 = vpop.eup %3562  ;;  %v2887_v40 = vmul.f32 %v3561_v50, %v5668_v24  ;;  %v1818_v15 = vsel %vm1310_vm3, %v1816_v10, %v1817_v21  ;;  %v6979_v41 = vrot.slane %v5802_v20, 1  ;;  %v1955_v7 = vmul.f32 %v3989_v4, %v5878_v42 }
 0x225   : > { %v2888_v49 = vmul.f32 %v3563_v32, %v5675_v43  ;;  %v1909_v24 = vadd.f32 %v1818_v15, %v1673_v13  ;;  %v2060_v33 = vrot.slane %v1954_v25, 2  ;;  %v6980_v8 = vrot.slane %v5797_v58, 1 }
 0x226   : > { %v1820_v53 = vsel %vm1310_vm3, %v1817_v21, %v6979_v41  ;;  %2920 = vst.msk [vmem:[%s4638_s11 + $0x40] sm:$0xff] %vm2911_vm5, %v2887_v40  ;;  %v2959_v19 = vsel %vm2911_vm5, %v2887_v40, 0.0  ;;  %v2061_v48 = vrot.slane %v1955_v7, 2  ;;  %v2190_v50 = vmul.f32 %v3992_v5, %v5881_v46  ;;  %v6981_v21 = vld [vmem:[#allocation63_spill] sm:$0xff]  ;;  %v6982_v40 = vld [vmem:[#allocation64_spill] sm:$0xff] }
 0x227   : > { %v1910_v22 = vadd.f32 %v1820_v53, %v1674_v61  ;;  %v3565_v6 = vpop.eup %3564  ;;  %2921 = vst.msk [vmem:[%s4638_s11 + $0x48] sm:$0xff] %vm2911_vm5, %v2888_v49  ;;  %v2960_v43 = vadd.f32 %v2959_v19, %v5656_v47  ;;  %v5956_v20 = vsel %vm1310_vm3, %v1582_v2, %v6980_v8  ;;  %v2146_v32 = vadd.f32 %v6981_v21, %v1909_v24 }
 0x228   : > { %v2807_v10 = vadd.f32 1.0, %v3565_v6  ;;  %v2191_v61 = vmul.f32 %v3992_v5, %v5878_v42  ;;  %v2961_v47 = vsel %vm2911_vm5, %v2888_v49, 0.0  ;;  %v5966_v2 = vsel %vm2027_vm4, %v2060_v33, %v2061_v48  ;;  %v6984_v6 = vld [vmem:[#allocation25_spill] sm:$0xff] }
 0x229   : > { %v3567_v30 = vpop.eup %3566  ;;  %v2147_v13 = vadd.f32 %v6982_v40, %v1910_v22  ;;  %v2298_v15 = vrot.slane %v2190_v50, 2  ;;  %v6983_v41 = vrot.slane %v5805_v59, 2  ;;  %v2390_v19 = vadd.f32 %v5639_v3, %v2146_v32  ;;  %v6989_v40 = vld [vmem:[#allocation70_spill] sm:$0xff] }
 0x22a   : > { %v3569_v25 = vpop.eup %3568  ;;  %v2808_v58 = vadd.f32 1.0, %v3567_v30  ;;  %3570 = vrcp.f32 %v2807_v10  ;;  %v2299_v7 = vrot.slane %v2191_v61, 2  ;;  %v2431_v24 = vmul.f32 %v5818_v36, %v5881_v46  ;;  %v6986_v30 = vld [vmem:[#allocation62_spill] sm:$0xff]  ;;  %v6987_v10 = vld [vmem:[#allocation65_spill] sm:$0xff] }
 0x22b   : > { %v5971_v53 = vsel %vm2027_vm4, %v2061_v48, %v6983_v41  ;;  %v2432_v49 = vmul.f32 %v5818_v36, %v5878_v42  ;;  %v5978_v22 = vadd.f32 %v2961_v47, %v2960_v43  ;;  %v2391_v59 = vadd.f32 %v5665_v18, %v2147_v13  ;;  %v6995_v41 = vld [vmem:[#allocation66_spill] sm:$0xff] }
 0x22c   : > { %3572 = vrcp.f32 %v2808_v58  ;;  %v5981_v33 = vsel %vm2027_vm4, %v2298_v15, %v2299_v7  ;;  %v846_v8 = vmul.f32 %v3569_v25, %v6984_v6  ;;  %v6985_v3 = vrot.slane %v5810_v27, 2 }
 0x22d   : > { %3574 = vrcp.f32 %v5892_v16  ;;  %v2533_v46 = vrot.slane %v2431_v24, 2  ;;  %v2534_v50 = vrot.slane %v2432_v49, 2  ;;  %v753_v42 = vadd.f32 1.0, %v6986_v30  ;;  %v6991_v16 = vld [vmem:[#allocation67_spill] sm:$0xff] }
 0x22e   : > { %v5989_v48 = vsel %vm2027_vm4, %v2299_v7, %v6985_v3  ;;  %v925_v43 = vrot.slane %v846_v8, 7  ;;  %v736_v21 = vadd.f32 1.0, %v6987_v10  ;;  %v6988_v32 = vrot.slane %v5591_v55, 1 }
 0x22f   : > { %v6990_v18 = vrot.slane %v6989_v40, 1  ;;  %v6992_v61 = vrot.slane %v6991_v16, 1  ;;  %v2535_v47 = vsel %vm2027_vm4, %v2533_v46, %v2534_v50  ;;  %v6994_v58 = vrot.slane %v5821_v37, 2 }
 0x230   : > { %v6993_v27 = vmov %v6988_v32  ;;  %3576 = vrcp.f32 %v753_v42  ;;  %v752_v7 = vadd.f32 1.0, %v6995_v41  ;;  %v2626_v24 = vadd.f32 %v2535_v47, %v2390_v19 }
 0x231   : > { %v5998_v13 = vsel %vm1310_vm3, %v6990_v18, %v6988_v32  ;;  %v6005_v25 = vsel %vm1310_vm3, %v6993_v27, %v6992_v61  ;;  %v2537_v15 = vsel %vm2027_vm4, %v2534_v50, %v6994_v58  ;;  %v6996_v6 = vrot.slane %v5672_v34, 7 }
 0x232   : > { %v2627_v49 = vadd.f32 %v2537_v15, %v2391_v59  ;;  %v993_v55 = vsel %vm882_vm2, 0.0, %v925_v43  ;;  %v1044_v50 = vmul.f32 %v6866_v0, %v5702_v38  ;;  %v6027_v19 = vadd.f32 %v5439_v1, %v2626_v24 }
 0x233   : > { %v6015_v8 = vsel %vm882_vm2, %v925_v43, %v6996_v6  ;;  %v1177_v3 = vmul.f32 %v4043_v51, %v993_v55  ;;  %v6022_v37 = vmul.f32 %v3983_v62, %v993_v55  ;;  %v1738_v59 = vmul.f32 %v3995_v11, %v993_v55 }
 0x234   : > { %v1178_v46 = vmul.f32 %v4043_v51, %v6015_v8  ;;  %v6030_v34 = vadd.f32 %v5439_v1, %v2627_v49  ;;  %v1739_v30 = vmul.f32 %v3995_v11, %v6015_v8  ;;  %v6038_v10 = vmul.f32 %v3986_v63, %v993_v55 }
 0x235   : > { %6997 = vst [vmem:[#allocation60_spill] sm:$0xff] %v6022_v37  ;;  %v1208_v42 = vadd.f32 %v1177_v3, %v5719_v56  ;;  %v6041_v32 = vmul.f32 %v3989_v4, %v993_v55  ;;  %v3221_v40 = vmul.f32 -1.442695, %v6027_v19  ;;  %v1856_v16 = vrot.slane %v1738_v59, 1  ;;  %v7030_v37 = vld [vmem:[#allocation26_spill] sm:$0xff] }
 0x236   : > { %v1209_v43 = vadd.f32 %v1178_v46, %v5727_v44  ;;  %6998 = vst [vmem:[#allocation47_spill] sm:$0xff] %v6038_v10  ;;  %v3222_v18 = vmul.f32 -1.442695, %v6030_v34  ;;  %v1857_v61 = vrot.slane %v1739_v30, 1  ;;  %v6049_v56 = vmul.f32 %v3989_v4, %v6015_v8 }
 0x237   : > { %6999 = vst [vmem:[#allocation29_spill] sm:$0xff] %v6041_v32  ;;  %v1445_v27 = vadd.f32 %v5865_v29, %v1208_v42  ;;  %3578 = vpow2.f32 %v3221_v40  ;;  %v7001_v15 = vrot.slane %v5839_v26, 1  ;;  %v6057_v24 = vmul.f32 %v3992_v5, %v993_v55  ;;  %v3571_v29 = vpop.eup %3570 }
 0x238   : > { %v1446_v47 = vadd.f32 %v5872_v39, %v1209_v43  ;;  %7000 = vst [vmem:[#allocation24_spill] sm:$0xff] %v6049_v56  ;;  %v1858_v58 = vsel %vm1310_vm3, %v1856_v16, %v1857_v61  ;;  %3580 = vpow2.f32 %v3222_v18  ;;  %v6063_v6 = vmul.f32 %v3992_v5, %v6015_v8  ;;  %v7006_v18 = vld [vmem:[#allocation43_spill] sm:$0xff] }
 0x239   : > { %v1860_v41 = vsel %vm1310_vm3, %v1857_v61, %v7001_v15  ;;  %7002 = vst [vmem:[#allocation42_spill] sm:$0xff] %v6057_v24  ;;  %v1689_v39 = vadd.f32 %v5738_v52, %v1445_v27  ;;  %v3573_v3 = vpop.eup %3572  ;;  %v6066_v26 = vmul.f32 %v3571_v29, %v5827_v31  ;;  %v2455_v46 = vmul.f32 %v5818_v36, %v993_v55 }
 0x23a   : > { %v1690_v49 = vadd.f32 %v5747_v9, %v1446_v47  ;;  %7003 = vst [vmem:[#allocation23_spill] sm:$0xff] %v6063_v6  ;;  %v2456_v59 = vmul.f32 %v5818_v36, %v6015_v8  ;;  %3582 = vrcp.f32 %v736_v21  ;;  %v3575_v30 = vpop.eup %3574  ;;  %v6072_v52 = vmul.f32 %v3573_v3, %v5830_v60  ;;  %v7007_v21 = vld [vmem:[#allocation58_spill] sm:$0xff]  ;;  %v7008_v60 = vld [vmem:[#allocation59_spill] sm:$0xff] }
 0x23b   : > { %7004 = vst [vmem:[#allocation36_spill] sm:$0xff] %v6066_v26  ;;  %v1925_v9 = vadd.f32 %v1858_v58, %v1689_v39  ;;  %3584 = vrcp.f32 %v752_v7  ;;  %2936 = vst.msk [vmem:[%s4638_s11 + $0xc0] sm:$0xff] %vm2911_vm5, %v6066_v26  ;;  %v2573_v31 = vrot.slane %v2455_v46, 2  ;;  %v6079_v16 = vmul.f32 %v3575_v30, %v7006_v18  ;;  %v7010_v30 = vld [vmem:[#allocation57_spill] sm:$0xff] }
 0x23c   : > { %7005 = vst [vmem:[#allocation61_spill] sm:$0xff] %v6072_v52  ;;  %v1926_v42 = vadd.f32 %v1860_v41, %v1690_v49  ;;  %v2574_v40 = vrot.slane %v2456_v59, 2  ;;  %2937 = vst.msk [vmem:[%s4638_s11 + $0xc8] sm:$0xff] %vm2911_vm5, %v6072_v52  ;;  %v1045_v7 = vmul.f32 %v6866_v0, %v5699_v23  ;;  %v6089_v47 = vmul.f32 %v6866_v0, %v993_v55  ;;  %v7026_v52 = vld [vmem:[#allocation17_spill] sm:$0xff] }
 0x23d   : > { %v2162_v61 = vadd.f32 %v7007_v21, %v1925_v9  ;;  %v3577_v58 = vpop.eup %3576  ;;  %v6662_v41 = vrot.slane %v6079_v16, 7  ;;  %v6095_v29 = vmul.f32 %v6866_v0, %v6015_v8  ;;  %v1111_v39 = vmul.f32 %v3998_v12, %v993_v55 }
 0x23e   : > { %v2163_v27 = vadd.f32 %v7008_v60, %v1926_v42  ;;  %v2575_v15 = vsel %vm2027_vm4, %v2573_v31, %v2574_v40  ;;  %v7009_v46 = vrot.slane %v5854_v35, 2  ;;  %v849_v9 = vmul.f32 %v3577_v58, %v7010_v30 }
 0x23f   : > { %v2406_v49 = vadd.f32 %v5782_v28, %v2162_v61  ;;  %v1002_v42 = vsel %vm882_vm2, %v6662_v41, 0.0  ;;  %v1112_v31 = vmul.f32 %v3998_v12, %v6015_v8  ;;  %v6109_v18 = vadd.f32 %v1111_v39, %v1044_v50 }
 0x240   : > { %v2407_v3 = vadd.f32 %v5790_v54, %v2163_v27  ;;  %v2577_v59 = vsel %vm2027_vm4, %v2574_v40, %v7009_v46  ;;  %v6112_v55 = vmul.f32 0.0, %v4043_v51  ;;  %v6115_v35 = vmul.f32 %v3983_v62, %v1002_v42 }
 0x241   : > { %7011 = vst [vmem:[#allocation22_spill] sm:$0xff] %v6109_v18  ;;  %v2642_v28 = vadd.f32 %v2575_v15, %v2406_v49  ;;  %v6118_v40 = vmul.f32 %v3986_v63, %v1002_v42  ;;  %v6121_v21 = vmul.f32 %v3995_v11, %v1002_v42  ;;  %v6124_v61 = vmul.f32 %v3989_v4, %v1002_v42  ;;  %v7033_v18 = vld [vmem:[#allocation52_spill] sm:$0xff] }
 0x242   : > { %v2643_v54 = vadd.f32 %v2577_v59, %v2407_v3  ;;  %v6127_v50 = vmul.f32 %v3992_v5, %v1002_v42  ;;  %v6130_v60 = vmul.f32 %v5818_v36, %v1002_v42  ;;  %v6141_v39 = vmul.f32 %v3983_v62, %v5702_v38 }
 0x243   : > { %v6133_v27 = vadd.f32 %v5439_v1, %v2642_v28  ;;  %v6150_v38 = vadd.f32 %v1112_v31, %v1045_v7  ;;  %v6154_v49 = vmul.f32 %v3983_v62, %v5699_v23  ;;  %v6158_v46 = vmul.f32 %v3983_v62, %v6015_v8 }
 0x244   : > { %v6136_v58 = vadd.f32 %v5439_v1, %v2643_v54  ;;  %7012 = vst [vmem:[#allocation9_spill] sm:$0xff] %v6141_v39  ;;  %v3579_v30 = vpop.eup %3578  ;;  %v929_v54 = vrot.slane %v849_v9, 7  ;;  %v7031_v39 = vld [vmem:[#allocation53_spill] sm:$0xff] }
 0x245   : > { %v3237_v42 = vmul.f32 -1.442695, %v6133_v27  ;;  %v3581_v43 = vpop.eup %3580  ;;  %v2793_v44 = vadd.f32 1.0, %v3579_v30  ;;  %7013 = vst [vmem:[#allocation69_spill] sm:$0xff] %v6150_v38  ;;  %7014 = vst [vmem:[#allocation71_spill] sm:$0xff] %v6154_v49  ;;  %v7019_v30 = vld [vmem:[#allocation18_spill] sm:$0xff] }
 0x246   : > { %v3238_v1 = vmul.f32 -1.442695, %v6136_v58  ;;  %7015 = vst [vmem:[#allocation68_spill] sm:$0xff] %v6158_v46  ;;  %v2794_v3 = vadd.f32 1.0, %v3581_v43  ;;  %v1010_v15 = vsel %vm882_vm2, %v929_v54, 0.0  ;;  %v7020_v43 = vld [vmem:[#allocation14_spill] sm:$0xff] }
 0x247   : > { %v3583_v59 = vpop.eup %3582  ;;  %3586 = vpow2.f32 %v3237_v42  ;;  %v6163_v7 = vmul.f32 %v3986_v63, %v1010_v15  ;;  %v6166_v31 = vmul.f32 %v3995_v11, %v1010_v15  ;;  %v6169_v23 = vmul.f32 %v3992_v5, %v1010_v15  ;;  %v7032_v38 = vld [vmem:[#allocation56_spill] sm:$0xff] }
 0x248   : > { %v3585_v9 = vpop.eup %3584  ;;  %3588 = vrcp.f32 %v2793_v44  ;;  %v832_v41 = vmul.f32 %v3583_v59, %v7019_v30  ;;  %v6177_v26 = vmul.f32 %v5818_v36, %v1010_v15  ;;  %v6188_v30 = vmul.f32 0.0, %v3995_v11 }
 0x249   : > { %7016 = vst [vmem:[#allocation63_spill] sm:$0xff] %v6163_v7  ;;  %7017 = vst [vmem:[#allocation64_spill] sm:$0xff] %v6166_v31  ;;  %3590 = vrcp.f32 %v2794_v3  ;;  %v848_v42 = vmul.f32 %v3585_v9, %v7020_v43  ;;  %v6184_v9 = vmul.f32 %v3986_v63, %v6015_v8  ;;  %v7024_v15 = vrot.slane %v6079_v16, 7  ;;  %v7027_v3 = vld [vmem:[#allocation48_spill] sm:$0xff]  ;;  %v7029_v7 = vld [vmem:[#allocation49_spill] sm:$0xff] }
 0x24a   : > { %7018 = vst [vmem:[#allocation25_spill] sm:$0xff] %v6169_v23  ;;  %3592 = vpow2.f32 %v3238_v1  ;;  %7021 = vst [vmem:[#allocation62_spill] sm:$0xff] %v6177_v26  ;;  %v904_v6 = vrot.slane %v832_v41, 7  ;;  %v7025_v1 = vld [vmem:[#allocation45_spill] sm:$0xff] }
 0x24b   : > { %v928_v32 = vrot.slane %v848_v42, 7  ;;  %7022 = vst [vmem:[#allocation65_spill] sm:$0xff] %v6184_v9  ;;  %7023 = vst [vmem:[#allocation70_spill] sm:$0xff] %v6188_v30  ;;  %v7028_v23 = vld [vmem:[#allocation41_spill] sm:$0xff] }
 0x24c   : > { %v6193_v43 = vsel %vm882_vm2, %v904_v6, %v7024_v15  ;;  %v6196_v41 = vsel %vm882_vm2, 0.0, %v904_v6 }
 0x24d   : > { %v6199_v42 = vsel %vm882_vm2, %v928_v32, %v929_v54  ;;  %v6202_v24 = vsel %vm882_vm2, 0.0, %v928_v32  ;;  %v1032_v8 = vmul.f32 %v6866_v0, %v6196_v41  ;;  %v1033_v44 = vmul.f32 %v6866_v0, %v6193_v43 }
 0x24e   : > { %v1097_v16 = vmul.f32 %v3998_v12, %v6196_v41  ;;  %v1098_v15 = vmul.f32 %v3998_v12, %v6193_v43  ;;  %v1163_v6 = vmul.f32 %v4043_v51, %v6196_v41  ;;  %v1164_v54 = vmul.f32 %v4043_v51, %v6193_v43 }
 0x24f   : > { %v1240_v32 = vmul.f32 %v3983_v62, %v6196_v41  ;;  %v1241_v28 = vmul.f32 %v3983_v62, %v6193_v43  ;;  %v1131_v26 = vadd.f32 %v7027_v3, %v1032_v8  ;;  %v1132_v31 = vadd.f32 %v7028_v23, %v1033_v44 }
 0x250   : > { %v1129_v0 = vadd.f32 %v1097_v16, %v7025_v1  ;;  %v1130_v59 = vadd.f32 %v1098_v15, %v7026_v52  ;;  %v1194_v10 = vadd.f32 %v1163_v6, %v7029_v7  ;;  %v1195_v56 = vadd.f32 %v1164_v54, %v5920_v14 }
 0x251   : > { %v1348_v30 = vrot.slane %v1240_v32, 1  ;;  %v1349_v9 = vrot.slane %v1241_v28, 1  ;;  %v1198_v62 = vadd.f32 %v7032_v38, %v1131_v26  ;;  %v1199_v1 = vadd.f32 %v7033_v18, %v1132_v31 }
 0x252   : > { %v1196_v46 = vadd.f32 %v7030_v37, %v1129_v0  ;;  %v1197_v49 = vadd.f32 %v7031_v39, %v1130_v59  ;;  %v7034_v3 = vrot.slane %v6115_v35, 1  ;;  %v1431_v7 = vadd.f32 %v5998_v13, %v1194_v10 }
 0x253   : > { %v1350_v52 = vsel %vm1310_vm3, %v1348_v30, %v1349_v9  ;;  %v1432_v14 = vadd.f32 %v6005_v25, %v1195_v56  ;;  %v1476_v38 = vmul.f32 %v3986_v63, %v6196_v41  ;;  %v1477_v35 = vmul.f32 %v3986_v63, %v6193_v43 }
 0x254   : > { %v1352_v23 = vsel %vm1310_vm3, %v1349_v9, %v7034_v3  ;;  %v3587_v44 = vpop.eup %3586  ;;  %v1433_v28 = vadd.f32 %v5923_v57, %v1196_v46  ;;  %v1434_v37 = vadd.f32 %v5930_v45, %v1197_v49  ;;  %v1435_v39 = vadd.f32 %v1350_v52, %v1198_v62  ;;  %v7035_v45 = vld [vmem:[#allocation30_spill] sm:$0xff]  ;;  %v7036_v49 = vld [vmem:[#allocation31_spill] sm:$0xff] }
 0x255   : > { %v1436_v59 = vadd.f32 %v1352_v23, %v1199_v1  ;;  %v3589_v26 = vpop.eup %3588  ;;  %v2809_v18 = vadd.f32 1.0, %v3587_v44  ;;  %v1675_v13 = vadd.f32 %v5933_v17, %v1431_v7  ;;  %v1676_v57 = vadd.f32 %v5956_v20, %v1432_v14  ;;  %v7038_v3 = vld [vmem:[#allocation50_spill] sm:$0xff]  ;;  %v7039_v7 = vld [vmem:[#allocation51_spill] sm:$0xff]  ;;  %v7040_v44 = vld [vmem:[#allocation32_spill] sm:$0xff] }
 0x256   : > { %v3591_v25 = vpop.eup %3590  ;;  %v2889_v10 = vmul.f32 %v3589_v26, %v6027_v19  ;;  %v1679_v56 = vadd.f32 %v7035_v45, %v1435_v39  ;;  %v1586_v30 = vrot.slane %v1476_v38, 1  ;;  %v1587_v8 = vrot.slane %v1477_v35, 1 }
 0x257   : > { %v1680_v46 = vadd.f32 %v7036_v49, %v1436_v59  ;;  %v3593_v31 = vpop.eup %3592  ;;  %v2890_v9 = vmul.f32 %v3591_v25, %v6030_v34  ;;  %3594 = vrcp.f32 %v2809_v18  ;;  %v1717_v19 = vmul.f32 %v3995_v11, %v6196_v41  ;;  %v7041_v59 = vld [vmem:[#allocation33_spill] sm:$0xff] }
 0x258   : > { %2922 = vst.msk [vmem:[%s4638_s11 + $0x50] sm:$0xff] %vm2911_vm5, %v2889_v10  ;;  %v2963_v17 = vsel %vm2911_vm5, %v2889_v10, 0.0  ;;  %v2810_v16 = vadd.f32 1.0, %v3593_v31  ;;  %v1718_v20 = vmul.f32 %v3995_v11, %v6193_v43  ;;  %v1588_v6 = vsel %vm1310_vm3, %v1586_v30, %v1587_v8 }
 0x259   : > { %2923 = vst.msk [vmem:[%s4638_s11 + $0x58] sm:$0xff] %vm2911_vm5, %v2890_v9  ;;  %v2964_v15 = vadd.f32 %v2963_v17, %v5978_v22  ;;  %v2965_v34 = vsel %vm2911_vm5, %v2890_v9, 0.0  ;;  %v7037_v54 = vrot.slane %v6118_v40, 1  ;;  %v1677_v0 = vadd.f32 %v1588_v6, %v1433_v28  ;;  %v7044_v17 = vld [vmem:[#allocation46_spill] sm:$0xff] }
 0x25a   : > { %3596 = vrcp.f32 %v2810_v16  ;;  %v1821_v1 = vrot.slane %v1717_v19, 1  ;;  %v1822_v52 = vrot.slane %v1718_v20, 1  ;;  %v1915_v23 = vadd.f32 %v7038_v3, %v1679_v56 }
 0x25b   : > { %v1590_v32 = vsel %vm1310_vm3, %v1587_v8, %v7037_v54  ;;  %v1916_v14 = vadd.f32 %v7039_v7, %v1680_v46  ;;  %v1957_v22 = vmul.f32 %v3989_v4, %v6196_v41  ;;  %v1913_v39 = vadd.f32 %v7040_v44, %v1677_v0  ;;  %v7047_v0 = vld [vmem:[#allocation34_spill] sm:$0xff] }
 0x25c   : > { %v1678_v62 = vadd.f32 %v1590_v32, %v1434_v37  ;;  %v1958_v40 = vmul.f32 %v3989_v4, %v6193_v43  ;;  %v2193_v28 = vmul.f32 %v3992_v5, %v6196_v41  ;;  %v1823_v37 = vsel %vm1310_vm3, %v1821_v1, %v1822_v52  ;;  %v7048_v1 = vld [vmem:[#allocation35_spill] sm:$0xff] }
 0x25d   : > { %v7042_v18 = vrot.slane %v6121_v21, 1  ;;  %v2065_v35 = vrot.slane %v1957_v22, 2  ;;  %v2194_v25 = vmul.f32 %v3992_v5, %v6193_v43  ;;  %v1911_v10 = vadd.f32 %v1823_v37, %v1675_v13  ;;  %v7045_v13 = vld [vmem:[#allocation37_spill] sm:$0xff]  ;;  %v7050_v22 = vld [vmem:[#allocation39_spill] sm:$0xff] }
 0x25e   : > { %v1914_v26 = vadd.f32 %v7041_v59, %v1678_v62  ;;  %v2066_v56 = vrot.slane %v1958_v40, 2  ;;  %v2150_v49 = vadd.f32 %v5966_v2, %v1913_v39  ;;  %v2303_v46 = vrot.slane %v2193_v28, 2  ;;  %v7052_v28 = vld [vmem:[#allocation55_spill] sm:$0xff] }
 0x25f   : > { %v1825_v38 = vsel %vm1310_vm3, %v1822_v52, %v7042_v18  ;;  %v2304_v31 = vrot.slane %v2194_v25, 2  ;;  %v2434_v9 = vmul.f32 %v5818_v36, %v6196_v41  ;;  %v7043_v30 = vrot.slane %v6124_v61, 2  ;;  %v6313_v37 = vld [vmem:[%s6593_s4] ss:$0 sm:$0xff] }
 0x260   : > { %v1912_v45 = vadd.f32 %v1825_v38, %v1676_v57  ;;  %v2151_v4 = vadd.f32 %v5971_v53, %v1914_v26  ;;  %v2067_v21 = vsel %vm2027_vm4, %v2065_v35, %v2066_v56  ;;  %v2148_v16 = vadd.f32 %v7044_v17, %v1911_v10  ;;  %v7051_v26 = vld [vmem:[#allocation54_spill] sm:$0xff] }
 0x261   : > { %v2069_v8 = vsel %vm2027_vm4, %v2066_v56, %v7043_v30  ;;  %v2152_v19 = vadd.f32 %v2067_v21, %v1915_v23  ;;  %v2305_v2 = vsel %vm2027_vm4, %v2303_v46, %v2304_v31  ;;  %v7046_v53 = vrot.slane %v6127_v50, 2 }
 0x262   : > { %v2149_v57 = vadd.f32 %v7045_v13, %v1912_v45  ;;  %v2153_v20 = vadd.f32 %v2069_v8, %v1916_v14  ;;  %v2392_v41 = vadd.f32 %v5981_v33, %v2148_v16  ;;  %v2394_v32 = vadd.f32 %v2305_v2, %v2150_v49  ;;  %v7049_v14 = vld [vmem:[#allocation38_spill] sm:$0xff] }
 0x263   : > { %v2307_v6 = vsel %vm2027_vm4, %v2304_v31, %v7046_v53  ;;  %v2396_v62 = vadd.f32 %v7047_v0, %v2152_v19  ;;  %v2435_v3 = vmul.f32 %v5818_v36, %v6193_v43  ;;  %v2538_v23 = vrot.slane %v2434_v9, 2  ;;  %v7056_v53 = vld [vmem:[#allocation71_spill] sm:$0xff] }
 0x264   : > { %v2393_v54 = vadd.f32 %v5989_v48, %v2149_v57  ;;  %v2395_v61 = vadd.f32 %v2307_v6, %v2151_v4  ;;  %v2397_v52 = vadd.f32 %v7048_v1, %v2153_v20  ;;  %v3595_v7 = vpop.eup %3594  ;;  %v2630_v50 = vadd.f32 %v7049_v14, %v2394_v32  ;;  %v7054_v57 = vld [vmem:[#allocation22_spill] sm:$0xff]  ;;  %v7055_v20 = vld [vmem:[#allocation69_spill] sm:$0xff]  ;;  %v7060_v32 = vld [vmem:[#allocation27_spill] sm:$0xff] }
 0x265   : > { %v6301_v39 = vadd.f32 %v2965_v34, %v2964_v15  ;;  %v1113_v33 = vmul.f32 %v3998_v12, %v6202_v24  ;;  %v6306_v48 = vmul.f32 %v3595_v7, %v6133_v27  ;;  %v2539_v59 = vrot.slane %v2435_v3, 2  ;;  %v7067_v7 = vld [vmem:[#allocation12_spill] sm:$0xff] }
 0x266   : > { %v2631_v44 = vadd.f32 %v7050_v22, %v2395_v61  ;;  %v2632_v40 = vadd.f32 %v7051_v26, %v2396_v62  ;;  %v2633_v43 = vadd.f32 %v7052_v28, %v2397_v52  ;;  %v6316_v18 = vadd.f32 %v6313_v37, %v2630_v50  ;;  %v7063_v62 = vld [vmem:[#allocation68_spill] sm:$0xff] }
 0x267   : > { %v1114_v27 = vmul.f32 %v3998_v12, %v6199_v42  ;;  %v1145_v34 = vadd.f32 %v1113_v33, %v6089_v47  ;;  %v3597_v38 = vpop.eup %3596  ;;  %2938 = vst.msk [vmem:[%s4638_s11 + $0xd0] sm:$0xff] %vm2911_vm5, %v6306_v48  ;;  %v2540_v35 = vsel %vm2027_vm4, %v2538_v23, %v2539_v59  ;;  %v7053_v25 = vrot.slane %v6130_v60, 2  ;;  %v7065_v52 = vld [vmem:[#allocation60_spill] sm:$0xff] }
 0x268   : > { %v6319_v15 = vadd.f32 %v6313_v37, %v2631_v44  ;;  %v6332_v45 = vadd.f32 %v6313_v37, %v2632_v40  ;;  %v6335_v56 = vadd.f32 %v6313_v37, %v2633_v43  ;;  %v6338_v12 = vmul.f32 %v3597_v38, %v6136_v58  ;;  %v7070_v43 = vld [vmem:[#allocation65_spill] sm:$0xff] }
 0x269   : > { %v2542_v10 = vsel %vm2027_vm4, %v2539_v59, %v7053_v25  ;;  %v2628_v47 = vadd.f32 %v2540_v35, %v2392_v41  ;;  %v3225_v4 = vmul.f32 -1.442695, %v6316_v18  ;;  %v1146_v9 = vadd.f32 %v1114_v27, %v6095_v29  ;;  %v7058_v41 = vld [vmem:[#allocation9_spill] sm:$0xff]  ;;  %v7071_v35 = vld [vmem:[#allocation70_spill] sm:$0xff] }
 0x26a   : > { %v2629_v49 = vadd.f32 %v2542_v10, %v2393_v54  ;;  %v3226_v46 = vmul.f32 -1.442695, %v6319_v15  ;;  %v3227_v31 = vmul.f32 -1.442695, %v6332_v45  ;;  %v3228_v60 = vmul.f32 -1.442695, %v6335_v56 }
 0x26b   : > { %2939 = vst.msk [vmem:[%s4638_s11 + $0xd8] sm:$0xff] %vm2911_vm5, %v6338_v12  ;;  %v6349_v21 = vadd.f32 %v6313_v37, %v2628_v47  ;;  %3598 = vpow2.f32 %v3225_v4  ;;  %v1179_v30 = vmul.f32 %v4043_v51, %v6202_v24  ;;  %v1180_v8 = vmul.f32 %v4043_v51, %v6199_v42  ;;  %v7072_v10 = vld [vmem:[#allocation19_spill] sm:$0xff] }
 0x26c   : > { %v6352_v58 = vadd.f32 %v6313_v37, %v2629_v49  ;;  %3600 = vpow2.f32 %v3226_v46  ;;  %v1212_v17 = vadd.f32 %v6112_v55, %v1145_v34  ;;  %v1213_v29 = vadd.f32 %v6112_v55, %v1146_v9  ;;  %v7073_v49 = vld [vmem:[#allocation24_spill] sm:$0xff]  ;;  %v7074_v46 = vld [vmem:[#allocation47_spill] sm:$0xff]  ;;  %v7076_v9 = vld [vmem:[#allocation13_spill] sm:$0xff] }
 0x26d   : > { %v3223_v16 = vmul.f32 -1.442695, %v6349_v21  ;;  %3602 = vpow2.f32 %v3227_v31  ;;  %v1210_v19 = vadd.f32 %v1179_v30, %v7054_v57  ;;  %v1211_v2 = vadd.f32 %v1180_v8, %v7055_v20 }
 0x26e   : > { %v3224_v13 = vmul.f32 -1.442695, %v6352_v58  ;;  %3604 = vpow2.f32 %v3228_v60  ;;  %v7057_v6 = vrot.slane %v7056_v53, 1  ;;  %v7059_v54 = vrot.slane %v7058_v41, 1  ;;  %v7080_v53 = vld [vmem:[#allocation40_spill] sm:$0xff] }
 0x26f   : > { %v7061_v61 = vrot.slane %v7060_v32, 1  ;;  %3606 = vpow2.f32 %v3223_v16  ;;  %v7064_v1 = vrot.slane %v7063_v62, 1  ;;  %v7066_v3 = vrot.slane %v7065_v52, 1  ;;  %v7084_v62 = vld [vmem:[#allocation64_spill] sm:$0xff] }
 0x270   : > { %v1380_v51 = vsel %vm1310_vm3, %v7059_v54, %v7057_v6  ;;  %v7062_v55 = vmov %v7057_v6  ;;  %v7068_v14 = vrot.slane %v7067_v7, 1  ;;  %3608 = vpow2.f32 %v3224_v13  ;;  %v7082_v54 = vld [vmem:[#allocation8_spill] sm:$0xff]  ;;  %v7086_v7 = vld [vmem:[#allocation29_spill] sm:$0xff] }
 0x271   : > { %v1382_v0 = vsel %vm1310_vm3, %v7062_v55, %v7061_v61  ;;  %v1385_v23 = vsel %vm1310_vm3, %v7066_v3, %v7064_v1  ;;  %v7069_v50 = vmov %v7064_v1  ;;  %v1447_v44 = vadd.f32 %v1380_v51, %v1210_v19  ;;  %v7078_v19 = vld [vmem:[#allocation63_spill] sm:$0xff] }
 0x272   : > { %v1387_v22 = vsel %vm1310_vm3, %v7069_v50, %v7068_v14  ;;  %v1448_v33 = vadd.f32 %v1382_v0, %v1211_v2  ;;  %v1449_v59 = vadd.f32 %v1385_v23, %v1212_v17  ;;  %v1500_v40 = vmul.f32 %v3986_v63, %v6202_v24 }
 0x273   : > { %v1450_v26 = vadd.f32 %v1387_v22, %v1213_v29  ;;  %v1501_v28 = vmul.f32 %v3986_v63, %v6199_v42  ;;  %v1622_v27 = vrot.slane %v7070_v43, 1  ;;  %v1741_v34 = vmul.f32 %v3995_v11, %v6202_v24  ;;  %v7088_v22 = vld [vmem:[#allocation44_spill] sm:$0xff] }
 0x274   : > { %v1742_v38 = vmul.f32 %v3995_v11, %v6199_v42  ;;  %v1866_v25 = vrot.slane %v7071_v35, 1  ;;  %v2096_v47 = vrot.slane %v7072_v10, 2  ;;  %v2101_v4 = vrot.slane %v7073_v49, 2  ;;  %v7090_v10 = vld [vmem:[#allocation23_spill] sm:$0xff] }
 0x275   : > { %v7075_v31 = vrot.slane %v7074_v46, 1  ;;  %v7077_v63 = vrot.slane %v7076_v9, 1  ;;  %v1626_v8 = vrot.slane %v1500_v40, 1  ;;  %v1627_v17 = vrot.slane %v1501_v28, 1 }
 0x276   : > { %v1861_v13 = vrot.slane %v1741_v34, 1  ;;  %v1862_v11 = vrot.slane %v1742_v38, 1  ;;  %v7079_v20 = vrot.slane %v7078_v19, 1  ;;  %v7081_v6 = vrot.slane %v7080_v53, 2 }
 0x277   : > { %v1623_v60 = vsel %vm1310_vm3, %v7075_v31, %v1622_v27  ;;  %v1625_v30 = vsel %vm1310_vm3, %v1622_v27, %v7077_v63  ;;  %v1628_v57 = vsel %vm1310_vm3, %v1626_v8, %v1627_v17  ;;  %v7083_v51 = vrot.slane %v7082_v54, 2  ;;  %v7095_v54 = vld [vmem:[#allocation25_spill] sm:$0xff] }
 0x278   : > { %v1691_v29 = vadd.f32 %v1623_v60, %v1447_v44  ;;  %v1692_v16 = vadd.f32 %v1625_v30, %v1448_v33  ;;  %v1630_v2 = vsel %vm1310_vm3, %v1627_v17, %v7079_v20  ;;  %v2097_v41 = vsel %vm2027_vm4, %v7081_v6, %v2096_v47  ;;  %v3599_v40 = vpop.eup %3598  ;;  %v7093_v17 = vld [vmem:[#allocation28_spill] sm:$0xff] }
 0x279   : > { %v2099_v32 = vsel %vm2027_vm4, %v2096_v47, %v7083_v51  ;;  %v1693_v61 = vadd.f32 %v1628_v57, %v1449_v59  ;;  %v1694_v55 = vadd.f32 %v1630_v2, %v1450_v26  ;;  %v1863_v0 = vsel %vm1310_vm3, %v1861_v13, %v1862_v11  ;;  %v3601_v27 = vpop.eup %3600 }
 0x27a   : > { %v7085_v1 = vrot.slane %v7084_v62, 1  ;;  %v1927_v3 = vadd.f32 %v1863_v0, %v1691_v29  ;;  %v7087_v14 = vrot.slane %v7086_v7, 2  ;;  %v7089_v44 = vrot.slane %v7088_v22, 2  ;;  %v3603_v49 = vpop.eup %3602 }
 0x27b   : > { %v1929_v28 = vadd.f32 %v1866_v25, %v1693_v61  ;;  %v1930_v59 = vadd.f32 %v1866_v25, %v1694_v55  ;;  %v2217_v26 = vmul.f32 %v3992_v5, %v6202_v24  ;;  %v2218_v43 = vmul.f32 %v3992_v5, %v6199_v42  ;;  %v3605_v9 = vpop.eup %3604  ;;  %v7091_v25 = vld [vmem:[#allocation42_spill] sm:$0xff] }
 0x27c   : > { %v1865_v52 = vsel %vm1310_vm3, %v1862_v11, %v7085_v1  ;;  %v2102_v50 = vsel %vm2027_vm4, %v7087_v14, %v2101_v4  ;;  %v2104_v33 = vsel %vm2027_vm4, %v2101_v4, %v7089_v44  ;;  %v2797_v34 = vadd.f32 1.0, %v3599_v40 }
 0x27d   : > { %v1928_v23 = vadd.f32 %v1865_v52, %v1692_v16  ;;  %v2164_v38 = vadd.f32 %v2097_v41, %v1927_v3  ;;  %v2339_v47 = vrot.slane %v7090_v10, 2  ;;  %v2798_v46 = vadd.f32 1.0, %v3601_v27  ;;  %v3607_v16 = vpop.eup %3606  ;;  %v7097_v52 = vld [vmem:[#allocation62_spill] sm:$0xff] }
 0x27e   : > { %v2166_v31 = vadd.f32 %v2102_v50, %v1929_v28  ;;  %v2167_v60 = vadd.f32 %v2104_v33, %v1930_v59  ;;  %v2343_v4 = vrot.slane %v2217_v26, 2  ;;  %v2799_v63 = vadd.f32 1.0, %v3603_v49  ;;  %v3609_v19 = vpop.eup %3608 }
 0x27f   : > { %v2165_v35 = vadd.f32 %v2099_v32, %v1928_v23  ;;  %3610 = vrcp.f32 %v2797_v34  ;;  %v7092_v30 = vrot.slane %v7091_v25, 2  ;;  %v7094_v5 = vrot.slane %v7093_v17, 2 }
 0x280   : > { %v2800_v13 = vadd.f32 1.0, %v3605_v9  ;;  %3612 = vrcp.f32 %v2798_v46  ;;  %v2344_v11 = vrot.slane %v2218_v43, 2  ;;  %v2795_v20 = vadd.f32 1.0, %v3607_v16 }
 0x281   : > { %v2340_v8 = vsel %vm2027_vm4, %v7092_v30, %v2339_v47  ;;  %v2342_v29 = vsel %vm2027_vm4, %v2339_v47, %v7094_v5  ;;  %3614 = vrcp.f32 %v2799_v63  ;;  %v2458_v53 = vmul.f32 %v5818_v36, %v6202_v24 }
 0x282   : > { %v2408_v57 = vadd.f32 %v2340_v8, %v2164_v38  ;;  %v2409_v2 = vadd.f32 %v2342_v29, %v2165_v35  ;;  %v2796_v6 = vadd.f32 1.0, %v3609_v19  ;;  %3616 = vrcp.f32 %v2800_v13 }
 0x283   : > { %v2345_v41 = vsel %vm2027_vm4, %v2343_v4, %v2344_v11  ;;  %3618 = vrcp.f32 %v2795_v20  ;;  %v7096_v51 = vrot.slane %v7095_v54, 2  ;;  %v2459_v55 = vmul.f32 %v5818_v36, %v6199_v42  ;;  %v7098_v20 = vld [vmem:[#allocation20_spill] sm:$0xff] }
 0x284   : > { %v2410_v61 = vadd.f32 %v2345_v41, %v2166_v31  ;;  %3620 = vrcp.f32 %v2796_v6  ;;  %v2461_v62 = vmul.f32 0.0, %v5818_v36  ;;  %v2578_v1 = vrot.slane %v2458_v53, 2  ;;  %v7099_v41 = vld [vmem:[#allocation11_spill] sm:$0xff] }
 0x285   : > { %v2347_v32 = vsel %vm2027_vm4, %v2344_v11, %v7096_v51  ;;  %v2581_v24 = vrot.slane %v7097_v52, 2  ;;  %v2579_v3 = vrot.slane %v2459_v55, 2  ;;  %v2981_v54 = vsel %vm2911_vm5, %v7099_v41, 0.0  ;;  %v7102_v52 = vld [vmem:[#allocation10_spill] sm:$0xff] }
 0x286   : > { %v2411_v0 = vadd.f32 %v2347_v32, %v2167_v60  ;;  %v2583_v23 = vrot.slane %v2461_v62, 2  ;;  %v7100_v32 = vld [vmem:[#allocation15_spill] sm:$0xff] }
 0x287   : > { %v2580_v7 = vsel %vm2027_vm4, %v2578_v1, %v2579_v3  ;;  %v2582_v14 = vsel %vm2027_vm4, %v2579_v3, %v2581_v24  ;;  %v2987_v24 = vsel %vm2911_vm5, %v7102_v52, 0.0 }
 0x288   : > { %v2644_v50 = vadd.f32 %v2580_v7, %v2408_v57  ;;  %v2645_v22 = vadd.f32 %v2582_v14, %v2409_v2  ;;  %v2646_v44 = vadd.f32 %v2583_v23, %v2410_v61  ;;  %v2647_v33 = vadd.f32 %v2583_v23, %v2411_v0  ;;  %v7101_v0 = vld [vmem:[#allocation21_spill] sm:$0xff]  ;;  %v7103_v23 = vld [vmem:[#allocation16_spill] sm:$0xff] }
 0x289   : > { %v2979_v2 = vsel %vm2911_vm5, %v7098_v20, 0.0  ;;  %v2983_v61 = vsel %vm2911_vm5, %v7100_v32, 0.0  ;;  %v2985_v62 = vsel %vm2911_vm5, %v7101_v0, 0.0  ;;  %v2989_v7 = vsel %vm2911_vm5, %v7103_v23, 0.0 }
 0x28a   : > { %v6446_v40 = vadd.f32 %v6313_v37, %v2644_v50  ;;  %v6449_v42 = vadd.f32 %v6313_v37, %v2645_v22  ;;  %v6452_v36 = vadd.f32 %v6313_v37, %v2646_v44  ;;  %v6455_v28 = vadd.f32 %v6313_v37, %v2647_v33  ;;  %v7104_v22 = vld [vmem:[#allocation36_spill] sm:$0xff] }
 0x28b   : > { %v2991_v44 = vsel %vm2911_vm5, %v7104_v22, 0.0 }
 0x28c   : > { %v3611_v59 = vpop.eup %3610  ;;  %v3239_v26 = vmul.f32 -1.442695, %v6446_v40  ;;  %v3240_v43 = vmul.f32 -1.442695, %v6449_v42  ;;  %v3241_v27 = vmul.f32 -1.442695, %v6452_v36 }
 0x28d   : > { %v3613_v34 = vpop.eup %3612  ;;  %v2893_v38 = vmul.f32 %v3611_v59, %v6316_v18  ;;  %v3242_v35 = vmul.f32 -1.442695, %v6455_v28 }
 0x28e   : > { %v3615_v10 = vpop.eup %3614  ;;  %v2894_v47 = vmul.f32 %v3613_v34, %v6319_v15  ;;  %3622 = vpow2.f32 %v3239_v26  ;;  %v7105_v34 = vld [vmem:[#allocation61_spill] sm:$0xff] }
 0x28f   : > { %v3617_v37 = vpop.eup %3616  ;;  %v2895_v49 = vmul.f32 %v3615_v10, %v6332_v45  ;;  %2926 = vst.msk [vmem:[%s4638_s11 + $0x70] sm:$0xff] %vm2911_vm5, %v2893_v38  ;;  %3624 = vpow2.f32 %v3240_v43 }
 0x290   : > { %v3619_v46 = vpop.eup %3618  ;;  %v2896_v31 = vmul.f32 %v3617_v37, %v6335_v56  ;;  %2927 = vst.msk [vmem:[%s4638_s11 + $0x78] sm:$0xff] %vm2911_vm5, %v2894_v47  ;;  %3626 = vpow2.f32 %v3241_v27  ;;  %v2973_v25 = vsel %vm2911_vm5, %v2894_v47, 0.0  ;;  %v2997_v37 = vsel %vm2911_vm5, %v6338_v12, 0.0 }
 0x291   : > { %v3621_v18 = vpop.eup %3620  ;;  %v2891_v60 = vmul.f32 %v3619_v46, %v6349_v21  ;;  %2928 = vst.msk [vmem:[%s4638_s11 + $0x80] sm:$0xff] %vm2911_vm5, %v2895_v49  ;;  %3628 = vpow2.f32 %v3242_v35  ;;  %v2971_v21 = vsel %vm2911_vm5, %v2893_v38, 0.0  ;;  %v2975_v8 = vsel %vm2911_vm5, %v2895_v49, 0.0 }
 0x292   : > { %v2892_v15 = vmul.f32 %v3621_v18, %v6352_v58  ;;  %2929 = vst.msk [vmem:[%s4638_s11 + $0x88] sm:$0xff] %vm2911_vm5, %v2896_v31  ;;  %v2977_v11 = vsel %vm2911_vm5, %v2896_v31, 0.0  ;;  %v2993_v38 = vsel %vm2911_vm5, %v7105_v34, 0.0 }
 0x293   : > { %2924 = vst.msk [vmem:[%s4638_s11 + $0x60] sm:$0xff] %vm2911_vm5, %v2891_v60  ;;  %v2967_v45 = vsel %vm2911_vm5, %v2891_v60, 0.0 }
 0x294   : > { %2925 = vst.msk [vmem:[%s4638_s11 + $0x68] sm:$0xff] %vm2911_vm5, %v2892_v15  ;;  %v2968_v56 = vadd.f32 %v2967_v45, %v6301_v39  ;;  %v2969_v4 = vsel %vm2911_vm5, %v2892_v15, 0.0 }
 0x296   : > { %v2970_v9 = vadd.f32 %v2969_v4, %v2968_v56 }
 0x298   : > { %v2972_v63 = vadd.f32 %v2971_v21, %v2970_v9 }
 0x29a   : > { %v2974_v30 = vadd.f32 %v2973_v25, %v2972_v63 }
 0x29b   : > { %v3623_v58 = vpop.eup %3622 }
 0x29c   : > { %v3625_v17 = vpop.eup %3624  ;;  %v2976_v5 = vadd.f32 %v2975_v8, %v2974_v30  ;;  %v2811_v29 = vadd.f32 1.0, %v3623_v58 }
 0x29d   : > { %v3627_v16 = vpop.eup %3626  ;;  %v2812_v13 = vadd.f32 1.0, %v3625_v17 }
 0x29e   : > { %v3629_v39 = vpop.eup %3628  ;;  %v2813_v57 = vadd.f32 1.0, %v3627_v16  ;;  %3630 = vrcp.f32 %v2811_v29  ;;  %v2978_v19 = vadd.f32 %v2977_v11, %v2976_v5 }
 0x29f   : > { %v2814_v53 = vadd.f32 1.0, %v3629_v39  ;;  %3632 = vrcp.f32 %v2812_v13 }
 0x2a0   : > { %3634 = vrcp.f32 %v2813_v57  ;;  %v2980_v6 = vadd.f32 %v2979_v2, %v2978_v19 }
 0x2a1   : > { %3636 = vrcp.f32 %v2814_v53 }
 0x2a2   : > { %v2982_v51 = vadd.f32 %v2981_v54, %v2980_v6 }
 0x2a4   : > { %v2984_v55 = vadd.f32 %v2983_v61, %v2982_v51 }
 0x2a6   : > { %v2986_v1 = vadd.f32 %v2985_v62, %v2984_v55 }
 0x2a8   : > { %v2988_v3 = vadd.f32 %v2987_v24, %v2986_v1 }
 0x2aa   : > { %v2990_v14 = vadd.f32 %v2989_v7, %v2988_v3 }
 0x2ab   : > { %v3631_v50 = vpop.eup %3630 }
 0x2ac   : > { %v3633_v33 = vpop.eup %3632  ;;  %v2907_v59 = vmul.f32 %v3631_v50, %v6446_v40  ;;  %v2992_v26 = vadd.f32 %v2991_v44, %v2990_v14 }
 0x2ad   : > { %v3635_v43 = vpop.eup %3634  ;;  %v2908_v27 = vmul.f32 %v3633_v33, %v6449_v42 }
 0x2ae   : > { %v3637_v35 = vpop.eup %3636  ;;  %v2909_v10 = vmul.f32 %v3635_v43, %v6452_v36  ;;  %2940 = vst.msk [vmem:[%s4638_s11 + $0xe0] sm:$0xff] %vm2911_vm5, %v2907_v59  ;;  %v2994_v40 = vadd.f32 %v2993_v38, %v2992_v26  ;;  %v2995_v36 = vsel %vm2911_vm5, %v6306_v48, 0.0 }
 0x2af   : > { %v2910_v42 = vmul.f32 %v3637_v35, %v6455_v28  ;;  %2941 = vst.msk [vmem:[%s4638_s11 + $0xe8] sm:$0xff] %vm2911_vm5, %v2908_v27 }
 0x2b0   : > { %2942 = vst.msk [vmem:[%s4638_s11 + $0xf0] sm:$0xff] %vm2911_vm5, %v2909_v10  ;;  %v2996_v47 = vadd.f32 %v2995_v36, %v2994_v40 }
 0x2b1   : > { %2943 = vst.msk [vmem:[%s4638_s11 + $0xf8] sm:$0xff] %vm2911_vm5, %v2910_v42 }
 0x2b2   : > { %3656 = shalt.err (!%p3653_p3)
}
 0x2b3   : > { %s3657_s11 = scalar_lea.hbm %s6512_s13, 4096  ;;  %s3661_s26 = scalar_lea.hbm %s6594_s5, 8192 }
 0x2b4   : > { %p3658_p4 = scmp.ne.s32.totalorder %s6512_s13, %s3657_s11  ;;  %p3662_p9 = scmp.lt.s32.totalorder %s6512_s13, %s6594_s5 }
 0x2b5   : > { %p3663_p10 = scmp.lt.s32.totalorder %s3661_s26, %s3657_s11 }
 0x2b6   : > { %p3659_p7 = pnand %p3658_p4, %p3812_p5 }
 0x2b7   : > { %p3664_p11 = por %p3663_p10, %p3662_p9 }
 0x2b8   : > { %p3660_p8 = pneg %p3659_p7 }
 0x2ba   : > { %p3665_p12 = pnand %p3664_p11, %p3660_p8 }
 0x2bc   : > { %3668 = shalt.err (!%p3665_p12)
}
 0x2bd   : > { %s3736_s12 = smov 128   ;;  %s3737_s15 = smov 8   ;;  %v2998_v48 = vadd.f32 %v2997_v37, %v2996_v47  ;;  %v2999_v12 = vsel %vm2911_vm5, %v2907_v59, 0.0  ;;  %v3001_v49 = vsel %vm2911_vm5, %v2908_v27, 0.0  ;;  %v3003_v31 = vsel %vm2911_vm5, %v2909_v10, 0.0 }
 0x2be   : > { %3336 = dma.vmem_to_hbm [thread:$0]  (%p3812_p5), %s6514_s29, 4096, %s6512_s13, %s3016_s14, %s3736_s12, %s3736_s12, %s3737_s15   ;;  %v3005_v60 = vsel %vm2911_vm5, %v2910_v42, 0.0  ;;  %vm3013_vm6 = vcmask 122880  }
 0x2bf   : > { %v3000_v28 = vadd.f32 %v2999_v12, %v2998_v48  ;;  %s3246_s29 = sshll.u32 %s3795_s25, 4  ;;  %s254_s13 = scalar_lea.vmem [#allocation4], %s4577_s9 }
 0x2c0   : > { %s3049_s14 = sshll.u32 %s254_s13, 4  ;;  %s3047_s18 = scalar_lea.hbm %s6595_s6, %s3246_s29  ;;  %s3050_s14 = int_to_ptr.vmem [resolvable:$true] %s3049_s14 }
 0x2c1   : > { %v3002_v46 = vadd.f32 %v3001_v49, %v3000_v28  ;;  %s3021_s11 = scalar_lea.sflag [#allocation5], %s4577_s9  ;;  %s3669_s19 = scalar_lea.vmem %s3050_s14, 16 }
 0x2c2   : > { %p3670_p13 = scmp.ne.s32.totalorder %s3050_s14, %s3669_s19  ;;  %s3738_s20 = smov [#allocation4]  }
 0x2c3   : > { %v3004_v18 = vadd.f32 %v3003_v31, %v3002_v46  ;;  %s3673_s26 = sshll.u32 %s3738_s20, 4  ;;  %s3674_s26 = int_to_ptr.vmem [resolvable:$false] %s3673_s26 }
 0x2c4   : > { %p3671_p0 = pnand %p3670_p13, %p3812_p5  ;;  %s3675_s25 = scalar_lea.vmem %s3674_s26, 32 }
 0x2c5   : > { %v3006_v15 = vadd.f32 %v3005_v60, %v3004_v18  ;;  %p3676_p2 = scmp.lt.s32.totalorder %s3050_s14, %s3674_s26  ;;  %p3677_p3 = scmp.lt.s32.totalorder %s3675_s25, %s3669_s19 }
 0x2c6   : > { %p3672_p1 = pneg %p3671_p0 }
 0x2c7   : > { %v3007_v45 = vrot.slane %v3006_v15, 4  ;;  %p3678_p4 = por %p3677_p3, %p3676_p2 }
 0x2c9   : > { %v3008_v56 = vadd.f32 %v3007_v45, %v3006_v15  ;;  %p3679_p7 = pnand %p3678_p4, %p3672_p1 }
 0x2cb   : > { %v3009_v4 = vrot.slane %v3008_v56, 2 }
 0x2cd   : > { %v3010_v9 = vadd.f32 %v3009_v4, %v3008_v56 }
 0x2cf   : > { %v3011_v21 = vrot.slane %v3010_v9, 1 }
 0x2d1   : > { %v3012_v63 = vadd.f32 %v3011_v21, %v3010_v9 }
 0x2d3   : > { %3014 = vst.msk [vmem:[%s254_s13] sm:$0x1] %vm3013_vm6, %v3012_v63 }
 0x2d4   : > { %3682 = shalt.err (!%p3679_p7)
}
 0x2d5   : > { %s3683_s28 = scalar_lea.hbm %s3047_s18, 16  ;;  %s3687_s12 = scalar_lea.hbm %s6595_s6, 32 }
 0x2d6   : > { %p3684_p8 = scmp.ne.s32.totalorder %s3047_s18, %s3683_s28  ;;  %p3688_p11 = scmp.lt.s32.totalorder %s3047_s18, %s6595_s6 }
 0x2d7   : > { %p3689_p12 = scmp.lt.s32.totalorder %s3687_s12, %s3683_s28 }
 0x2d8   : > { %p3685_p9 = pnand %p3684_p8, %p3812_p5 }
 0x2d9   : > { %p3690_p13 = por %p3689_p12, %p3688_p11 }
 0x2da   : > { %p3686_p10 = pneg %p3685_p9 }
 0x2dc   : > { %p3691_p0 = pnand %p3690_p13, %p3686_p10 }
 0x2de   : > { %3694 = shalt.err (!%p3691_p0)
}
 0x2df   : > { %3337 = dma.vmem_to_hbm [thread:$0]  (%p3812_p5), %s3050_s14, 16, %s3047_s18, %s3021_s11  }
 0x2e0 PF: > { %p3347_p1 = scmp.ge.s32.totalorder %s3733_s24, 2  ;;  %s3061_s13 = sand.u32 1, %s3721_s21  }
 0x2e1   : > { %s3062_s16 = scalar_lea.sflag [#allocation3], %s3061_s13 }
 0x2e2   : > { %p3341_p2 = pnand %p3347_p1, %p3816_p6 }
 0x2e4   : > { %p3342_p3 = pneg %p3341_p2 }
 0x2e6   : > { %3712 = dma.done.wait (%p3342_p3), %s3062_s16, 4096  }
 0x2e7   : > { %3714 = vsyncadd (%p3342_p3), %s3062_s16, 4294963200  ;;  %s3071_s17 = scalar_lea.sflag [#allocation5], %s3061_s13 }
 0x2e8   : > { %3716 = dma.done.wait (%p3342_p3), %s3071_s17, 16  }
 0x2e9   : > { %3718 = vsyncadd (%p3342_p3), %s3071_s17, 4294967280  ;;  %p20_p5 = scmp.ge.s32.totalorder %s3799_s27, 4   ;;  %s7106_s21 = smov %s3725_s22 }
 0x2ea   : > { %s7107_s22 = smov %s3729_s23  ;;  %s7108_s23 = smov %s3810_s30 }
 0x2eb   : > { %s7109_s24 = smov %s3799_s27  ;;  %22 = sbr.rel (!%p20_p5) target bundleno = 5 (0x5), region = 92 }
 0x2f0   :  { %3075 = vsyncpa [#allocation3], 1 }
 0x2f1   :  { %3077 = vsyncpa [#allocation3 + $0x1], 1 }
 0x2f2   :  { %3078 = vsyncpa [#allocation5], 1 }
 0x2f3   :  { %3080 = vsyncpa [#allocation5 + $0x1], 1 }

</bundles_post_ra>
